<compile_context>
chip_gen: v6e
topology: v6e:2x2x1
jax: 0.10.0
libtpu: 0.0.40
codegen_flags: <defaults>
</compile_context>

<pallas_src>
import functools

import jax
import jax.numpy as jnp
from jax.experimental import pallas as pl
from jax.experimental.pallas import tpu as pltpu


def _round_up(x, m):
    return ((x + m - 1) // m) * m


def _linear(x_f32, w_ref, b_ref, relu):
    # bf16 operands into the MXU, f32 accumulation, bias add + ReLU in f32.
    y = jnp.dot(x_f32.astype(jnp.bfloat16), w_ref[...],
                preferred_element_type=jnp.float32) + b_ref[...]
    if relu:
        y = jnp.maximum(y, 0.0)
    return y


def critic_kernel(
    sa_ref,
    w1, b1, w2, b2, w3, b3, w4, b4, w5, b5,       # Q1 hidden layers (l1..l5)
    w7, b7, w8, b8, w9, b9, w10, b10, w11, b11,   # Q2 hidden layers (l7..l11)
    wf, bf,                                        # fused block-diag l6/l12
    out_ref,
):
    sa = sa_ref[...].astype(jnp.float32)

    # --- Q1 head -----------------------------------------------------------
    h = _linear(sa, w1, b1, True)      # -> 256
    h = _linear(h, w2, b2, True)       # -> 256
    h = _linear(h, w3, b3, True)       # -> 512
    h = _linear(h, w4, b4, True)       # -> 512  (l4, 1st)
    h = _linear(h, w4, b4, True)       # -> 512  (l4, 2nd)
    h = _linear(h, w4, b4, True)       # -> 512  (l4, 3rd)
    h = _linear(h, w5, b5, True)       # -> 256

    # --- Q2 head -----------------------------------------------------------
    g = _linear(sa, w7, b7, True)      # -> 256
    g = _linear(g, w8, b8, True)       # -> 256
    g = _linear(g, w9, b9, True)       # -> 512
    g = _linear(g, w10, b10, True)     # -> 512  (l10, 1st)
    g = _linear(g, w10, b10, True)     # -> 512  (l10, 2nd)
    g = _linear(g, w10, b10, True)     # -> 512  (l10, 3rd)
    g = _linear(g, w11, b11, True)     # -> 256

    # Fused final layer: [h | g] @ blockdiag(w6, w12) + [b6 | b12]  -> (TILE_B, 2)
    hg = jnp.concatenate([h, g], axis=1)
    q = _linear(hg, wf, bf, False)
    out_ref[...] = q.astype(out_ref.dtype)


def prepare_kernel_params(params):
    """Convert 12 f32 (in,out)-layout Linear params into the kernel's layout:
    bf16 weights, f32 (1, out) biases, plus a fused block-diagonal final layer."""
    assert len(params) == 12
    hidden_idx = [0, 1, 2, 3, 4, 6, 7, 8, 9, 10]  # l1..l5, l7..l11
    flat = []
    for i in hidden_idx:
        w, b = params[i]
        flat.append(w.astype(jnp.bfloat16))
        flat.append(b.astype(jnp.float32).reshape(1, -1))
    (w6, b6), (w12, b12) = params[5], params[11]
    k1, k2 = w6.shape[0], w12.shape[0]
    wf = jnp.zeros((k1 + k2, 2), jnp.float32)
    wf = wf.at[:k1, 0:1].set(w6.reshape(k1, 1))
    wf = wf.at[k1:, 1:2].set(w12.reshape(k2, 1))
    flat.append(wf.astype(jnp.bfloat16))
    flat.append(jnp.concatenate(
        [b6.reshape(1, -1), b12.reshape(1, -1)], axis=1).astype(jnp.float32))
    return flat


@jax.jit
def critic_forward(state, action, kernel_params):
    """state: (B, state_dim), action: (B, action_dim),
    kernel_params: output of prepare_kernel_params. Returns (q1, q2), each (B, 1)."""
    sa = jnp.concatenate([state, action], axis=1).astype(jnp.float32)
    B, sa_dim = sa.shape

    # Batch tiling: pad to a multiple of 8 (sublane) and tile at up to 256 rows.
    b8 = _round_up(B, 8)
    tile_b = min(256, b8)
    b_pad = _round_up(B, tile_b)
    if b_pad != B:
        sa = jnp.pad(sa, ((0, b_pad - B), (0, 0)))
    grid = (b_pad // tile_b,)

    sa_spec = pl.BlockSpec((tile_b, sa_dim), lambda i: (i, 0))
    # Full-array blocks with a constant index_map: fetched once, VMEM-resident
    # across all batch-grid steps.
    param_specs = [pl.BlockSpec(p.shape, lambda i: (0, 0)) for p in kernel_params]
    out_spec = pl.BlockSpec((tile_b, 2), lambda i: (i, 0))

    # Advisory cost estimate (flops count the triple-applied l4/l10).
    weight_arrs = kernel_params[0::2]
    flops = 0
    for idx, w in enumerate(weight_arrs[:-1]):
        rep = 3 if (idx % 5) == 3 else 1
        flops += rep * 2 * b_pad * w.shape[0] * w.shape[1]
    wf = weight_arrs[-1]
    flops += 2 * b_pad * wf.shape[0] * wf.shape[1]
    bytes_accessed = sum(int(p.size) * p.dtype.itemsize for p in kernel_params)
    bytes_accessed += int(sa.size) * sa.dtype.itemsize + b_pad * 2 * 4
    cost = pl.CostEstimate(flops=int(flops), transcendentals=0,
                           bytes_accessed=int(bytes_accessed))

    out = pl.pallas_call(
        critic_kernel,
        out_shape=jax.ShapeDtypeStruct((b_pad, 2), jnp.float32),
        grid=grid,
        in_specs=[sa_spec] + param_specs,
        out_specs=out_spec,
        compiler_params=pltpu.CompilerParams(
            dimension_semantics=("parallel",),  # shards batch tiles across v7x's 2 TCs
        ),
        cost_estimate=cost,
    )(sa, *kernel_params)

    q1 = out[:B, 0:1]
    q2 = out[:B, 1:2]
    return q1, q2


def init_params(state_dim, action_dim, key):
    """Deterministic synthetic init (PyTorch nn.Linear-style uniform bounds).
    Weight layout is (in_features, out_features)."""
    sa_dim = state_dim + action_dim
    layer_dims = [
        (sa_dim, 256), (256, 256), (256, 512), (512, 512), (512, 256), (256, 1),   # l1..l6
        (sa_dim, 256), (256, 256), (256, 512), (512, 512), (512, 256), (256, 1),   # l7..l12
    ]
    params = []
    for fan_in, fan_out in layer_dims:
        kw, kb, key = jax.random.split(key, 3)
        bound = 1.0 / jnp.sqrt(jnp.float32(fan_in))
        w = jax.random.uniform(kw, (fan_in, fan_out), jnp.float32, -bound, bound)
        b = jax.random.uniform(kb, (fan_out,), jnp.float32, -bound, bound)
        params.append((w, b))
    return params


def critic_reference(state, action, params):
    """Pure-JAX reference matching the PyTorch forward, with the same bf16-operand /
    f32-accumulate policy as the kernel (for tight verification)."""
    sa = jnp.concatenate([state, action], axis=1).astype(jnp.float32)

    def lin(x, p, relu=True):
        w, b = p
        y = jnp.dot(x.astype(jnp.bfloat16), w.astype(jnp.bfloat16),
                    preferred_element_type=jnp.float32) + b.astype(jnp.float32)
        return jnp.maximum(y, 0.0) if relu else y

    p = params
    h = lin(sa, p[0]); h = lin(h, p[1]); h = lin(h, p[2])
    h = lin(h, p[3]); h = lin(h, p[3]); h = lin(h, p[3])
    h = lin(h, p[4]); q1 = lin(h, p[5], relu=False)
    g = lin(sa, p[6]); g = lin(g, p[7]); g = lin(g, p[8])
    g = lin(g, p[9]); g = lin(g, p[9]); g = lin(g, p[9])
    g = lin(g, p[10]); q2 = lin(g, p[11], relu=False)
    return q1, q2


if __name__ == "__main__":
    state_dim, action_dim, batch = 12, 4, 2

    key = jax.random.PRNGKey(0)
    k_state, k_action, k_params = jax.random.split(key, 3)

    state = jax.random.normal(k_state, (batch, state_dim), jnp.float32)
    action = jax.random.normal(k_action, (batch, action_dim), jnp.float32)
    params = init_params(state_dim, action_dim, k_params)
    kernel_params = prepare_kernel_params(params)

    q1, q2 = critic_forward(state, action, kernel_params)
    jax.block_until_ready((q1, q2))

    r1, r2 = critic_reference(state, action, params)
    assert q1.shape == (batch, 1) and q2.shape == (batch, 1)
    assert jnp.allclose(q1, r1, atol=1e-2, rtol=1e-2), (q1, r1)
    assert jnp.allclose(q2, r2, atol=1e-2, rtol=1e-2), (q2, r2)

    print("KERNEL_OK")
</pallas_src>

<mosaic_0001>
module attributes {stable_mosaic.version = 11 : i64} {
  func.func @critic_kernel(%arg0: i32, %arg1: memref<8x16xf32, #tpu.memory_space<vmem>>, %arg2: memref<16x256xbf16, #tpu.memory_space<vmem>>, %arg3: memref<1x256xf32, #tpu.memory_space<vmem>>, %arg4: memref<256x256xbf16, #tpu.memory_space<vmem>>, %arg5: memref<1x256xf32, #tpu.memory_space<vmem>>, %arg6: memref<256x512xbf16, #tpu.memory_space<vmem>>, %arg7: memref<1x512xf32, #tpu.memory_space<vmem>>, %arg8: memref<512x512xbf16, #tpu.memory_space<vmem>>, %arg9: memref<1x512xf32, #tpu.memory_space<vmem>>, %arg10: memref<512x256xbf16, #tpu.memory_space<vmem>>, %arg11: memref<1x256xf32, #tpu.memory_space<vmem>>, %arg12: memref<16x256xbf16, #tpu.memory_space<vmem>>, %arg13: memref<1x256xf32, #tpu.memory_space<vmem>>, %arg14: memref<256x256xbf16, #tpu.memory_space<vmem>>, %arg15: memref<1x256xf32, #tpu.memory_space<vmem>>, %arg16: memref<256x512xbf16, #tpu.memory_space<vmem>>, %arg17: memref<1x512xf32, #tpu.memory_space<vmem>>, %arg18: memref<512x512xbf16, #tpu.memory_space<vmem>>, %arg19: memref<1x512xf32, #tpu.memory_space<vmem>>, %arg20: memref<512x256xbf16, #tpu.memory_space<vmem>>, %arg21: memref<1x256xf32, #tpu.memory_space<vmem>>, %arg22: memref<512x2xbf16, #tpu.memory_space<vmem>>, %arg23: memref<1x2xf32, #tpu.memory_space<vmem>>, %arg24: memref<8x2xf32, #tpu.memory_space<vmem>>) attributes {dimension_semantics = [#tpu.dimension_semantics<parallel>], iteration_bounds = array<i64: 1>, scalar_prefetch = 0 : i64, scratch_operands = 0 : i64, tpu.core_type = #tpu.core_type<tc>, window_params = [{transform_indices = @transform_0, window_bounds = array<i64: 8, 16>}, {pipeline_mode = #tpu.pipeline_mode<synchronous>, transform_indices = @transform_1, window_bounds = array<i64: 16, 256>}, {pipeline_mode = #tpu.pipeline_mode<synchronous>, transform_indices = @transform_2, window_bounds = array<i64: 1, 256>}, {pipeline_mode = #tpu.pipeline_mode<synchronous>, transform_indices = @transform_3, window_bounds = array<i64: 256, 256>}, {pipeline_mode = #tpu.pipeline_mode<synchronous>, transform_indices = @transform_4, window_bounds = array<i64: 1, 256>}, {pipeline_mode = #tpu.pipeline_mode<synchronous>, transform_indices = @transform_5, window_bounds = array<i64: 256, 512>}, {pipeline_mode = #tpu.pipeline_mode<synchronous>, transform_indices = @transform_6, window_bounds = array<i64: 1, 512>}, {pipeline_mode = #tpu.pipeline_mode<synchronous>, transform_indices = @transform_7, window_bounds = array<i64: 512, 512>}, {pipeline_mode = #tpu.pipeline_mode<synchronous>, transform_indices = @transform_8, window_bounds = array<i64: 1, 512>}, {pipeline_mode = #tpu.pipeline_mode<synchronous>, transform_indices = @transform_9, window_bounds = array<i64: 512, 256>}, {pipeline_mode = #tpu.pipeline_mode<synchronous>, transform_indices = @transform_10, window_bounds = array<i64: 1, 256>}, {pipeline_mode = #tpu.pipeline_mode<synchronous>, transform_indices = @transform_11, window_bounds = array<i64: 16, 256>}, {pipeline_mode = #tpu.pipeline_mode<synchronous>, transform_indices = @transform_12, window_bounds = array<i64: 1, 256>}, {pipeline_mode = #tpu.pipeline_mode<synchronous>, transform_indices = @transform_13, window_bounds = array<i64: 256, 256>}, {pipeline_mode = #tpu.pipeline_mode<synchronous>, transform_indices = @transform_14, window_bounds = array<i64: 1, 256>}, {pipeline_mode = #tpu.pipeline_mode<synchronous>, transform_indices = @transform_15, window_bounds = array<i64: 256, 512>}, {pipeline_mode = #tpu.pipeline_mode<synchronous>, transform_indices = @transform_16, window_bounds = array<i64: 1, 512>}, {pipeline_mode = #tpu.pipeline_mode<synchronous>, transform_indices = @transform_17, window_bounds = array<i64: 512, 512>}, {pipeline_mode = #tpu.pipeline_mode<synchronous>, transform_indices = @transform_18, window_bounds = array<i64: 1, 512>}, {pipeline_mode = #tpu.pipeline_mode<synchronous>, transform_indices = @transform_19, window_bounds = array<i64: 512, 256>}, {pipeline_mode = #tpu.pipeline_mode<synchronous>, transform_indices = @transform_20, window_bounds = array<i64: 1, 256>}, {pipeline_mode = #tpu.pipeline_mode<synchronous>, transform_indices = @transform_21, window_bounds = array<i64: 512, 2>}, {pipeline_mode = #tpu.pipeline_mode<synchronous>, transform_indices = @transform_22, window_bounds = array<i64: 1, 2>}, {transform_indices = @transform_23, window_bounds = array<i64: 8, 2>}]} {
    %c0 = arith.constant 0 : index
    %c0_0 = arith.constant 0 : index
    %0 = vector.load %arg1[%c0, %c0_0] : memref<8x16xf32, #tpu.memory_space<vmem>>, vector<8x16xf32>
    %1 = arith.truncf %0 : vector<8x16xf32> to vector<8x16xbf16>
    %c0_1 = arith.constant 0 : index
    %c0_2 = arith.constant 0 : index
    %2 = vector.load %arg2[%c0_1, %c0_2] : memref<16x256xbf16, #tpu.memory_space<vmem>>, vector<16x256xbf16>
    %cst = arith.constant dense<0.000000e+00> : vector<8x256xf32>
    %3 = tpu.matmul %1, %2, %cst {dimension_numbers = #tpu.dot_dimension_numbers<[1], [0], [0], [1], [0, 0, 1, 1], [], []>} : vector<8x16xbf16>, vector<16x256xbf16>, vector<8x256xf32> -> vector<8x256xf32>
    %c0_3 = arith.constant 0 : index
    %c0_4 = arith.constant 0 : index
    %4 = vector.load %arg3[%c0_3, %c0_4] : memref<1x256xf32, #tpu.memory_space<vmem>>, vector<1x256xf32>
    %5 = vector.broadcast %4 : vector<1x256xf32> to vector<8x256xf32>
    %6 = arith.addf %3, %5 : vector<8x256xf32>
    %cst_5 = arith.constant 0.000000e+00 : f32
    %7 = vector.broadcast %cst_5 : f32 to vector<8x256xf32>
    %8 = arith.maximumf %6, %7 : vector<8x256xf32>
    %9 = arith.truncf %8 : vector<8x256xf32> to vector<8x256xbf16>
    %c0_6 = arith.constant 0 : index
    %c0_7 = arith.constant 0 : index
    %10 = vector.load %arg4[%c0_6, %c0_7] : memref<256x256xbf16, #tpu.memory_space<vmem>>, vector<256x256xbf16>
    %cst_8 = arith.constant dense<0.000000e+00> : vector<8x256xf32>
    %11 = tpu.matmul %9, %10, %cst_8 {dimension_numbers = #tpu.dot_dimension_numbers<[1], [0], [0], [1], [0, 0, 1, 1], [], []>} : vector<8x256xbf16>, vector<256x256xbf16>, vector<8x256xf32> -> vector<8x256xf32>
    %c0_9 = arith.constant 0 : index
    %c0_10 = arith.constant 0 : index
    %12 = vector.load %arg5[%c0_9, %c0_10] : memref<1x256xf32, #tpu.memory_space<vmem>>, vector<1x256xf32>
    %13 = vector.broadcast %12 : vector<1x256xf32> to vector<8x256xf32>
    %14 = arith.addf %11, %13 : vector<8x256xf32>
    %cst_11 = arith.constant 0.000000e+00 : f32
    %15 = vector.broadcast %cst_11 : f32 to vector<8x256xf32>
    %16 = arith.maximumf %14, %15 : vector<8x256xf32>
    %17 = arith.truncf %16 : vector<8x256xf32> to vector<8x256xbf16>
    %c0_12 = arith.constant 0 : index
    %c0_13 = arith.constant 0 : index
    %18 = vector.load %arg6[%c0_12, %c0_13] : memref<256x512xbf16, #tpu.memory_space<vmem>>, vector<256x512xbf16>
    %cst_14 = arith.constant dense<0.000000e+00> : vector<8x512xf32>
    %19 = tpu.matmul %17, %18, %cst_14 {dimension_numbers = #tpu.dot_dimension_numbers<[1], [0], [0], [1], [0, 0, 1, 1], [], []>} : vector<8x256xbf16>, vector<256x512xbf16>, vector<8x512xf32> -> vector<8x512xf32>
    %c0_15 = arith.constant 0 : index
    %c0_16 = arith.constant 0 : index
    %20 = vector.load %arg7[%c0_15, %c0_16] : memref<1x512xf32, #tpu.memory_space<vmem>>, vector<1x512xf32>
    %21 = vector.broadcast %20 : vector<1x512xf32> to vector<8x512xf32>
    %22 = arith.addf %19, %21 : vector<8x512xf32>
    %cst_17 = arith.constant 0.000000e+00 : f32
    %23 = vector.broadcast %cst_17 : f32 to vector<8x512xf32>
    %24 = arith.maximumf %22, %23 : vector<8x512xf32>
    %25 = arith.truncf %24 : vector<8x512xf32> to vector<8x512xbf16>
    %c0_18 = arith.constant 0 : index
    %c0_19 = arith.constant 0 : index
    %26 = vector.load %arg8[%c0_18, %c0_19] : memref<512x512xbf16, #tpu.memory_space<vmem>>, vector<512x512xbf16>
    %cst_20 = arith.constant dense<0.000000e+00> : vector<8x512xf32>
    %27 = tpu.matmul %25, %26, %cst_20 {dimension_numbers = #tpu.dot_dimension_numbers<[1], [0], [0], [1], [0, 0, 1, 1], [], []>} : vector<8x512xbf16>, vector<512x512xbf16>, vector<8x512xf32> -> vector<8x512xf32>
    %c0_21 = arith.constant 0 : index
    %c0_22 = arith.constant 0 : index
    %28 = vector.load %arg9[%c0_21, %c0_22] : memref<1x512xf32, #tpu.memory_space<vmem>>, vector<1x512xf32>
    %29 = vector.broadcast %28 : vector<1x512xf32> to vector<8x512xf32>
    %30 = arith.addf %27, %29 : vector<8x512xf32>
    %cst_23 = arith.constant 0.000000e+00 : f32
    %31 = vector.broadcast %cst_23 : f32 to vector<8x512xf32>
    %32 = arith.maximumf %30, %31 : vector<8x512xf32>
    %33 = arith.truncf %32 : vector<8x512xf32> to vector<8x512xbf16>
    %c0_24 = arith.constant 0 : index
    %c0_25 = arith.constant 0 : index
    %34 = vector.load %arg8[%c0_24, %c0_25] : memref<512x512xbf16, #tpu.memory_space<vmem>>, vector<512x512xbf16>
    %cst_26 = arith.constant dense<0.000000e+00> : vector<8x512xf32>
    %35 = tpu.matmul %33, %34, %cst_26 {dimension_numbers = #tpu.dot_dimension_numbers<[1], [0], [0], [1], [0, 0, 1, 1], [], []>} : vector<8x512xbf16>, vector<512x512xbf16>, vector<8x512xf32> -> vector<8x512xf32>
    %c0_27 = arith.constant 0 : index
    %c0_28 = arith.constant 0 : index
    %36 = vector.load %arg9[%c0_27, %c0_28] : memref<1x512xf32, #tpu.memory_space<vmem>>, vector<1x512xf32>
    %37 = vector.broadcast %36 : vector<1x512xf32> to vector<8x512xf32>
    %38 = arith.addf %35, %37 : vector<8x512xf32>
    %cst_29 = arith.constant 0.000000e+00 : f32
    %39 = vector.broadcast %cst_29 : f32 to vector<8x512xf32>
    %40 = arith.maximumf %38, %39 : vector<8x512xf32>
    %41 = arith.truncf %40 : vector<8x512xf32> to vector<8x512xbf16>
    %c0_30 = arith.constant 0 : index
    %c0_31 = arith.constant 0 : index
    %42 = vector.load %arg8[%c0_30, %c0_31] : memref<512x512xbf16, #tpu.memory_space<vmem>>, vector<512x512xbf16>
    %cst_32 = arith.constant dense<0.000000e+00> : vector<8x512xf32>
    %43 = tpu.matmul %41, %42, %cst_32 {dimension_numbers = #tpu.dot_dimension_numbers<[1], [0], [0], [1], [0, 0, 1, 1], [], []>} : vector<8x512xbf16>, vector<512x512xbf16>, vector<8x512xf32> -> vector<8x512xf32>
    %c0_33 = arith.constant 0 : index
    %c0_34 = arith.constant 0 : index
    %44 = vector.load %arg9[%c0_33, %c0_34] : memref<1x512xf32, #tpu.memory_space<vmem>>, vector<1x512xf32>
    %45 = vector.broadcast %44 : vector<1x512xf32> to vector<8x512xf32>
    %46 = arith.addf %43, %45 : vector<8x512xf32>
    %cst_35 = arith.constant 0.000000e+00 : f32
    %47 = vector.broadcast %cst_35 : f32 to vector<8x512xf32>
    %48 = arith.maximumf %46, %47 : vector<8x512xf32>
    %49 = arith.truncf %48 : vector<8x512xf32> to vector<8x512xbf16>
    %c0_36 = arith.constant 0 : index
    %c0_37 = arith.constant 0 : index
    %50 = vector.load %arg10[%c0_36, %c0_37] : memref<512x256xbf16, #tpu.memory_space<vmem>>, vector<512x256xbf16>
    %cst_38 = arith.constant dense<0.000000e+00> : vector<8x256xf32>
    %51 = tpu.matmul %49, %50, %cst_38 {dimension_numbers = #tpu.dot_dimension_numbers<[1], [0], [0], [1], [0, 0, 1, 1], [], []>} : vector<8x512xbf16>, vector<512x256xbf16>, vector<8x256xf32> -> vector<8x256xf32>
    %c0_39 = arith.constant 0 : index
    %c0_40 = arith.constant 0 : index
    %52 = vector.load %arg11[%c0_39, %c0_40] : memref<1x256xf32, #tpu.memory_space<vmem>>, vector<1x256xf32>
    %53 = vector.broadcast %52 : vector<1x256xf32> to vector<8x256xf32>
    %54 = arith.addf %51, %53 : vector<8x256xf32>
    %cst_41 = arith.constant 0.000000e+00 : f32
    %55 = vector.broadcast %cst_41 : f32 to vector<8x256xf32>
    %56 = arith.maximumf %54, %55 : vector<8x256xf32>
    %57 = arith.truncf %0 : vector<8x16xf32> to vector<8x16xbf16>
    %c0_42 = arith.constant 0 : index
    %c0_43 = arith.constant 0 : index
    %58 = vector.load %arg12[%c0_42, %c0_43] : memref<16x256xbf16, #tpu.memory_space<vmem>>, vector<16x256xbf16>
    %cst_44 = arith.constant dense<0.000000e+00> : vector<8x256xf32>
    %59 = tpu.matmul %57, %58, %cst_44 {dimension_numbers = #tpu.dot_dimension_numbers<[1], [0], [0], [1], [0, 0, 1, 1], [], []>} : vector<8x16xbf16>, vector<16x256xbf16>, vector<8x256xf32> -> vector<8x256xf32>
    %c0_45 = arith.constant 0 : index
    %c0_46 = arith.constant 0 : index
    %60 = vector.load %arg13[%c0_45, %c0_46] : memref<1x256xf32, #tpu.memory_space<vmem>>, vector<1x256xf32>
    %61 = vector.broadcast %60 : vector<1x256xf32> to vector<8x256xf32>
    %62 = arith.addf %59, %61 : vector<8x256xf32>
    %cst_47 = arith.constant 0.000000e+00 : f32
    %63 = vector.broadcast %cst_47 : f32 to vector<8x256xf32>
    %64 = arith.maximumf %62, %63 : vector<8x256xf32>
    %65 = arith.truncf %64 : vector<8x256xf32> to vector<8x256xbf16>
    %c0_48 = arith.constant 0 : index
    %c0_49 = arith.constant 0 : index
    %66 = vector.load %arg14[%c0_48, %c0_49] : memref<256x256xbf16, #tpu.memory_space<vmem>>, vector<256x256xbf16>
    %cst_50 = arith.constant dense<0.000000e+00> : vector<8x256xf32>
    %67 = tpu.matmul %65, %66, %cst_50 {dimension_numbers = #tpu.dot_dimension_numbers<[1], [0], [0], [1], [0, 0, 1, 1], [], []>} : vector<8x256xbf16>, vector<256x256xbf16>, vector<8x256xf32> -> vector<8x256xf32>
    %c0_51 = arith.constant 0 : index
    %c0_52 = arith.constant 0 : index
    %68 = vector.load %arg15[%c0_51, %c0_52] : memref<1x256xf32, #tpu.memory_space<vmem>>, vector<1x256xf32>
    %69 = vector.broadcast %68 : vector<1x256xf32> to vector<8x256xf32>
    %70 = arith.addf %67, %69 : vector<8x256xf32>
    %cst_53 = arith.constant 0.000000e+00 : f32
    %71 = vector.broadcast %cst_53 : f32 to vector<8x256xf32>
    %72 = arith.maximumf %70, %71 : vector<8x256xf32>
    %73 = arith.truncf %72 : vector<8x256xf32> to vector<8x256xbf16>
    %c0_54 = arith.constant 0 : index
    %c0_55 = arith.constant 0 : index
    %74 = vector.load %arg16[%c0_54, %c0_55] : memref<256x512xbf16, #tpu.memory_space<vmem>>, vector<256x512xbf16>
    %cst_56 = arith.constant dense<0.000000e+00> : vector<8x512xf32>
    %75 = tpu.matmul %73, %74, %cst_56 {dimension_numbers = #tpu.dot_dimension_numbers<[1], [0], [0], [1], [0, 0, 1, 1], [], []>} : vector<8x256xbf16>, vector<256x512xbf16>, vector<8x512xf32> -> vector<8x512xf32>
    %c0_57 = arith.constant 0 : index
    %c0_58 = arith.constant 0 : index
    %76 = vector.load %arg17[%c0_57, %c0_58] : memref<1x512xf32, #tpu.memory_space<vmem>>, vector<1x512xf32>
    %77 = vector.broadcast %76 : vector<1x512xf32> to vector<8x512xf32>
    %78 = arith.addf %75, %77 : vector<8x512xf32>
    %cst_59 = arith.constant 0.000000e+00 : f32
    %79 = vector.broadcast %cst_59 : f32 to vector<8x512xf32>
    %80 = arith.maximumf %78, %79 : vector<8x512xf32>
    %81 = arith.truncf %80 : vector<8x512xf32> to vector<8x512xbf16>
    %c0_60 = arith.constant 0 : index
    %c0_61 = arith.constant 0 : index
    %82 = vector.load %arg18[%c0_60, %c0_61] : memref<512x512xbf16, #tpu.memory_space<vmem>>, vector<512x512xbf16>
    %cst_62 = arith.constant dense<0.000000e+00> : vector<8x512xf32>
    %83 = tpu.matmul %81, %82, %cst_62 {dimension_numbers = #tpu.dot_dimension_numbers<[1], [0], [0], [1], [0, 0, 1, 1], [], []>} : vector<8x512xbf16>, vector<512x512xbf16>, vector<8x512xf32> -> vector<8x512xf32>
    %c0_63 = arith.constant 0 : index
    %c0_64 = arith.constant 0 : index
    %84 = vector.load %arg19[%c0_63, %c0_64] : memref<1x512xf32, #tpu.memory_space<vmem>>, vector<1x512xf32>
    %85 = vector.broadcast %84 : vector<1x512xf32> to vector<8x512xf32>
    %86 = arith.addf %83, %85 : vector<8x512xf32>
    %cst_65 = arith.constant 0.000000e+00 : f32
    %87 = vector.broadcast %cst_65 : f32 to vector<8x512xf32>
    %88 = arith.maximumf %86, %87 : vector<8x512xf32>
    %89 = arith.truncf %88 : vector<8x512xf32> to vector<8x512xbf16>
    %c0_66 = arith.constant 0 : index
    %c0_67 = arith.constant 0 : index
    %90 = vector.load %arg18[%c0_66, %c0_67] : memref<512x512xbf16, #tpu.memory_space<vmem>>, vector<512x512xbf16>
    %cst_68 = arith.constant dense<0.000000e+00> : vector<8x512xf32>
    %91 = tpu.matmul %89, %90, %cst_68 {dimension_numbers = #tpu.dot_dimension_numbers<[1], [0], [0], [1], [0, 0, 1, 1], [], []>} : vector<8x512xbf16>, vector<512x512xbf16>, vector<8x512xf32> -> vector<8x512xf32>
    %c0_69 = arith.constant 0 : index
    %c0_70 = arith.constant 0 : index
    %92 = vector.load %arg19[%c0_69, %c0_70] : memref<1x512xf32, #tpu.memory_space<vmem>>, vector<1x512xf32>
    %93 = vector.broadcast %92 : vector<1x512xf32> to vector<8x512xf32>
    %94 = arith.addf %91, %93 : vector<8x512xf32>
    %cst_71 = arith.constant 0.000000e+00 : f32
    %95 = vector.broadcast %cst_71 : f32 to vector<8x512xf32>
    %96 = arith.maximumf %94, %95 : vector<8x512xf32>
    %97 = arith.truncf %96 : vector<8x512xf32> to vector<8x512xbf16>
    %c0_72 = arith.constant 0 : index
    %c0_73 = arith.constant 0 : index
    %98 = vector.load %arg18[%c0_72, %c0_73] : memref<512x512xbf16, #tpu.memory_space<vmem>>, vector<512x512xbf16>
    %cst_74 = arith.constant dense<0.000000e+00> : vector<8x512xf32>
    %99 = tpu.matmul %97, %98, %cst_74 {dimension_numbers = #tpu.dot_dimension_numbers<[1], [0], [0], [1], [0, 0, 1, 1], [], []>} : vector<8x512xbf16>, vector<512x512xbf16>, vector<8x512xf32> -> vector<8x512xf32>
    %c0_75 = arith.constant 0 : index
    %c0_76 = arith.constant 0 : index
    %100 = vector.load %arg19[%c0_75, %c0_76] : memref<1x512xf32, #tpu.memory_space<vmem>>, vector<1x512xf32>
    %101 = vector.broadcast %100 : vector<1x512xf32> to vector<8x512xf32>
    %102 = arith.addf %99, %101 : vector<8x512xf32>
    %cst_77 = arith.constant 0.000000e+00 : f32
    %103 = vector.broadcast %cst_77 : f32 to vector<8x512xf32>
    %104 = arith.maximumf %102, %103 : vector<8x512xf32>
    %105 = arith.truncf %104 : vector<8x512xf32> to vector<8x512xbf16>
    %c0_78 = arith.constant 0 : index
    %c0_79 = arith.constant 0 : index
    %106 = vector.load %arg20[%c0_78, %c0_79] : memref<512x256xbf16, #tpu.memory_space<vmem>>, vector<512x256xbf16>
    %cst_80 = arith.constant dense<0.000000e+00> : vector<8x256xf32>
    %107 = tpu.matmul %105, %106, %cst_80 {dimension_numbers = #tpu.dot_dimension_numbers<[1], [0], [0], [1], [0, 0, 1, 1], [], []>} : vector<8x512xbf16>, vector<512x256xbf16>, vector<8x256xf32> -> vector<8x256xf32>
    %c0_81 = arith.constant 0 : index
    %c0_82 = arith.constant 0 : index
    %108 = vector.load %arg21[%c0_81, %c0_82] : memref<1x256xf32, #tpu.memory_space<vmem>>, vector<1x256xf32>
    %109 = vector.broadcast %108 : vector<1x256xf32> to vector<8x256xf32>
    %110 = arith.addf %107, %109 : vector<8x256xf32>
    %cst_83 = arith.constant 0.000000e+00 : f32
    %111 = vector.broadcast %cst_83 : f32 to vector<8x256xf32>
    %112 = arith.maximumf %110, %111 : vector<8x256xf32>
    %113 = tpu.concatenate %56, %112 in 1 : vector<8x256xf32>, vector<8x256xf32> -> vector<8x512xf32>
    %114 = arith.truncf %113 : vector<8x512xf32> to vector<8x512xbf16>
    %c0_84 = arith.constant 0 : index
    %c0_85 = arith.constant 0 : index
    %115 = vector.load %arg22[%c0_84, %c0_85] : memref<512x2xbf16, #tpu.memory_space<vmem>>, vector<512x2xbf16>
    %cst_86 = arith.constant dense<0.000000e+00> : vector<8x2xf32>
    %116 = tpu.matmul %114, %115, %cst_86 {dimension_numbers = #tpu.dot_dimension_numbers<[1], [0], [0], [1], [0, 0, 1, 1], [], []>} : vector<8x512xbf16>, vector<512x2xbf16>, vector<8x2xf32> -> vector<8x2xf32>
    %c0_87 = arith.constant 0 : index
    %c0_88 = arith.constant 0 : index
    %117 = vector.load %arg23[%c0_87, %c0_88] : memref<1x2xf32, #tpu.memory_space<vmem>>, vector<1x2xf32>
    %118 = vector.broadcast %117 : vector<1x2xf32> to vector<8x2xf32>
    %119 = arith.addf %116, %118 : vector<8x2xf32>
    %c0_89 = arith.constant 0 : index
    %c0_90 = arith.constant 0 : index
    %120 = vector.load %arg24[%c0_89, %c0_90] : memref<8x2xf32, #tpu.memory_space<vmem>>, vector<8x2xf32>
    tpu.vector_store %arg24[%c0_89, %c0_90], %119 {strides = array<i32>} : memref<8x2xf32, #tpu.memory_space<vmem>>, vector<8x2xf32>,
    return
  }
  func.func @transform_0(%arg0: i32) -> (i32, i32) {
    %c0_i32 = arith.constant 0 : i32
    %c0_i32_0 = arith.constant 0 : i32
    return %arg0, %c0_i32 : i32, i32
  }
  func.func @transform_1(%arg0: i32) -> (i32, i32) {
    %c0_i32 = arith.constant 0 : i32
    %c0_i32_0 = arith.constant 0 : i32
    %c0_i32_1 = arith.constant 0 : i32
    return %c0_i32, %c0_i32_0 : i32, i32
  }
  func.func @transform_2(%arg0: i32) -> (i32, i32) {
    %c0_i32 = arith.constant 0 : i32
    %c0_i32_0 = arith.constant 0 : i32
    %c0_i32_1 = arith.constant 0 : i32
    return %c0_i32, %c0_i32_0 : i32, i32
  }
  func.func @transform_3(%arg0: i32) -> (i32, i32) {
    %c0_i32 = arith.constant 0 : i32
    %c0_i32_0 = arith.constant 0 : i32
    %c0_i32_1 = arith.constant 0 : i32
    return %c0_i32, %c0_i32_0 : i32, i32
  }
  func.func @transform_4(%arg0: i32) -> (i32, i32) {
    %c0_i32 = arith.constant 0 : i32
    %c0_i32_0 = arith.constant 0 : i32
    %c0_i32_1 = arith.constant 0 : i32
    return %c0_i32, %c0_i32_0 : i32, i32
  }
  func.func @transform_5(%arg0: i32) -> (i32, i32) {
    %c0_i32 = arith.constant 0 : i32
    %c0_i32_0 = arith.constant 0 : i32
    %c0_i32_1 = arith.constant 0 : i32
    return %c0_i32, %c0_i32_0 : i32, i32
  }
  func.func @transform_6(%arg0: i32) -> (i32, i32) {
    %c0_i32 = arith.constant 0 : i32
    %c0_i32_0 = arith.constant 0 : i32
    %c0_i32_1 = arith.constant 0 : i32
    return %c0_i32, %c0_i32_0 : i32, i32
  }
  func.func @transform_7(%arg0: i32) -> (i32, i32) {
    %c0_i32 = arith.constant 0 : i32
    %c0_i32_0 = arith.constant 0 : i32
    %c0_i32_1 = arith.constant 0 : i32
    return %c0_i32, %c0_i32_0 : i32, i32
  }
  func.func @transform_8(%arg0: i32) -> (i32, i32) {
    %c0_i32 = arith.constant 0 : i32
    %c0_i32_0 = arith.constant 0 : i32
    %c0_i32_1 = arith.constant 0 : i32
    return %c0_i32, %c0_i32_0 : i32, i32
  }
  func.func @transform_9(%arg0: i32) -> (i32, i32) {
    %c0_i32 = arith.constant 0 : i32
    %c0_i32_0 = arith.constant 0 : i32
    %c0_i32_1 = arith.constant 0 : i32
    return %c0_i32, %c0_i32_0 : i32, i32
  }
  func.func @transform_10(%arg0: i32) -> (i32, i32) {
    %c0_i32 = arith.constant 0 : i32
    %c0_i32_0 = arith.constant 0 : i32
    %c0_i32_1 = arith.constant 0 : i32
    return %c0_i32, %c0_i32_0 : i32, i32
  }
  func.func @transform_11(%arg0: i32) -> (i32, i32) {
    %c0_i32 = arith.constant 0 : i32
    %c0_i32_0 = arith.constant 0 : i32
    %c0_i32_1 = arith.constant 0 : i32
    return %c0_i32, %c0_i32_0 : i32, i32
  }
  func.func @transform_12(%arg0: i32) -> (i32, i32) {
    %c0_i32 = arith.constant 0 : i32
    %c0_i32_0 = arith.constant 0 : i32
    %c0_i32_1 = arith.constant 0 : i32
    return %c0_i32, %c0_i32_0 : i32, i32
  }
  func.func @transform_13(%arg0: i32) -> (i32, i32) {
    %c0_i32 = arith.constant 0 : i32
    %c0_i32_0 = arith.constant 0 : i32
    %c0_i32_1 = arith.constant 0 : i32
    return %c0_i32, %c0_i32_0 : i32, i32
  }
  func.func @transform_14(%arg0: i32) -> (i32, i32) {
    %c0_i32 = arith.constant 0 : i32
    %c0_i32_0 = arith.constant 0 : i32
    %c0_i32_1 = arith.constant 0 : i32
    return %c0_i32, %c0_i32_0 : i32, i32
  }
  func.func @transform_15(%arg0: i32) -> (i32, i32) {
    %c0_i32 = arith.constant 0 : i32
    %c0_i32_0 = arith.constant 0 : i32
    %c0_i32_1 = arith.constant 0 : i32
    return %c0_i32, %c0_i32_0 : i32, i32
  }
  func.func @transform_16(%arg0: i32) -> (i32, i32) {
    %c0_i32 = arith.constant 0 : i32
    %c0_i32_0 = arith.constant 0 : i32
    %c0_i32_1 = arith.constant 0 : i32
    return %c0_i32, %c0_i32_0 : i32, i32
  }
  func.func @transform_17(%arg0: i32) -> (i32, i32) {
    %c0_i32 = arith.constant 0 : i32
    %c0_i32_0 = arith.constant 0 : i32
    %c0_i32_1 = arith.constant 0 : i32
    return %c0_i32, %c0_i32_0 : i32, i32
  }
  func.func @transform_18(%arg0: i32) -> (i32, i32) {
    %c0_i32 = arith.constant 0 : i32
    %c0_i32_0 = arith.constant 0 : i32
    %c0_i32_1 = arith.constant 0 : i32
    return %c0_i32, %c0_i32_0 : i32, i32
  }
  func.func @transform_19(%arg0: i32) -> (i32, i32) {
    %c0_i32 = arith.constant 0 : i32
    %c0_i32_0 = arith.constant 0 : i32
    %c0_i32_1 = arith.constant 0 : i32
    return %c0_i32, %c0_i32_0 : i32, i32
  }
  func.func @transform_20(%arg0: i32) -> (i32, i32) {
    %c0_i32 = arith.constant 0 : i32
    %c0_i32_0 = arith.constant 0 : i32
    %c0_i32_1 = arith.constant 0 : i32
    return %c0_i32, %c0_i32_0 : i32, i32
  }
  func.func @transform_21(%arg0: i32) -> (i32, i32) {
    %c0_i32 = arith.constant 0 : i32
    %c0_i32_0 = arith.constant 0 : i32
    %c0_i32_1 = arith.constant 0 : i32
    return %c0_i32, %c0_i32_0 : i32, i32
  }
  func.func @transform_22(%arg0: i32) -> (i32, i32) {
    %c0_i32 = arith.constant 0 : i32
    %c0_i32_0 = arith.constant 0 : i32
    %c0_i32_1 = arith.constant 0 : i32
    return %c0_i32, %c0_i32_0 : i32, i32
  }
  func.func @transform_23(%arg0: i32) -> (i32, i32) {
    %c0_i32 = arith.constant 0 : i32
    %c0_i32_0 = arith.constant 0 : i32
    return %arg0, %c0_i32 : i32, i32
  }
}

</mosaic_0001>

<bundles_post_ra>
// kernel: critic_forward.1
= control target key start
LH: loop header
LB: loop body
LE: loop exit
PB: predicated region body
PF: predicated region fallthrough
CT: control target
= control target key end

     0   :  { %s9538_s0 = inlined_call_operand.vmem [shape: f32[8,16], index: 0, kind: input, shape index: {}]   ;;  %s9539_s1 = inlined_call_operand.vmem [shape: bf16[16,256], index: 1, kind: input, shape index: {}]   ;;  %s9540_s2 = inlined_call_operand.hbm [shape: f32[1,256], index: 2, kind: input, shape index: {}]   ;;  %s9541_s3 = inlined_call_operand.vmem [shape: bf16[256,256], index: 3, kind: input, shape index: {}]   ;;  %s9542_s4 = inlined_call_operand.hbm [shape: f32[1,256], index: 4, kind: input, shape index: {}]   ;;  %s9543_s5 = inlined_call_operand.hbm [shape: bf16[256,512], index: 5, kind: input, shape index: {}]   ;;  %s9544_s6 = inlined_call_operand.hbm [shape: f32[1,512], index: 6, kind: input, shape index: {}]   ;;  %s9545_s7 = inlined_call_operand.hbm [shape: bf16[512,512], index: 7, kind: input, shape index: {}]   ;;  %s9546_s8 = inlined_call_operand.hbm [shape: f32[1,512], index: 8, kind: input, shape index: {}]   ;;  %s9547_s9 = inlined_call_operand.hbm [shape: bf16[512,256], index: 9, kind: input, shape index: {}]   ;;  %s9548_s10 = inlined_call_operand.hbm [shape: f32[1,256], index: 10, kind: input, shape index: {}]   ;;  %s9549_s11 = inlined_call_operand.vmem [shape: bf16[16,256], index: 11, kind: input, shape index: {}]   ;;  %s9550_s12 = inlined_call_operand.hbm [shape: f32[1,256], index: 12, kind: input, shape index: {}]   ;;  %s9551_s13 = inlined_call_operand.hbm [shape: bf16[256,256], index: 13, kind: input, shape index: {}]   ;;  %s9552_s14 = inlined_call_operand.hbm [shape: f32[1,256], index: 14, kind: input, shape index: {}]   ;;  %s9553_s15 = inlined_call_operand.hbm [shape: bf16[256,512], index: 15, kind: input, shape index: {}]   ;;  %s9554_s16 = inlined_call_operand.vmem [shape: f32[1,512], index: 16, kind: input, shape index: {}]   ;;  %s9555_s17 = inlined_call_operand.hbm [shape: bf16[512,512], index: 17, kind: input, shape index: {}]   ;;  %s9556_s18 = inlined_call_operand.vmem [shape: f32[1,512], index: 18, kind: input, shape index: {}]   ;;  %s9557_s19 = inlined_call_operand.hbm [shape: bf16[512,256], index: 19, kind: input, shape index: {}]   ;;  %s9558_s20 = inlined_call_operand.vmem [shape: f32[1,256], index: 20, kind: input, shape index: {}]   ;;  %s9559_s21 = inlined_call_operand.vmem [shape: bf16[512,2], index: 21, kind: input, shape index: {}]   ;;  %s9560_s22 = inlined_call_operand.vmem [shape: f32[1,2], index: 22, kind: input, shape index: {}]   ;;  %s9561_s23 = inlined_call_operand.vmem [shape: f32[8,2], index: 23, kind: output, shape index: {}]  }
   0x1   :  { %9902 = sst [smem:[#allocation128_spill]] %s9538_s0 }
   0x2   :  { %9903 = sst [smem:[#allocation129_spill]] %s9539_s1 }
   0x3   :  { %9904 = sst [smem:[#allocation130_spill]] %s9540_s2 }
   0x4   :  { %9905 = sst [smem:[#allocation131_spill]] %s9541_s3 }
   0x5   :  { %9906 = sst [smem:[#allocation132_spill]] %s9542_s4 }
   0x6   :  { %9907 = sst [smem:[#allocation133_spill]] %s9543_s5 }
   0x7   :  { %9908 = sst [smem:[#allocation134_spill]] %s9544_s6 }
   0x8   :  { %9909 = sst [smem:[#allocation135_spill]] %s9545_s7 }
   0x9   :  { %28 = vsyncpa [#allocation3], 0 }
   0xa   :  { %29 = vsyncpa [#allocation5], 0 }
   0xb   :  { %30 = vsyncpa [#allocation8], 0 }
   0xc   :  { %31 = vsyncpa [#allocation11], 0 }
   0xd   :  { %32 = vsyncpa [#allocation14], 0 }
   0xe   :  { %33 = vsyncpa [#allocation17], 0 }
   0xf   :  { %34 = vsyncpa [#allocation20], 0 }
  0x10   :  { %35 = vsyncpa [#allocation23], 0  ;;  %s7694_s4 = smov [#allocation4]   ;;  %s7695_s24 = smov [#allocation7]  }
  0x11   :  { %s58_s30 = sshll.u32 %s7694_s4, 4  ;;  %s80_s25 = sshll.u32 %s7695_s24, 4  ;;  %s59_s30 = int_to_ptr.vmem [resolvable:$true] %s58_s30  ;;  %s81_s25 = int_to_ptr.vmem [resolvable:$true] %s80_s25 }
  0x12   :  { %s7406_s5 = scalar_lea.vmem %s59_s30, 32  ;;  %p7411_p1 = scmp.lt.s32.totalorder %s59_s30, %s59_s30 }
  0x13   :  { %p7407_p0 = scmp.ne.s32.totalorder %s59_s30, %s7406_s5  ;;  %p7412_p2 = scmp.lt.s32.totalorder %s7406_s5, %s7406_s5 }
  0x15   :  { %p7413_p3 = por %p7412_p2, %p7411_p1 }
  0x17   :  { %p7414_p4 = pnand %p7413_p3, %p7407_p0 }
  0x19   :  { %7417 = shalt.err (!%p7414_p4)
}
  0x1a   :  { %s9910_s2 = sld [smem:[#allocation132_spill]]  ;;  %s7426_s6 = scalar_lea.vmem %s81_s25, 64 }
  0x1b   :  { %p7427_p5 = scmp.ne.s32.totalorder %s81_s25, %s7426_s6  ;;  %p7431_p6 = scmp.lt.s32.totalorder %s81_s25, %s81_s25 }
  0x1c   :  { %p7432_p7 = scmp.lt.s32.totalorder %s7426_s6, %s7426_s6 }
  0x1e   :  { %p7433_p8 = por %p7432_p7, %p7431_p6 }
  0x20   :  { %61 = dma.hbm_to_vmem [thread:$0]  %s9910_s2, 32, %s59_s30, [#allocation5]  }
  0x21   :  { %p7434_p9 = pnand %p7433_p8, %p7427_p5 }
  0x23   :  { %7437 = shalt.err (!%p7434_p9)
}
  0x24   :  { %s9911_s28 = sld [smem:[#allocation134_spill]]  ;;  %s7696_s29 = smov [#allocation10]  }
  0x25   :  { %s102_s3 = sshll.u32 %s7696_s29, 4  ;;  %s7697_s0 = smov [#allocation13]   ;;  %s103_s3 = int_to_ptr.vmem [resolvable:$true] %s102_s3 }
  0x26   :  { %s124_s4 = sshll.u32 %s7697_s0, 4  ;;  %s7446_s24 = scalar_lea.vmem %s103_s3, 64  ;;  %s125_s4 = int_to_ptr.vmem [resolvable:$true] %s124_s4 }
  0x27   :  { %p7447_p10 = scmp.ne.s32.totalorder %s103_s3, %s7446_s24  ;;  %p7451_p11 = scmp.lt.s32.totalorder %s103_s3, %s103_s3 }
  0x28   :  { %p7452_p12 = scmp.lt.s32.totalorder %s7446_s24, %s7446_s24 }
  0x2a   :  { %83 = dma.hbm_to_vmem [thread:$0]  %s9911_s28, 64, %s81_s25, [#allocation8]  }
  0x2b   :  { %p7453_p13 = por %p7452_p12, %p7451_p11 }
  0x2d   :  { %p7454_p0 = pnand %p7453_p13, %p7447_p10 }
  0x2f   :  { %7457 = shalt.err (!%p7454_p0)
}
  0x30   :  { %105 = dma.hbm_to_vmem [thread:$0]  %s9546_s8, 64, %s103_s3, [#allocation11]  }
  0x31   :  { %s7466_s1 = scalar_lea.vmem %s125_s4, 32  ;;  %p7471_p2 = scmp.lt.s32.totalorder %s125_s4, %s125_s4 }
  0x32   :  { %p7467_p1 = scmp.ne.s32.totalorder %s125_s4, %s7466_s1  ;;  %p7472_p3 = scmp.lt.s32.totalorder %s7466_s1, %s7466_s1 }
  0x34   :  { %p7473_p4 = por %p7472_p3, %p7471_p2 }
  0x36   :  { %p7474_p5 = pnand %p7473_p4, %p7467_p1 }
  0x38   :  { %7477 = shalt.err (!%p7474_p5)
}
  0x39   :  { %127 = dma.hbm_to_vmem [thread:$0]  %s9548_s10, 32, %s125_s4, [#allocation14]  }
  0x3a   :  { %s7698_s2 = smov [#allocation16]  }
  0x3b   :  { %s145_s6 = sshll.u32 %s7698_s2, 4  ;;  %s146_s6 = int_to_ptr.vmem [resolvable:$true] %s145_s6 }
  0x3c   :  { %s7486_s27 = scalar_lea.vmem %s146_s6, 4096  ;;  %p7491_p7 = scmp.lt.s32.totalorder %s146_s6, %s146_s6 }
  0x3d   :  { %p7487_p6 = scmp.ne.s32.totalorder %s146_s6, %s7486_s27  ;;  %p7492_p8 = scmp.lt.s32.totalorder %s7486_s27, %s7486_s27 }
  0x3f   :  { %p7493_p9 = por %p7492_p8, %p7491_p7 }
  0x41   :  { %p7494_p10 = pnand %p7493_p9, %p7487_p6 }
  0x43   :  { %7497 = shalt.err (!%p7494_p10)
}
  0x44   :  { %s7699_s8 = smov 128   ;;  %s7700_s7 = smov 8  }
  0x45   :  { %151 = dma.hbm_to_vmem [thread:$0]  %s9551_s13, 4096, %s146_s6, [#allocation17], %s7699_s8, %s7699_s8, %s7700_s7  }
  0x46   :  { %s7701_s10 = smov [#allocation19]   ;;  %s7702_s0 = smov [#allocation2]  }
  0x47   :  { %s167_s3 = sshll.u32 %s7701_s10, 4  ;;  %s46_s4 = sshll.u32 %s7702_s0, 4  ;;  %s168_s3 = int_to_ptr.vmem [resolvable:$true] %s167_s3  ;;  %s47_s4 = int_to_ptr.vmem [resolvable:$true] %s46_s4 }
  0x48   :  { %s7506_s24 = scalar_lea.vmem %s168_s3, 8192  ;;  %p7511_p12 = scmp.lt.s32.totalorder %s168_s3, %s168_s3 }
  0x49   :  { %p7507_p11 = scmp.ne.s32.totalorder %s168_s3, %s7506_s24  ;;  %p7512_p13 = scmp.lt.s32.totalorder %s7506_s24, %s7506_s24 }
  0x4b   :  { %p7513_p0 = por %p7512_p13, %p7511_p12 }
  0x4d   :  { %p7514_p1 = pnand %p7513_p0, %p7507_p11 }
  0x4f   :  { %7517 = shalt.err (!%p7514_p1)
}
  0x50   :  { %s7703_s30 = smov 256   ;;  %s7704_s5 = smov 16  }
  0x51   :  { %173 = dma.hbm_to_vmem [thread:$0]  %s9553_s15, 8192, %s168_s3, [#allocation20], %s7703_s30, %s7703_s30, %s7704_s5  }
  0x52   :  { %s7526_s13 = scalar_lea.vmem %s47_s4, 32  ;;  %p7531_p3 = scmp.lt.s32.totalorder %s47_s4, %s47_s4 }
  0x53   :  { %p7527_p2 = scmp.ne.s32.totalorder %s47_s4, %s7526_s13  ;;  %p7532_p4 = scmp.lt.s32.totalorder %s7526_s13, %s7526_s13 }
  0x55   :  { %p7533_p5 = por %p7532_p4, %p7531_p3 }
  0x57   :  { %p7534_p6 = pnand %p7533_p5, %p7527_p2 }
  0x59   :  { %7537 = shalt.err (!%p7534_p6)
}
  0x5a   :  { %s9912_s6 = sld [smem:[#allocation130_spill]]  ;;  %s7705_s27 = smov [#allocation6]  }
  0x5b   :  { %s67_s28 = sshll.u32 %s7705_s27, 4  ;;  %s7706_s29 = smov [#allocation9]   ;;  %s68_s28 = int_to_ptr.vmem [resolvable:$true] %s67_s28 }
  0x5c   :  { %s89_s10 = sshll.u32 %s7706_s29, 4  ;;  %s7546_s0 = scalar_lea.vmem %s68_s28, 8192  ;;  %s90_s10 = int_to_ptr.vmem [resolvable:$true] %s89_s10 }
  0x5d   :  { %p7547_p7 = scmp.ne.s32.totalorder %s68_s28, %s7546_s0  ;;  %p7551_p8 = scmp.lt.s32.totalorder %s68_s28, %s68_s28 }
  0x5e   :  { %p7552_p9 = scmp.lt.s32.totalorder %s7546_s0, %s7546_s0 }
  0x60   :  { %49 = dma.hbm_to_vmem [thread:$0]  %s9912_s6, 32, %s47_s4, [#allocation3]  }
  0x61   :  { %p7553_p10 = por %p7552_p9, %p7551_p8 }
  0x63   :  { %p7554_p11 = pnand %p7553_p10, %p7547_p7 }
  0x65   :  { %7557 = shalt.err (!%p7554_p11)
}
  0x66   :  { %s9913_s24 = sld [smem:[#allocation133_spill]]  ;;  %s7566_s4 = scalar_lea.vmem %s90_s10, 16384 }
  0x67   :  { %p7567_p12 = scmp.ne.s32.totalorder %s90_s10, %s7566_s4  ;;  %p7571_p13 = scmp.lt.s32.totalorder %s90_s10, %s90_s10 }
  0x68   :  { %p7572_p0 = scmp.lt.s32.totalorder %s7566_s4, %s7566_s4 }
  0x6a   :  { %p7573_p1 = por %p7572_p0, %p7571_p13 }
  0x6c   :  { %73 = dma.hbm_to_vmem [thread:$0]  %s9913_s24, 8192, %s68_s28, [#allocation5], %s7703_s30, %s7703_s30, %s7704_s5  }
  0x6d   :  { %p7574_p2 = pnand %p7573_p1, %p7567_p12 }
  0x6f   :  { %7577 = shalt.err (!%p7574_p2)
}
  0x70   :  { %s9914_s13 = sld [smem:[#allocation135_spill]]  ;;  %s7707_s26 = smov [#allocation12]  }
  0x71   :  { %s111_s2 = sshll.u32 %s7707_s26, 4  ;;  %s7708_s6 = smov [#allocation15]   ;;  %s112_s2 = int_to_ptr.vmem [resolvable:$true] %s111_s2 }
  0x72   :  { %s136_s27 = sshll.u32 %s7708_s6, 4  ;;  %s7586_s28 = scalar_lea.vmem %s112_s2, 8192  ;;  %s137_s27 = int_to_ptr.vmem [resolvable:$true] %s136_s27 }
  0x73   :  { %p7587_p3 = scmp.ne.s32.totalorder %s112_s2, %s7586_s28  ;;  %p7591_p4 = scmp.lt.s32.totalorder %s112_s2, %s112_s2 }
  0x74   :  { %p7592_p5 = scmp.lt.s32.totalorder %s7586_s28, %s7586_s28 }
  0x76   :  { %95 = dma.hbm_to_vmem [thread:$0]  %s9914_s13, 16384, %s90_s10, [#allocation8], %s7703_s30, %s7703_s30, %s7704_s5  }
  0x77   :  { %p7593_p6 = por %p7592_p5, %p7591_p4 }
  0x79   :  { %p7594_p7 = pnand %p7593_p6, %p7587_p3 }
  0x7b   :  { %7597 = shalt.err (!%p7594_p7)
}
  0x7c   :  { %117 = dma.hbm_to_vmem [thread:$0]  %s9547_s9, 8192, %s112_s2, [#allocation11], %s7699_s8, %s7699_s8, %s7700_s7  }
  0x7d   :  { %s7606_s10 = scalar_lea.vmem %s137_s27, 32  ;;  %p7611_p9 = scmp.lt.s32.totalorder %s137_s27, %s137_s27 }
  0x7e   :  { %p7607_p8 = scmp.ne.s32.totalorder %s137_s27, %s7606_s10  ;;  %p7612_p10 = scmp.lt.s32.totalorder %s7606_s10, %s7606_s10 }
  0x80   :  { %p7613_p11 = por %p7612_p10, %p7611_p9 }
  0x82   :  { %p7614_p12 = pnand %p7613_p11, %p7607_p8 }
  0x84   :  { %7617 = shalt.err (!%p7614_p12)
}
  0x85   :  { %139 = dma.hbm_to_vmem [thread:$0]  %s9550_s12, 32, %s137_s27, [#allocation14]  }
  0x86   :  { %s7709_s24 = smov [#allocation18]   ;;  %s7710_s1 = smov [#allocation21]  }
  0x87   :  { %s158_s4 = sshll.u32 %s7709_s24, 4  ;;  %s181_s25 = sshll.u32 %s7710_s1, 4  ;;  %s159_s4 = int_to_ptr.vmem [resolvable:$true] %s158_s4  ;;  %s182_s25 = int_to_ptr.vmem [resolvable:$true] %s181_s25 }
  0x88   :  { %s7626_s13 = scalar_lea.vmem %s159_s4, 32  ;;  %p7631_p0 = scmp.lt.s32.totalorder %s159_s4, %s159_s4 }
  0x89   :  { %p7627_p13 = scmp.ne.s32.totalorder %s159_s4, %s7626_s13  ;;  %p7632_p1 = scmp.lt.s32.totalorder %s7626_s13, %s7626_s13 }
  0x8b   :  { %p7633_p2 = por %p7632_p1, %p7631_p0 }
  0x8d   :  { %p7634_p3 = pnand %p7633_p2, %p7627_p13 }
  0x8f   :  { %7637 = shalt.err (!%p7634_p3)
}
  0x90   :  { %161 = dma.hbm_to_vmem [thread:$0]  %s9552_s14, 32, %s159_s4, [#allocation17]  }
  0x91   :  { %s7646_s2 = scalar_lea.vmem %s182_s25, 16384  ;;  %p7651_p5 = scmp.lt.s32.totalorder %s182_s25, %s182_s25 }
  0x92   :  { %p7647_p4 = scmp.ne.s32.totalorder %s182_s25, %s7646_s2  ;;  %p7652_p6 = scmp.lt.s32.totalorder %s7646_s2, %s7646_s2 }
  0x94   :  { %p7653_p7 = por %p7652_p6, %p7651_p5 }
  0x96   :  { %p7654_p8 = pnand %p7653_p7, %p7647_p4 }
  0x98   :  { %7657 = shalt.err (!%p7654_p8)
}
  0x99   :  { %187 = dma.hbm_to_vmem [thread:$0]  %s9555_s17, 16384, %s182_s25, [#allocation20], %s7703_s30, %s7703_s30, %s7704_s5  }
  0x9a   :  { %s7711_s27 = smov [#allocation22]  }
  0x9b   :  { %s195_s28 = sshll.u32 %s7711_s27, 4  ;;  %s196_s28 = int_to_ptr.vmem [resolvable:$true] %s195_s28 }
  0x9c   :  { %s7666_s29 = scalar_lea.vmem %s196_s28, 8192  ;;  %p7671_p10 = scmp.lt.s32.totalorder %s196_s28, %s196_s28 }
  0x9d   :  { %p7667_p9 = scmp.ne.s32.totalorder %s196_s28, %s7666_s29  ;;  %p7672_p11 = scmp.lt.s32.totalorder %s7666_s29, %s7666_s29 }
  0x9f   :  { %p7673_p12 = por %p7672_p11, %p7671_p10 }
  0xa1   :  { %p7674_p13 = pnand %p7673_p12, %p7667_p9 }
  0xa3   :  { %7677 = shalt.err (!%p7674_p13)
}
  0xa4   :  { %201 = dma.hbm_to_vmem [thread:$0]  %s9557_s19, 8192, %s196_s28, [#allocation23], %s7699_s8, %s7699_s8, %s7700_s7  }
  0xa5   :  { %7678 = dma.done.wait [#allocation3], 32  }
  0xa6   :  { %7679 = vsyncadd [#allocation3], 4294967264 }
  0xa7   :  { %7680 = dma.done.wait [#allocation5], 8224  }
  0xa8   :  { %7681 = vsyncadd [#allocation5], 4294959072 }
  0xa9   :  { %7682 = dma.done.wait [#allocation8], 16448  }
  0xaa   :  { %7683 = vsyncadd [#allocation8], 4294950848 }
  0xab   :  { %7684 = dma.done.wait [#allocation11], 8256  }
  0xac   :  { %7685 = vsyncadd [#allocation11], 4294959040 }
  0xad   :  { %7686 = dma.done.wait [#allocation14], 64  }
  0xae   :  { %7687 = vsyncadd [#allocation14], 4294967232 }
  0xaf   :  { %7688 = dma.done.wait [#allocation17], 4128  }
  0xb0   :  { %7689 = vsyncadd [#allocation17], 4294963168 }
  0xb1   :  { %7690 = dma.done.wait [#allocation20], 24576  }
  0xb2   :  { %7691 = vsyncadd [#allocation20], 4294942720 }
  0xb3   :  { %7692 = dma.done.wait [#allocation23], 8192  }
  0xb4   :  { %7693 = vsyncadd [#allocation23], 4294959104  ;;  %v9564_v0 = vmov 0   ;;  %s9915_s8 = sld [smem:[#allocation129_spill]]  ;;  %vm277_vm0 = vcmask 130048   ;;  %vm5804_vm1 = vcmask 15360  }
  0xb5   :  { %313 = vmatprep.mubr.bf16.mxu1 %v9564_v0  ;;  %s9916_s15 = sld [smem:[#allocation128_spill]]  ;;  %v6547_v37 = vld [vmem:[#allocation6 + $0xe4] ss:$16 sps:$4 sm:$0xff]   ;;  %v6551_v38 = vld [vmem:[#allocation6 + $0xec] ss:$16 sps:$4 sm:$0xff]  }
  0xb6   :  { %s9918_s4 = sld [smem:[#allocation131_spill]]  ;;  %v6552_v39 = vld [vmem:[#allocation6 + $0xe0] ss:$16 sps:$4 sm:$0xff]   ;;  %v6553_v40 = vld [vmem:[#allocation6 + $0xc4] ss:$16 sps:$4 sm:$0xff]   ;;  %981 = vmatprep.subr.bf16.mxu0 %v6547_v37 }
  0xb7   :  { %v6558_v41 = vld [vmem:[#allocation6 + $0xc0] ss:$16 sps:$4 sm:$0xff]   ;;  %982 = vmatpush1.bf16.msra.mxu0 %v6552_v39  ;;  %v6559_v42 = vld [vmem:[#allocation6 + $0xa4] ss:$16 sps:$4 sm:$0xff]   ;;  %v6597_v37 = vld [vmem:[#allocation6 + $0x1e8] ss:$16 sps:$4 sm:$0xff]  }
  0xb8   :  { %983 = vmatprep.subr.bf16.mxu0 %v6553_v40  ;;  %v6564_v43 = vld [vmem:[#allocation6 + $0xa0] ss:$16 sps:$4 sm:$0xff]   ;;  %v6565_v44 = vld [vmem:[#allocation6 + $0x84] ss:$16 sps:$4 sm:$0xff]   ;;  %v6603_v39 = vld [vmem:[#allocation6 + $0x1c8] ss:$16 sps:$4 sm:$0xff]  }
  0xb9   :  { %v6570_v45 = vld [vmem:[#allocation6 + $0x80] ss:$16 sps:$4 sm:$0xff]   ;;  %v6571_v46 = vld [vmem:[#allocation6 + $0x64] ss:$16 sps:$4 sm:$0xff]   ;;  %v6611_v40 = vld [vmem:[#allocation6 + $0x1ac] ss:$16 sps:$4 sm:$0xff]  }
  0xba   :  { %v6496_v1 = vld [vmem:[%s9915_s8 + $0x4] ss:$8 sps:$4 sm:$0xff]   ;;  %v6498_v2 = vld [vmem:[%s9915_s8] ss:$8 sps:$4 sm:$0xff]  }
  0xbb   :  { %v251_v3 = vld [vmem:[%s9916_s15] sm:$0xff]  ;;  %295 = vmatprep.subr.bf16.mxu1 %v6496_v1  ;;  %984 = vmatpush1.bf16.msra.mxu0 %v6558_v41  ;;  %v6577_v48 = vld [vmem:[#allocation6 + $0x44] ss:$16 sps:$4 sm:$0xff]   ;;  %v6609_v41 = vld [vmem:[#allocation6 + $0x1a8] ss:$16 sps:$4 sm:$0xff]  }
  0xbc   :  { %v7906_v4 = vpack.c.bf16 %v251_v3, %v251_v3  ;;  %v6501_v5 = vld [vmem:[%s9918_s4 + $0x74] ss:$8 sps:$4 sm:$0xff]   ;;  %296 = vmatpush1.bf16.msra.mxu1 %v6498_v2  ;;  %v6499_v6 = vld [vmem:[%s9918_s4 + $0x70] ss:$8 sps:$4 sm:$0xff]   ;;  %v6504_v7 = vld [vmem:[%s9918_s4 + $0x64] ss:$8 sps:$4 sm:$0xff]   ;;  %985 = vmatprep.subr.bf16.mxu0 %v6559_v42  ;;  %v257_v3 = vlaneseq }
  0xbd   :  { %530 = vmatprep.subr.bf16.mxu1 %v6501_v5  ;;  %v6502_v8 = vld [vmem:[%s9918_s4 + $0x60] ss:$8 sps:$4 sm:$0xff]   ;;  %v6507_v9 = vld [vmem:[%s9918_s4 + $0x54] ss:$8 sps:$4 sm:$0xff]   ;;  %v6505_v10 = vld [vmem:[%s9918_s4 + $0x50] ss:$8 sps:$4 sm:$0xff]  }
  0xbe   :  { %9917 = vst [vmem:[#allocation32_spill] sm:$0xff] %v7906_v4  ;;  %v6510_v11 = vld [vmem:[%s9918_s4 + $0x44] ss:$8 sps:$4 sm:$0xff]   ;;  %v6508_v12 = vld [vmem:[%s9918_s4 + $0x40] ss:$8 sps:$4 sm:$0xff]   ;;  %v8006_v5 = vshrl.u32 %v257_v3, 7 }
  0xbf   :  { %5820 = vmatmul.mubr.msk.bf16.vlgmr.msra.gmra.mxu1 %vm277_vm0, %v7906_v4  ;;  %v6513_v13 = vld [vmem:[%s9918_s4 + $0x34] ss:$8 sps:$4 sm:$0xff]   ;;  %v6511_v14 = vld [vmem:[%s9918_s4 + $0x30] ss:$8 sps:$4 sm:$0xff]   ;;  %v6516_v15 = vld [vmem:[%s9918_s4 + $0x24] ss:$8 sps:$4 sm:$0xff]   ;;  %986 = vmatpush1.bf16.msra.mxu0 %v6564_v43 }
  0xc0   :  { %531 = vmatpush1.bf16.msra.mxu1 %v6499_v6  ;;  %v6514_v16 = vld [vmem:[%s9918_s4 + $0x20] ss:$8 sps:$4 sm:$0xff]   ;;  %v6519_v17 = vld [vmem:[%s9918_s4 + $0x14] ss:$8 sps:$4 sm:$0xff]   ;;  %v6517_v18 = vld [vmem:[%s9918_s4 + $0x10] ss:$8 sps:$4 sm:$0xff]   ;;  %987 = vmatprep.subr.bf16.mxu0 %v6565_v44 }
  0xc1   :  { %532 = vmatprep.subr.bf16.mxu1 %v6504_v7  ;;  %v6522_v19 = vld [vmem:[%s9918_s4 + $0x4] ss:$8 sps:$4 sm:$0xff]   ;;  %v6520_v20 = vld [vmem:[%s9918_s4] ss:$8 sps:$4 sm:$0xff]   ;;  %v6525_v21 = vld [vmem:[%s9918_s4 + $0xf4] ss:$8 sps:$4 sm:$0xff]  }
  0xc2   :  { %v6523_v22 = vld [vmem:[%s9918_s4 + $0xf0] ss:$8 sps:$4 sm:$0xff]   ;;  %v6528_v23 = vld [vmem:[%s9918_s4 + $0xe4] ss:$8 sps:$4 sm:$0xff]   ;;  %v6526_v24 = vld [vmem:[%s9918_s4 + $0xe0] ss:$8 sps:$4 sm:$0xff]  }
  0xc3   :  { %v6531_v25 = vld [vmem:[%s9918_s4 + $0xd4] ss:$8 sps:$4 sm:$0xff]   ;;  %v6529_v26 = vld [vmem:[%s9918_s4 + $0xd0] ss:$8 sps:$4 sm:$0xff]   ;;  %v6534_v27 = vld [vmem:[%s9918_s4 + $0xc4] ss:$8 sps:$4 sm:$0xff]   ;;  %988 = vmatpush1.bf16.msra.mxu0 %v6570_v45 }
  0xc4   :  { %533 = vmatpush1.bf16.msra.mxu1 %v6502_v8  ;;  %v6532_v28 = vld [vmem:[%s9918_s4 + $0xc0] ss:$8 sps:$4 sm:$0xff]   ;;  %v6537_v29 = vld [vmem:[%s9918_s4 + $0xb4] ss:$8 sps:$4 sm:$0xff]   ;;  %v6535_v30 = vld [vmem:[%s9918_s4 + $0xb0] ss:$8 sps:$4 sm:$0xff]   ;;  %989 = vmatprep.subr.bf16.mxu0 %v6571_v46 }
  0xc5   :  { %534 = vmatprep.subr.bf16.mxu1 %v6507_v9  ;;  %v6540_v31 = vld [vmem:[%s9918_s4 + $0xa4] ss:$8 sps:$4 sm:$0xff]   ;;  %v6538_v32 = vld [vmem:[%s9918_s4 + $0xa0] ss:$8 sps:$4 sm:$0xff]   ;;  %v6543_v33 = vld [vmem:[%s9918_s4 + $0x94] ss:$8 sps:$4 sm:$0xff]  }
  0xc6   :  { %v6541_v34 = vld [vmem:[%s9918_s4 + $0x90] ss:$8 sps:$4 sm:$0xff]   ;;  %v6546_v35 = vld [vmem:[%s9918_s4 + $0x84] ss:$8 sps:$4 sm:$0xff]   ;;  %v6544_v36 = vld [vmem:[%s9918_s4 + $0x80] ss:$8 sps:$4 sm:$0xff]  }
  0xc7   :  { %v6576_v47 = vld [vmem:[#allocation6 + $0x60] ss:$16 sps:$4 sm:$0xff]   ;;  %v6583_v50 = vld [vmem:[#allocation6 + $0x24] ss:$16 sps:$4 sm:$0xff]   ;;  %v255_v6 = vld [vmem:[#allocation2] sm:$0x3] }
  0xc8   :  { %535 = vmatpush1.bf16.msra.mxu1 %v6505_v10  ;;  %v6582_v49 = vld [vmem:[#allocation6 + $0x40] ss:$16 sps:$4 sm:$0xff]   ;;  %990 = vmatpush1.bf16.msra.mxu0 %v6576_v47  ;;  %v6589_v52 = vld [vmem:[#allocation6 + $0x4] ss:$16 sps:$4 sm:$0xff]   ;;  %v8009_v7 = vsub.s32 0, %v8006_v5  ;;  %v8012_v8 = vsub.s32 1, %v8006_v5 }
  0xc9   :  { %536 = vmatprep.subr.bf16.mxu1 %v6510_v11  ;;  %991 = vmatprep.subr.bf16.mxu0 %v6577_v48  ;;  %v6588_v51 = vld [vmem:[#allocation6 + $0x20] ss:$16 sps:$4 sm:$0xff]   ;;  %v6595_v54 = vld [vmem:[#allocation6 + $0x1e4] ss:$16 sps:$4 sm:$0xff]   ;;  %v6617_v42 = vld [vmem:[#allocation6 + $0x18c] ss:$16 sps:$4 sm:$0xff]  }
  0xca   :  { %v6594_v53 = vld [vmem:[#allocation6] ss:$16 sps:$4 sm:$0xff]   ;;  %v6601_v56 = vld [vmem:[#allocation6 + $0x1c4] ss:$16 sps:$4 sm:$0xff]   ;;  %9919 = vst [vmem:[#allocation33_spill] sm:$0xff] %v8009_v7  ;;  %9920 = vst [vmem:[#allocation34_spill] sm:$0xff] %v8012_v8  ;;  %v260_v9 = vrot.slane %v255_v6, %v8009_v7  ;;  %v264_v10 = vrot.slane %v255_v6, %v8012_v8 }
  0xcb   :  { %v6600_v55 = vld [vmem:[#allocation6 + $0x1e0] ss:$16 sps:$4 sm:$0xff]   ;;  %v6607_v58 = vld [vmem:[#allocation6 + $0x1a4] ss:$16 sps:$4 sm:$0xff]   ;;  %v6615_v43 = vld [vmem:[#allocation6 + $0x188] ss:$16 sps:$4 sm:$0xff]  }
  0xcc   :  { %537 = vmatpush1.bf16.msra.mxu1 %v6508_v12  ;;  %992 = vmatpush1.bf16.msra.mxu0 %v6582_v49  ;;  %v6606_v57 = vld [vmem:[#allocation6 + $0x1c0] ss:$16 sps:$4 sm:$0xff]   ;;  %v6613_v60 = vld [vmem:[#allocation6 + $0x184] ss:$16 sps:$4 sm:$0xff]   ;;  %v6623_v44 = vld [vmem:[#allocation6 + $0x16c] ss:$16 sps:$4 sm:$0xff]  }
  0xcd   :  { %538 = vmatprep.subr.bf16.mxu1 %v6513_v13  ;;  %993 = vmatprep.subr.bf16.mxu0 %v6583_v50  ;;  %v6612_v59 = vld [vmem:[#allocation6 + $0x1a0] ss:$16 sps:$4 sm:$0xff]   ;;  %v6619_v62 = vld [vmem:[#allocation6 + $0x164] ss:$16 sps:$4 sm:$0xff]   ;;  %v6621_v45 = vld [vmem:[#allocation6 + $0x168] ss:$16 sps:$4 sm:$0xff]  }
  0xce   :  { %v6618_v61 = vld [vmem:[#allocation6 + $0x180] ss:$16 sps:$4 sm:$0xff]   ;;  %v6625_v1 = vld [vmem:[#allocation6 + $0x144] ss:$16 sps:$4 sm:$0xff]   ;;  %v6629_v46 = vld [vmem:[#allocation6 + $0x14c] ss:$16 sps:$4 sm:$0xff]  }
  0xcf   :  { %v6624_v63 = vld [vmem:[#allocation6 + $0x160] ss:$16 sps:$4 sm:$0xff]   ;;  %v6627_v47 = vld [vmem:[#allocation6 + $0x148] ss:$16 sps:$4 sm:$0xff]   ;;  %v6631_v48 = vld [vmem:[#allocation6 + $0x124] ss:$16 sps:$4 sm:$0xff]  }
  0xd0   :  { %539 = vmatpush1.bf16.msra.mxu1 %v6511_v14  ;;  %994 = vmatpush1.bf16.msra.mxu0 %v6588_v51  ;;  %v6630_v2 = vld [vmem:[#allocation6 + $0x140] ss:$16 sps:$4 sm:$0xff]   ;;  %v6635_v49 = vld [vmem:[#allocation6 + $0x12c] ss:$16 sps:$4 sm:$0xff]   ;;  %v6633_v50 = vld [vmem:[#allocation6 + $0x128] ss:$16 sps:$4 sm:$0xff]  }
  0xd1   :  { %540 = vmatprep.subr.bf16.mxu1 %v6516_v15  ;;  %995 = vmatprep.subr.bf16.mxu0 %v6589_v52  ;;  %v6636_v51 = vld [vmem:[#allocation6 + $0x120] ss:$16 sps:$4 sm:$0xff]   ;;  %v6637_v52 = vld [vmem:[#allocation6 + $0x104] ss:$16 sps:$4 sm:$0xff]   ;;  %v8198_v4 = vld [vmem:[#allocation9 + $0x104] ss:$16 sps:$4 sm:$0xff]  }
  0xd2   :  { %v8192_v0 = vld [vmem:[#allocation9 + $0x320] ss:$16 sps:$4 sm:$0xff]   ;;  %9961 = vst [vmem:[#allocation75_spill] sm:$0xff] %v8198_v4 }
  0xd3   :  { %9960 = vst [vmem:[#allocation74_spill] sm:$0xff] %v8192_v0 }
  0xd4   :  { %541 = vmatpush1.bf16.msra.mxu1 %v6514_v16  ;;  %996 = vmatpush1.bf16.msra.mxu0 %v6594_v53  ;;  %v6641_v53 = vld [vmem:[#allocation6 + $0x10c] ss:$16 sps:$4 sm:$0xff]  }
  0xd5   :  { %542 = vmatprep.subr.bf16.mxu1 %v6519_v17  ;;  %997 = vmatprep.subr.bf16.mxu0 %v6595_v54  ;;  %v6639_v54 = vld [vmem:[#allocation6 + $0x108] ss:$16 sps:$4 sm:$0xff]  }
  0xd8   :  { %543 = vmatpush1.bf16.msra.mxu1 %v6517_v18  ;;  %998 = vmatpush2.bf16.msra.mxu0 %v6600_v55  ;;  %v6549_v18 = vld [vmem:[#allocation6 + $0xe8] ss:$16 sps:$4 sm:$0xff]   ;;  %v6642_v55 = vld [vmem:[#allocation6 + $0x100] ss:$16 sps:$4 sm:$0xff]  }
  0xd9   :  { %544 = vmatprep.subr.bf16.mxu1 %v6522_v19  ;;  %999 = vmatprep.subr.bf16.mxu0 %v6601_v56  ;;  %v8016_v56 = vld [vmem:[#allocation9 + $0xe4] ss:$16 sps:$4 sm:$0xff]  }
  0xdc   :  { %545 = vmatpush1.bf16.msra.mxu1 %v6520_v20  ;;  %1000 = vmatpush2.bf16.msra.mxu0 %v6606_v57  ;;  %v6557_v20 = vld [vmem:[#allocation6 + $0xcc] ss:$16 sps:$4 sm:$0xff]   ;;  %v8018_v57 = vld [vmem:[#allocation9 + $0x2e4] ss:$16 sps:$4 sm:$0xff]  }
  0xdd   :  { %546 = vmatprep.subr.bf16.mxu1 %v6525_v21  ;;  %1001 = vmatprep.subr.bf16.mxu0 %v6607_v58  ;;  %9921 = vst [vmem:[#allocation35_spill] sm:$0xff] %v8018_v57  ;;  %v358_v58 = vld [vmem:[#allocation4] sm:$0x3] }
  0xe0   :  { %547 = vmatpush2.bf16.msra.mxu1 %v6523_v22  ;;  %1002 = vmatpush2.bf16.msra.mxu0 %v6612_v59  ;;  %v363_v59 = vrot.slane %v358_v58, %v8009_v7 }
  0xe1   :  { %548 = vmatprep.subr.bf16.mxu1 %v6528_v23  ;;  %1003 = vmatprep.subr.bf16.mxu0 %v6613_v60  ;;  %v6555_v23 = vld [vmem:[#allocation6 + $0xc8] ss:$16 sps:$4 sm:$0xff]   ;;  %v367_v60 = vrot.slane %v358_v58, %v8012_v8  ;;  %v8154_v58 = vld [vmem:[#allocation9 + $0x180] ss:$16 sps:$4 sm:$0xff]  }
  0xe2   :  { %9947 = vst [vmem:[#allocation61_spill] sm:$0xff] %v8154_v58 }
  0xe4   :  { %549 = vmatpush2.bf16.msra.mxu1 %v6526_v24  ;;  %1004 = vmatpush2.bf16.msra.mxu0 %v6618_v61  ;;  %v6563_v24 = vld [vmem:[#allocation6 + $0xac] ss:$16 sps:$4 sm:$0xff]  }
  0xe5   :  { %550 = vmatprep.subr.bf16.mxu1 %v6531_v25  ;;  %1005 = vmatprep.subr.bf16.mxu0 %v6619_v62  ;;  %v6561_v25 = vld [vmem:[#allocation6 + $0xa8] ss:$16 sps:$4 sm:$0xff]  }
  0xe8   :  { %551 = vmatpush2.bf16.msra.mxu1 %v6529_v26  ;;  %1006 = vmatpush2.bf16.msra.mxu0 %v6624_v63  ;;  %v6569_v26 = vld [vmem:[#allocation6 + $0x8c] ss:$16 sps:$4 sm:$0xff]  }
  0xe9   :  { %552 = vmatprep.subr.bf16.mxu1 %v6534_v27  ;;  %1007 = vmatprep.subr.bf16.mxu0 %v6625_v1  ;;  %v6567_v27 = vld [vmem:[#allocation6 + $0x88] ss:$16 sps:$4 sm:$0xff]  }
  0xec   :  { %553 = vmatpush2.bf16.msra.mxu1 %v6532_v28  ;;  %1008 = vmatpush2.bf16.msra.mxu0 %v6630_v2  ;;  %v6575_v28 = vld [vmem:[#allocation6 + $0x6c] ss:$16 sps:$4 sm:$0xff]  }
  0xed   :  { %554 = vmatprep.subr.bf16.mxu1 %v6537_v29  ;;  %v6573_v29 = vld [vmem:[#allocation6 + $0x68] ss:$16 sps:$4 sm:$0xff]   ;;  %1009 = vmatprep.subr.bf16.mxu0 %v6631_v48  ;;  %v8130_v48 = vld [vmem:[#allocation9 + $0x1c0] ss:$16 sps:$4 sm:$0xff]  }
  0xf0   :  { %555 = vmatpush2.bf16.msra.mxu1 %v6535_v30  ;;  %v6581_v30 = vld [vmem:[#allocation6 + $0x4c] ss:$16 sps:$4 sm:$0xff]   ;;  %1010 = vmatpush2.bf16.msra.mxu0 %v6636_v51  ;;  %v8138_v51 = vld [vmem:[#allocation9 + $0x3a4] ss:$16 sps:$4 sm:$0xff]  }
  0xf1   :  { %556 = vmatprep.subr.bf16.mxu1 %v6540_v31  ;;  %v6579_v31 = vld [vmem:[#allocation6 + $0x48] ss:$16 sps:$4 sm:$0xff]   ;;  %1011 = vmatprep.subr.bf16.mxu0 %v6637_v52  ;;  %9942 = vst [vmem:[#allocation56_spill] sm:$0xff] %v8138_v51  ;;  %v8142_v52 = vld [vmem:[#allocation9 + $0x1a0] ss:$16 sps:$4 sm:$0xff]  }
  0xf2   :  { %9943 = vst [vmem:[#allocation57_spill] sm:$0xff] %v8142_v52 }
  0xf4   :  { %557 = vmatpush2.bf16.msra.mxu1 %v6538_v32  ;;  %v6587_v32 = vld [vmem:[#allocation6 + $0x2c] ss:$16 sps:$4 sm:$0xff]   ;;  %1012 = vmatpush2.bf16.msra.mxu0 %v6642_v55  ;;  %v8150_v55 = vld [vmem:[#allocation9 + $0x384] ss:$16 sps:$4 sm:$0xff]  }
  0xf5   :  { %558 = vmatprep.subr.bf16.mxu1 %v6543_v33  ;;  %v6585_v33 = vld [vmem:[#allocation6 + $0x28] ss:$16 sps:$4 sm:$0xff]   ;;  %1861 = vmatprep.subr.bf16.mxu0 %v8016_v56  ;;  %9946 = vst [vmem:[#allocation60_spill] sm:$0xff] %v8150_v55 }
  0xf8   :  { %559 = vmatpush2.bf16.msra.mxu1 %v6541_v34  ;;  %v6593_v34 = vld [vmem:[#allocation6 + $0xc] ss:$16 sps:$4 sm:$0xff]  }
  0xf9   :  { %560 = vmatprep.subr.bf16.mxu1 %v6546_v35  ;;  %v6591_v35 = vld [vmem:[#allocation6 + $0x8] ss:$16 sps:$4 sm:$0xff]  }
  0xfc   :  { %561 = vmatpush2.bf16.msra.mxu1 %v6544_v36  ;;  %v6599_v36 = vld [vmem:[#allocation6 + $0x1ec] ss:$16 sps:$4 sm:$0xff]  }
  0xfd   :  { %1022 = vmatprep.subr.bf16.mxu1 %v6551_v38  ;;  %v6605_v38 = vld [vmem:[#allocation6 + $0x1cc] ss:$16 sps:$4 sm:$0xff]  }
 0x17f   :  { %v315_v11 = vpop.f32.mrf.mxu1 }
 0x180   :  { %v316_v12 = vadd.f32 %v315_v11, %v260_v9  ;;  %v8024_v11 = vld [vmem:[#allocation9 + $0xe0] ss:$16 sps:$4 sm:$0xff]  }
 0x181   :  { %v317_v13 = vpop.f32.mrf.mxu1 }
 0x182   :  { %v318_v14 = vadd.f32 %v317_v13, %v264_v10  ;;  %v322_v15 = vmax.f32 %v316_v12, 0.0  ;;  %v8026_v12 = vld [vmem:[#allocation9 + $0x2e0] ss:$16 sps:$4 sm:$0xff]  }
 0x183   :  { %v319_v16 = vpop.f32.mrf.mxu1  ;;  %9922 = vst [vmem:[#allocation36_spill] sm:$0xff] %v8026_v12 }
 0x184   :  { %v323_v17 = vmax.f32 %v318_v14, 0.0  ;;  %v324_v22 = vpack.c.bf16 %v322_v15, %v322_v15  ;;  %v8028_v14 = vld [vmem:[#allocation9 + $0xc4] ss:$16 sps:$4 sm:$0xff]   ;;  %v8034_v16 = vld [vmem:[#allocation9 + $0xc0] ss:$16 sps:$4 sm:$0xff]  }
 0x185   :  { %v320_v19 = vpop.f32.mrf.mxu1  ;;  %v8030_v15 = vld [vmem:[#allocation9 + $0x2c4] ss:$16 sps:$4 sm:$0xff]  }
 0x186   :  { %v325_v21 = vpack.c.bf16 %v323_v17, %v323_v17  ;;  %9923 = vst [vmem:[#allocation37_spill] sm:$0xff] %v8030_v15  ;;  %v8036_v17 = vld [vmem:[#allocation9 + $0x2c0] ss:$16 sps:$4 sm:$0xff]   ;;  %v8042_v19 = vld [vmem:[#allocation9 + $0x2a4] ss:$16 sps:$4 sm:$0xff]  }
 0x187   :  { %9924 = vst [vmem:[#allocation38_spill] sm:$0xff] %v8036_v17  ;;  %9925 = vst [vmem:[#allocation39_spill] sm:$0xff] %v8042_v19 }
 0x188   :  { %562 = vmatprep.mubr.bf16.mxu1 %v325_v21  ;;  %v8048_v21 = vld [vmem:[#allocation9 + $0x2a0] ss:$16 sps:$4 sm:$0xff]  }
 0x189   :  { %563 = vmatmul.mubr.bf16.vlgmr.msra.gmra.mxu1 %v324_v22  ;;  %9926 = vst [vmem:[#allocation40_spill] sm:$0xff] %v8048_v21  ;;  %v8052_v22 = vld [vmem:[#allocation9 + $0x84] ss:$16 sps:$4 sm:$0xff]  }
 0x18a   :  { %1023 = vmatpush1.bf16.msra.mxu1 %v6549_v18  ;;  %v8040_v18 = vld [vmem:[#allocation9 + $0xa4] ss:$16 sps:$4 sm:$0xff]  }
 0x18b   :  { %1024 = vmatprep.subr.bf16.mxu1 %v6557_v20  ;;  %v8046_v20 = vld [vmem:[#allocation9 + $0xa0] ss:$16 sps:$4 sm:$0xff]  }
 0x18e   :  { %1025 = vmatpush1.bf16.msra.mxu1 %v6555_v23  ;;  %v8054_v23 = vld [vmem:[#allocation9 + $0x284] ss:$16 sps:$4 sm:$0xff]  }
 0x18f   :  { %1026 = vmatprep.subr.bf16.mxu1 %v6563_v24  ;;  %9927 = vst [vmem:[#allocation41_spill] sm:$0xff] %v8054_v23  ;;  %v8058_v24 = vld [vmem:[#allocation9 + $0x80] ss:$16 sps:$4 sm:$0xff]  }
 0x192   :  { %1027 = vmatpush1.bf16.msra.mxu1 %v6561_v25  ;;  %v8060_v25 = vld [vmem:[#allocation9 + $0x280] ss:$16 sps:$4 sm:$0xff]  }
 0x193   :  { %1028 = vmatprep.subr.bf16.mxu1 %v6569_v26  ;;  %9928 = vst [vmem:[#allocation42_spill] sm:$0xff] %v8060_v25  ;;  %v8064_v26 = vld [vmem:[#allocation9 + $0x64] ss:$16 sps:$4 sm:$0xff]  }
 0x196   :  { %1029 = vmatpush1.bf16.msra.mxu1 %v6567_v27  ;;  %v8066_v27 = vld [vmem:[#allocation9 + $0x264] ss:$16 sps:$4 sm:$0xff]  }
 0x197   :  { %1030 = vmatprep.subr.bf16.mxu1 %v6575_v28  ;;  %9929 = vst [vmem:[#allocation43_spill] sm:$0xff] %v8066_v27  ;;  %v8070_v28 = vld [vmem:[#allocation9 + $0x60] ss:$16 sps:$4 sm:$0xff]  }
 0x19a   :  { %1031 = vmatpush1.bf16.msra.mxu1 %v6573_v29  ;;  %v8072_v29 = vld [vmem:[#allocation9 + $0x260] ss:$16 sps:$4 sm:$0xff]  }
 0x19b   :  { %1032 = vmatprep.subr.bf16.mxu1 %v6581_v30  ;;  %9930 = vst [vmem:[#allocation44_spill] sm:$0xff] %v8072_v29  ;;  %v8076_v30 = vld [vmem:[#allocation9 + $0x44] ss:$16 sps:$4 sm:$0xff]  }
 0x19e   :  { %1033 = vmatpush1.bf16.msra.mxu1 %v6579_v31  ;;  %v8078_v31 = vld [vmem:[#allocation9 + $0x244] ss:$16 sps:$4 sm:$0xff]  }
 0x19f   :  { %1034 = vmatprep.subr.bf16.mxu1 %v6587_v32  ;;  %9931 = vst [vmem:[#allocation45_spill] sm:$0xff] %v8078_v31  ;;  %v8082_v32 = vld [vmem:[#allocation9 + $0x40] ss:$16 sps:$4 sm:$0xff]  }
 0x1a2   :  { %1035 = vmatpush1.bf16.msra.mxu1 %v6585_v33  ;;  %v8084_v33 = vld [vmem:[#allocation9 + $0x240] ss:$16 sps:$4 sm:$0xff]  }
 0x1a3   :  { %1036 = vmatprep.subr.bf16.mxu1 %v6593_v34  ;;  %9932 = vst [vmem:[#allocation46_spill] sm:$0xff] %v8084_v33  ;;  %v8088_v34 = vld [vmem:[#allocation9 + $0x24] ss:$16 sps:$4 sm:$0xff]  }
 0x1a6   :  { %1037 = vmatpush1.bf16.msra.mxu1 %v6591_v35  ;;  %v8090_v35 = vld [vmem:[#allocation9 + $0x224] ss:$16 sps:$4 sm:$0xff]  }
 0x1a7   :  { %1038 = vmatprep.subr.bf16.mxu1 %v6599_v36  ;;  %9933 = vst [vmem:[#allocation47_spill] sm:$0xff] %v8090_v35  ;;  %v8094_v36 = vld [vmem:[#allocation9 + $0x20] ss:$16 sps:$4 sm:$0xff]  }
 0x1aa   :  { %1039 = vmatpush2.bf16.msra.mxu1 %v6597_v37  ;;  %v8096_v37 = vld [vmem:[#allocation9 + $0x220] ss:$16 sps:$4 sm:$0xff]  }
 0x1ab   :  { %1040 = vmatprep.subr.bf16.mxu1 %v6605_v38  ;;  %9934 = vst [vmem:[#allocation48_spill] sm:$0xff] %v8096_v37  ;;  %v8100_v38 = vld [vmem:[#allocation9 + $0x4] ss:$16 sps:$4 sm:$0xff]  }
 0x1ae   :  { %1041 = vmatpush2.bf16.msra.mxu1 %v6603_v39  ;;  %v8102_v39 = vld [vmem:[#allocation9 + $0x204] ss:$16 sps:$4 sm:$0xff]  }
 0x1af   :  { %1042 = vmatprep.subr.bf16.mxu1 %v6611_v40  ;;  %9935 = vst [vmem:[#allocation49_spill] sm:$0xff] %v8102_v39  ;;  %v8106_v40 = vld [vmem:[#allocation9] ss:$16 sps:$4 sm:$0xff]  }
 0x1b2   :  { %1043 = vmatpush2.bf16.msra.mxu1 %v6609_v41  ;;  %v8108_v41 = vld [vmem:[#allocation9 + $0x200] ss:$16 sps:$4 sm:$0xff]  }
 0x1b3   :  { %1044 = vmatprep.subr.bf16.mxu1 %v6617_v42  ;;  %9936 = vst [vmem:[#allocation50_spill] sm:$0xff] %v8108_v41  ;;  %v8112_v42 = vld [vmem:[#allocation9 + $0x1e4] ss:$16 sps:$4 sm:$0xff]  }
 0x1b6   :  { %1045 = vmatpush2.bf16.msra.mxu1 %v6615_v43  ;;  %v8114_v43 = vld [vmem:[#allocation9 + $0x3e4] ss:$16 sps:$4 sm:$0xff]  }
 0x1b7   :  { %1046 = vmatprep.subr.bf16.mxu1 %v6623_v44  ;;  %9937 = vst [vmem:[#allocation51_spill] sm:$0xff] %v8114_v43  ;;  %v8118_v44 = vld [vmem:[#allocation9 + $0x1e0] ss:$16 sps:$4 sm:$0xff]  }
 0x1ba   :  { %1047 = vmatpush2.bf16.msra.mxu1 %v6621_v45  ;;  %v8120_v45 = vld [vmem:[#allocation9 + $0x3e0] ss:$16 sps:$4 sm:$0xff]  }
 0x1bb   :  { %1048 = vmatprep.subr.bf16.mxu1 %v6629_v46  ;;  %9938 = vst [vmem:[#allocation52_spill] sm:$0xff] %v8120_v45  ;;  %v8124_v46 = vld [vmem:[#allocation9 + $0x1c4] ss:$16 sps:$4 sm:$0xff]  }
 0x1be   :  { %1049 = vmatpush2.bf16.msra.mxu1 %v6627_v47  ;;  %v8126_v47 = vld [vmem:[#allocation9 + $0x3c4] ss:$16 sps:$4 sm:$0xff]  }
 0x1bf   :  { %1050 = vmatprep.subr.bf16.mxu1 %v6635_v49  ;;  %9939 = vst [vmem:[#allocation53_spill] sm:$0xff] %v8126_v47  ;;  %v8132_v49 = vld [vmem:[#allocation9 + $0x3c0] ss:$16 sps:$4 sm:$0xff]  }
 0x1c0   :  { %9940 = vst [vmem:[#allocation54_spill] sm:$0xff] %v8132_v49 }
 0x1c2   :  { %1051 = vmatpush2.bf16.msra.mxu1 %v6633_v50  ;;  %v8136_v50 = vld [vmem:[#allocation9 + $0x1a4] ss:$16 sps:$4 sm:$0xff]  }
 0x1c3   :  { %1052 = vmatprep.subr.bf16.mxu1 %v6641_v53  ;;  %9941 = vst [vmem:[#allocation55_spill] sm:$0xff] %v8136_v50  ;;  %v8144_v53 = vld [vmem:[#allocation9 + $0x3a0] ss:$16 sps:$4 sm:$0xff]  }
 0x1c4   :  { %9944 = vst [vmem:[#allocation58_spill] sm:$0xff] %v8144_v53 }
 0x1c6   :  { %1053 = vmatpush2.bf16.msra.mxu1 %v6639_v54  ;;  %v8148_v54 = vld [vmem:[#allocation9 + $0x184] ss:$16 sps:$4 sm:$0xff]  }
 0x1c7   :  { %1902 = vmatprep.subr.bf16.mxu1 %v8018_v57  ;;  %9945 = vst [vmem:[#allocation59_spill] sm:$0xff] %v8148_v54 }
 0x249   :  { %v564_v61 = vpop.f32.mrf.mxu1 }
 0x24a   :  { %v565_v62 = vadd.f32 %v564_v61, %v363_v59  ;;  %v8156_v59 = vld [vmem:[#allocation9 + $0x380] ss:$16 sps:$4 sm:$0xff]   ;;  %v8162_v61 = vld [vmem:[#allocation9 + $0x364] ss:$16 sps:$4 sm:$0xff]  }
 0x24b   :  { %v566_v63 = vpop.f32.mrf.mxu1  ;;  %9948 = vst [vmem:[#allocation62_spill] sm:$0xff] %v8156_v59  ;;  %9950 = vst [vmem:[#allocation64_spill] sm:$0xff] %v8162_v61 }
 0x24c   :  { %v567_v1 = vadd.f32 %v566_v63, %v367_v60  ;;  %v571_v2 = vmax.f32 %v565_v62, 0.0  ;;  %v8160_v60 = vld [vmem:[#allocation9 + $0x164] ss:$16 sps:$4 sm:$0xff]   ;;  %v8166_v62 = vld [vmem:[#allocation9 + $0x160] ss:$16 sps:$4 sm:$0xff]  }
 0x24d   :  { %v568_v3 = vpop.f32.mrf.mxu1  ;;  %9949 = vst [vmem:[#allocation63_spill] sm:$0xff] %v8160_v60  ;;  %9951 = vst [vmem:[#allocation65_spill] sm:$0xff] %v8166_v62  ;;  %v8168_v63 = vld [vmem:[#allocation9 + $0x360] ss:$16 sps:$4 sm:$0xff]  }
 0x24e   :  { %v572_v6 = vmax.f32 %v567_v1, 0.0  ;;  %v573_v13 = vpack.c.bf16 %v571_v2, %v571_v2  ;;  %9952 = vst [vmem:[#allocation66_spill] sm:$0xff] %v8168_v63  ;;  %v8172_v1 = vld [vmem:[#allocation9 + $0x144] ss:$16 sps:$4 sm:$0xff]   ;;  %v8178_v3 = vld [vmem:[#allocation9 + $0x140] ss:$16 sps:$4 sm:$0xff]  }
 0x24f   :  { %v569_v9 = vpop.f32.mrf.mxu1  ;;  %9953 = vst [vmem:[#allocation67_spill] sm:$0xff] %v8172_v1  ;;  %v8174_v2 = vld [vmem:[#allocation9 + $0x344] ss:$16 sps:$4 sm:$0xff]   ;;  %9955 = vst [vmem:[#allocation69_spill] sm:$0xff] %v8178_v3 }
 0x250   :  { %v574_v10 = vpack.c.bf16 %v572_v6, %v572_v6  ;;  %9954 = vst [vmem:[#allocation68_spill] sm:$0xff] %v8174_v2  ;;  %v8180_v6 = vld [vmem:[#allocation9 + $0x340] ss:$16 sps:$4 sm:$0xff]   ;;  %v8186_v9 = vld [vmem:[#allocation9 + $0x124] ss:$16 sps:$4 sm:$0xff]  }
 0x251   :  { %9956 = vst [vmem:[#allocation70_spill] sm:$0xff] %v8180_v6  ;;  %9957 = vst [vmem:[#allocation71_spill] sm:$0xff] %v8186_v9 }
 0x252   :  { %1013 = vmatprep.mubr.bf16.mxu0 %v574_v10  ;;  %1054 = vmatprep.mubr.bf16.mxu1 %v574_v10  ;;  %v8188_v10 = vld [vmem:[#allocation9 + $0x324] ss:$16 sps:$4 sm:$0xff]  }
 0x253   :  { %1014 = vmatmul.mubr.bf16.vlgmr.msra.gmra.mxu0 %v573_v13  ;;  %1055 = vmatmul.mubr.bf16.vlgmr.msra.gmra.mxu1 %v573_v13  ;;  %9958 = vst [vmem:[#allocation72_spill] sm:$0xff] %v8188_v10  ;;  %v8190_v13 = vld [vmem:[#allocation9 + $0x120] ss:$16 sps:$4 sm:$0xff]  }
 0x254   :  { %1862 = vmatpush1.bf16.msra.mxu0 %v8024_v11  ;;  %1903 = vmatpush1.bf16.msra.mxu1 %v8026_v12  ;;  %9959 = vst [vmem:[#allocation73_spill] sm:$0xff] %v8190_v13 }
 0x255   :  { %1863 = vmatprep.subr.bf16.mxu0 %v8028_v14  ;;  %1904 = vmatprep.subr.bf16.mxu1 %v8030_v15 }
 0x258   :  { %1864 = vmatpush1.bf16.msra.mxu0 %v8034_v16  ;;  %1905 = vmatpush1.bf16.msra.mxu1 %v8036_v17 }
 0x259   :  { %1865 = vmatprep.subr.bf16.mxu0 %v8040_v18  ;;  %1906 = vmatprep.subr.bf16.mxu1 %v8042_v19 }
 0x25c   :  { %1866 = vmatpush1.bf16.msra.mxu0 %v8046_v20  ;;  %1907 = vmatpush1.bf16.msra.mxu1 %v8048_v21 }
 0x25d   :  { %1867 = vmatprep.subr.bf16.mxu0 %v8052_v22  ;;  %1908 = vmatprep.subr.bf16.mxu1 %v8054_v23 }
 0x260   :  { %1868 = vmatpush1.bf16.msra.mxu0 %v8058_v24  ;;  %1909 = vmatpush1.bf16.msra.mxu1 %v8060_v25 }
 0x261   :  { %1869 = vmatprep.subr.bf16.mxu0 %v8064_v26  ;;  %1910 = vmatprep.subr.bf16.mxu1 %v8066_v27 }
 0x264   :  { %1870 = vmatpush1.bf16.msra.mxu0 %v8070_v28  ;;  %1911 = vmatpush1.bf16.msra.mxu1 %v8072_v29 }
 0x265   :  { %1871 = vmatprep.subr.bf16.mxu0 %v8076_v30  ;;  %1912 = vmatprep.subr.bf16.mxu1 %v8078_v31 }
 0x268   :  { %1872 = vmatpush1.bf16.msra.mxu0 %v8082_v32  ;;  %1913 = vmatpush1.bf16.msra.mxu1 %v8084_v33 }
 0x269   :  { %1873 = vmatprep.subr.bf16.mxu0 %v8088_v34  ;;  %1914 = vmatprep.subr.bf16.mxu1 %v8090_v35 }
 0x26c   :  { %1874 = vmatpush1.bf16.msra.mxu0 %v8094_v36  ;;  %1915 = vmatpush1.bf16.msra.mxu1 %v8096_v37 }
 0x26d   :  { %1875 = vmatprep.subr.bf16.mxu0 %v8100_v38  ;;  %1916 = vmatprep.subr.bf16.mxu1 %v8102_v39 }
 0x270   :  { %1876 = vmatpush1.bf16.msra.mxu0 %v8106_v40  ;;  %1917 = vmatpush1.bf16.msra.mxu1 %v8108_v41 }
 0x271   :  { %1877 = vmatprep.subr.bf16.mxu0 %v8112_v42  ;;  %1918 = vmatprep.subr.bf16.mxu1 %v8114_v43 }
 0x274   :  { %1878 = vmatpush2.bf16.msra.mxu0 %v8118_v44  ;;  %1919 = vmatpush2.bf16.msra.mxu1 %v8120_v45 }
 0x275   :  { %1879 = vmatprep.subr.bf16.mxu0 %v8124_v46  ;;  %1920 = vmatprep.subr.bf16.mxu1 %v8126_v47 }
 0x278   :  { %1880 = vmatpush2.bf16.msra.mxu0 %v8130_v48  ;;  %1921 = vmatpush2.bf16.msra.mxu1 %v8132_v49  ;;  %v8226_v49 = vld [vmem:[#allocation9 + $0xe8] ss:$16 sps:$4 sm:$0xff]  }
 0x279   :  { %1881 = vmatprep.subr.bf16.mxu0 %v8136_v50  ;;  %1922 = vmatprep.subr.bf16.mxu1 %v8138_v51 }
 0x27c   :  { %1882 = vmatpush2.bf16.msra.mxu0 %v8142_v52  ;;  %1923 = vmatpush2.bf16.msra.mxu1 %v8144_v53 }
 0x27d   :  { %1883 = vmatprep.subr.bf16.mxu0 %v8148_v54  ;;  %1924 = vmatprep.subr.bf16.mxu1 %v8150_v55 }
 0x280   :  { %1884 = vmatpush2.bf16.msra.mxu0 %v8154_v58  ;;  %1925 = vmatpush2.bf16.msra.mxu1 %v8156_v59 }
 0x281   :  { %1885 = vmatprep.subr.bf16.mxu0 %v8160_v60  ;;  %1926 = vmatprep.subr.bf16.mxu1 %v8162_v61 }
 0x284   :  { %1886 = vmatpush2.bf16.msra.mxu0 %v8166_v62  ;;  %1927 = vmatpush2.bf16.msra.mxu1 %v8168_v63 }
 0x285   :  { %1887 = vmatprep.subr.bf16.mxu0 %v8172_v1  ;;  %1928 = vmatprep.subr.bf16.mxu1 %v8174_v2  ;;  %v8204_v2 = vld [vmem:[#allocation9 + $0x300] ss:$16 sps:$4 sm:$0xff]  }
 0x286   :  { %9964 = vst [vmem:[#allocation78_spill] sm:$0xff] %v8204_v2 }
 0x288   :  { %1888 = vmatpush2.bf16.msra.mxu0 %v8178_v3  ;;  %1929 = vmatpush2.bf16.msra.mxu1 %v8180_v6  ;;  %v8200_v3 = vld [vmem:[#allocation9 + $0x304] ss:$16 sps:$4 sm:$0xff]   ;;  %v8202_v6 = vld [vmem:[#allocation9 + $0x100] ss:$16 sps:$4 sm:$0xff]  }
 0x289   :  { %1889 = vmatprep.subr.bf16.mxu0 %v8186_v9  ;;  %1930 = vmatprep.subr.bf16.mxu1 %v8188_v10  ;;  %9962 = vst [vmem:[#allocation76_spill] sm:$0xff] %v8200_v3  ;;  %9963 = vst [vmem:[#allocation77_spill] sm:$0xff] %v8202_v6  ;;  %v8210_v10 = vld [vmem:[#allocation9 + $0xec] ss:$16 sps:$4 sm:$0xff]  }
 0x28a   :  { %9965 = vst [vmem:[#allocation79_spill] sm:$0xff] %v8210_v10  ;;  %v639_v9 = vld [vmem:[#allocation7] sm:$0xf] }
 0x28c   :  { %1890 = vmatpush2.bf16.msra.mxu0 %v8190_v13  ;;  %1931 = vmatpush2.bf16.msra.mxu1 %v8192_v0  ;;  %v8212_v13 = vld [vmem:[#allocation9 + $0x2ec] ss:$16 sps:$4 sm:$0xff]   ;;  %v8217_v0 = vsub.s32 2, %v8006_v5 }
 0x28d   :  { %1891 = vmatprep.subr.bf16.mxu0 %v8198_v4  ;;  %1932 = vmatprep.subr.bf16.mxu1 %v8200_v3  ;;  %9966 = vst [vmem:[#allocation80_spill] sm:$0xff] %v8212_v13  ;;  %v8220_v4 = vsub.s32 3, %v8006_v5  ;;  %v644_v3 = vrot.slane %v639_v9, %v8009_v7 }
 0x28e   :  { %9967 = vst [vmem:[#allocation81_spill] sm:$0xff] %v8217_v0 }
 0x28f   :  { %9968 = vst [vmem:[#allocation82_spill] sm:$0xff] %v8220_v4  ;;  %v656_v1 = vrot.slane %v639_v9, %v8220_v4  ;;  %v8334_v4 = vld [vmem:[#allocation9 + $0x3cc] ss:$16 sps:$4 sm:$0xff]  }
 0x290   :  { %1892 = vmatpush2.bf16.msra.mxu0 %v8202_v6  ;;  %1933 = vmatpush2.bf16.msra.mxu1 %v8204_v2  ;;  %v652_v6 = vrot.slane %v639_v9, %v8217_v0  ;;  %v648_v2 = vrot.slane %v639_v9, %v8012_v8  ;;  %v8228_v9 = vld [vmem:[#allocation9 + $0x2e8] ss:$16 sps:$4 sm:$0xff]   ;;  %9990 = vst [vmem:[#allocation104_spill] sm:$0xff] %v8334_v4 }
 0x291   :  { %1943 = vmatprep.subr.bf16.mxu0 %v8210_v10  ;;  %1984 = vmatprep.subr.bf16.mxu1 %v8212_v13  ;;  %9969 = vst [vmem:[#allocation83_spill] sm:$0xff] %v8228_v9 }
 0x313   :  { %v1015_v63 = vpop.f32.mrf.mxu0  ;;  %v1056_v62 = vpop.f32.mrf.mxu1 }
 0x314   :  { %v1016_v10 = vadd.f32 %v1015_v63, %v644_v3  ;;  %v1057_v61 = vadd.f32 %v1056_v62, %v652_v6  ;;  %v8280_v3 = vld [vmem:[#allocation9 + $0x268] ss:$16 sps:$4 sm:$0xff]   ;;  %v8284_v6 = vld [vmem:[#allocation9 + $0x4c] ss:$16 sps:$4 sm:$0xff]  }
 0x315   :  { %v1017_v13 = vpop.f32.mrf.mxu0  ;;  %v1058_v60 = vpop.f32.mrf.mxu1  ;;  %9977 = vst [vmem:[#allocation91_spill] sm:$0xff] %v8280_v3 }
 0x316   :  { %v1018_v59 = vadd.f32 %v1017_v13, %v648_v2  ;;  %v1059_v58 = vadd.f32 %v1058_v60, %v656_v1  ;;  %v1063_v55 = vmax.f32 %v1016_v10, 0.0  ;;  %v1065_v54 = vmax.f32 %v1057_v61, 0.0  ;;  %v8234_v60 = vld [vmem:[#allocation9 + $0xcc] ss:$16 sps:$4 sm:$0xff]   ;;  %v8278_v2 = vld [vmem:[#allocation9 + $0x68] ss:$16 sps:$4 sm:$0xff]  }
 0x317   :  { %v1019_v5 = vpop.f32.mrf.mxu0  ;;  %v1060_v53 = vpop.f32.mrf.mxu1  ;;  %v8236_v61 = vld [vmem:[#allocation9 + $0x2cc] ss:$16 sps:$4 sm:$0xff]   ;;  %v8290_v13 = vld [vmem:[#allocation9 + $0x48] ss:$16 sps:$4 sm:$0xff]  }
 0x318   :  { %v1064_v52 = vmax.f32 %v1018_v59, 0.0  ;;  %v1066_v7 = vmax.f32 %v1059_v58, 0.0  ;;  %v8230_v63 = vpack.c.bf16 %v1063_v55, %v1063_v55  ;;  %v8232_v62 = vpack.c.bf16 %v1065_v54, %v1065_v54  ;;  %9970 = vst [vmem:[#allocation84_spill] sm:$0xff] %v8236_v61  ;;  %v8254_v53 = vld [vmem:[#allocation9 + $0xa8] ss:$16 sps:$4 sm:$0xff]  }
 0x319   :  { %v1020_v51 = vpop.f32.mrf.mxu0  ;;  %v1061_v0 = vpop.f32.mrf.mxu1  ;;  %v8256_v54 = vld [vmem:[#allocation9 + $0x2a8] ss:$16 sps:$4 sm:$0xff]   ;;  %v8272_v59 = vld [vmem:[#allocation9 + $0x6c] ss:$16 sps:$4 sm:$0xff]  }
 0x31a   :  { %v1068_v50 = vpack.c.bf16 %v1064_v52, %v1064_v52  ;;  %v1070_v8 = vpack.c.bf16 %v1066_v7, %v1066_v7  ;;  %v8242_v0 = vld [vmem:[#allocation9 + $0xc8] ss:$16 sps:$4 sm:$0xff]   ;;  %v8246_v51 = vld [vmem:[#allocation9 + $0xac] ss:$16 sps:$4 sm:$0xff]   ;;  %9973 = vst [vmem:[#allocation87_spill] sm:$0xff] %v8256_v54 }
 0x31b   :  { %v8244_v7 = vld [vmem:[#allocation9 + $0x2c8] ss:$16 sps:$4 sm:$0xff]   ;;  %v8248_v52 = vld [vmem:[#allocation9 + $0x2ac] ss:$16 sps:$4 sm:$0xff]  }
 0x31c   :  { %1893 = vmatprep.mubr.bf16.mxu0 %v1068_v50  ;;  %1934 = vmatprep.mubr.bf16.mxu1 %v1070_v8  ;;  %9971 = vst [vmem:[#allocation85_spill] sm:$0xff] %v8244_v7  ;;  %9972 = vst [vmem:[#allocation86_spill] sm:$0xff] %v8248_v52  ;;  %v8266_v55 = vld [vmem:[#allocation9 + $0x88] ss:$16 sps:$4 sm:$0xff]   ;;  %v8274_v1 = vld [vmem:[#allocation9 + $0x26c] ss:$16 sps:$4 sm:$0xff]  }
 0x31d   :  { %1894 = vmatmul.mubr.bf16.vlgmr.msra.gmra.mxu0 %v8230_v63  ;;  %1935 = vmatmul.mubr.bf16.vlgmr.msra.gmra.mxu1 %v8232_v62  ;;  %v8268_v58 = vld [vmem:[#allocation9 + $0x288] ss:$16 sps:$4 sm:$0xff]   ;;  %9976 = vst [vmem:[#allocation90_spill] sm:$0xff] %v8274_v1  ;;  %v8286_v10 = vld [vmem:[#allocation9 + $0x24c] ss:$16 sps:$4 sm:$0xff]  }
 0x31e   :  { %1944 = vmatpush1.bf16.msra.mxu0 %v8226_v49  ;;  %1985 = vmatpush1.bf16.msra.mxu1 %v8228_v9  ;;  %9975 = vst [vmem:[#allocation89_spill] sm:$0xff] %v8268_v58  ;;  %9978 = vst [vmem:[#allocation92_spill] sm:$0xff] %v8286_v10  ;;  %v8292_v5 = vld [vmem:[#allocation9 + $0x248] ss:$16 sps:$4 sm:$0xff]  }
 0x31f   :  { %1975 = vmatprep.mubr.bf16.mxu0 %v1068_v50  ;;  %2016 = vmatprep.mubr.bf16.mxu1 %v1070_v8  ;;  %v8260_v8 = vld [vmem:[#allocation9 + $0x8c] ss:$16 sps:$4 sm:$0xff]   ;;  %9979 = vst [vmem:[#allocation93_spill] sm:$0xff] %v8292_v5  ;;  %v8328_v9 = vld [vmem:[#allocation9 + $0x3e8] ss:$16 sps:$4 sm:$0xff]  }
 0x320   :  { %1945 = vmatprep.subr.bf16.mxu0 %v8234_v60  ;;  %1986 = vmatprep.subr.bf16.mxu1 %v8236_v61  ;;  %v8262_v50 = vld [vmem:[#allocation9 + $0x28c] ss:$16 sps:$4 sm:$0xff]   ;;  %9988 = vst [vmem:[#allocation102_spill] sm:$0xff] %v8328_v9 }
 0x321   :  { %9974 = vst [vmem:[#allocation88_spill] sm:$0xff] %v8262_v50  ;;  %v8322_v61 = vld [vmem:[#allocation9 + $0x3ec] ss:$16 sps:$4 sm:$0xff]  }
 0x322   :  { %1946 = vmatpush1.bf16.msra.mxu0 %v8242_v0  ;;  %1987 = vmatpush1.bf16.msra.mxu1 %v8244_v7  ;;  %v8316_v7 = vld [vmem:[#allocation9 + $0x208] ss:$16 sps:$4 sm:$0xff]   ;;  %9986 = vst [vmem:[#allocation100_spill] sm:$0xff] %v8322_v61 }
 0x323   :  { %1947 = vmatprep.subr.bf16.mxu0 %v8246_v51  ;;  %1988 = vmatprep.subr.bf16.mxu1 %v8248_v52  ;;  %v8310_v52 = vld [vmem:[#allocation9 + $0x20c] ss:$16 sps:$4 sm:$0xff]   ;;  %9984 = vst [vmem:[#allocation98_spill] sm:$0xff] %v8316_v7 }
 0x324   :  { %9982 = vst [vmem:[#allocation96_spill] sm:$0xff] %v8310_v52 }
 0x326   :  { %1948 = vmatpush1.bf16.msra.mxu0 %v8254_v53  ;;  %1989 = vmatpush1.bf16.msra.mxu1 %v8256_v54  ;;  %v8304_v54 = vld [vmem:[#allocation9 + $0x228] ss:$16 sps:$4 sm:$0xff]  }
 0x327   :  { %1949 = vmatprep.subr.bf16.mxu0 %v8260_v8  ;;  %1990 = vmatprep.subr.bf16.mxu1 %v8262_v50  ;;  %v8298_v50 = vld [vmem:[#allocation9 + $0x22c] ss:$16 sps:$4 sm:$0xff]   ;;  %9981 = vst [vmem:[#allocation95_spill] sm:$0xff] %v8304_v54 }
 0x328   :  { %9980 = vst [vmem:[#allocation94_spill] sm:$0xff] %v8298_v50 }
 0x32a   :  { %1950 = vmatpush1.bf16.msra.mxu0 %v8266_v55  ;;  %1991 = vmatpush1.bf16.msra.mxu1 %v8268_v58  ;;  %v8296_v58 = vld [vmem:[#allocation9 + $0x2c] ss:$16 sps:$4 sm:$0xff]  }
 0x32b   :  { %1951 = vmatprep.subr.bf16.mxu0 %v8272_v59  ;;  %1992 = vmatprep.subr.bf16.mxu1 %v8274_v1  ;;  %v8302_v1 = vld [vmem:[#allocation9 + $0x28] ss:$16 sps:$4 sm:$0xff]  }
 0x32e   :  { %1952 = vmatpush1.bf16.msra.mxu0 %v8278_v2  ;;  %1993 = vmatpush1.bf16.msra.mxu1 %v8280_v3  ;;  %v8308_v3 = vld [vmem:[#allocation9 + $0xc] ss:$16 sps:$4 sm:$0xff]  }
 0x32f   :  { %1953 = vmatprep.subr.bf16.mxu0 %v8284_v6  ;;  %1994 = vmatprep.subr.bf16.mxu1 %v8286_v10  ;;  %v8314_v10 = vld [vmem:[#allocation9 + $0x8] ss:$16 sps:$4 sm:$0xff]  }
 0x330   :  { %9983 = vst [vmem:[#allocation97_spill] sm:$0xff] %v8314_v10 }
 0x332   :  { %1954 = vmatpush1.bf16.msra.mxu0 %v8290_v13  ;;  %1995 = vmatpush1.bf16.msra.mxu1 %v8292_v5  ;;  %v8320_v5 = vld [vmem:[#allocation9 + $0x1ec] ss:$16 sps:$4 sm:$0xff]  }
 0x333   :  { %1955 = vmatprep.subr.bf16.mxu0 %v8296_v58  ;;  %1996 = vmatprep.subr.bf16.mxu1 %v8298_v50  ;;  %9985 = vst [vmem:[#allocation99_spill] sm:$0xff] %v8320_v5  ;;  %v8326_v50 = vld [vmem:[#allocation9 + $0x1e8] ss:$16 sps:$4 sm:$0xff]  }
 0x334   :  { %9987 = vst [vmem:[#allocation101_spill] sm:$0xff] %v8326_v50 }
 0x336   :  { %1956 = vmatpush1.bf16.msra.mxu0 %v8302_v1  ;;  %1997 = vmatpush1.bf16.msra.mxu1 %v8304_v54  ;;  %v8332_v54 = vld [vmem:[#allocation9 + $0x1cc] ss:$16 sps:$4 sm:$0xff]  }
 0x337   :  { %1957 = vmatprep.subr.bf16.mxu0 %v8308_v3  ;;  %1998 = vmatprep.subr.bf16.mxu1 %v8310_v52  ;;  %9989 = vst [vmem:[#allocation103_spill] sm:$0xff] %v8332_v54  ;;  %v8338_v52 = vld [vmem:[#allocation9 + $0x1c8] ss:$16 sps:$4 sm:$0xff]  }
 0x338   :  { %9991 = vst [vmem:[#allocation105_spill] sm:$0xff] %v8338_v52 }
 0x33a   :  { %1958 = vmatpush1.bf16.msra.mxu0 %v8314_v10  ;;  %1999 = vmatpush1.bf16.msra.mxu1 %v8316_v7  ;;  %v8340_v10 = vld [vmem:[#allocation9 + $0x3c8] ss:$16 sps:$4 sm:$0xff]   ;;  %v8344_v7 = vld [vmem:[#allocation9 + $0x1ac] ss:$16 sps:$4 sm:$0xff]  }
 0x33b   :  { %1959 = vmatprep.subr.bf16.mxu0 %v8320_v5  ;;  %2000 = vmatprep.subr.bf16.mxu1 %v8322_v61  ;;  %9992 = vst [vmem:[#allocation106_spill] sm:$0xff] %v8340_v10  ;;  %9993 = vst [vmem:[#allocation107_spill] sm:$0xff] %v8344_v7  ;;  %v8346_v5 = vld [vmem:[#allocation9 + $0x3ac] ss:$16 sps:$4 sm:$0xff]   ;;  %v8350_v61 = vld [vmem:[#allocation9 + $0x1a8] ss:$16 sps:$4 sm:$0xff]  }
 0x33c   :  { %9994 = vst [vmem:[#allocation108_spill] sm:$0xff] %v8346_v5  ;;  %9995 = vst [vmem:[#allocation109_spill] sm:$0xff] %v8350_v61 }
 0x33e   :  { %1960 = vmatpush2.bf16.msra.mxu0 %v8326_v50  ;;  %2001 = vmatpush2.bf16.msra.mxu1 %v8328_v9  ;;  %v8352_v50 = vld [vmem:[#allocation9 + $0x3a8] ss:$16 sps:$4 sm:$0xff]   ;;  %v8356_v9 = vld [vmem:[#allocation9 + $0x18c] ss:$16 sps:$4 sm:$0xff]  }
 0x33f   :  { %1961 = vmatprep.subr.bf16.mxu0 %v8332_v54  ;;  %2002 = vmatprep.subr.bf16.mxu1 %v8334_v4  ;;  %9996 = vst [vmem:[#allocation110_spill] sm:$0xff] %v8352_v50  ;;  %9997 = vst [vmem:[#allocation111_spill] sm:$0xff] %v8356_v9  ;;  %v8358_v54 = vld [vmem:[#allocation9 + $0x38c] ss:$16 sps:$4 sm:$0xff]   ;;  %v8362_v4 = vld [vmem:[#allocation9 + $0x188] ss:$16 sps:$4 sm:$0xff]  }
 0x340   :  { %9998 = vst [vmem:[#allocation112_spill] sm:$0xff] %v8358_v54  ;;  %9999 = vst [vmem:[#allocation113_spill] sm:$0xff] %v8362_v4 }
 0x342   :  { %1962 = vmatpush2.bf16.msra.mxu0 %v8338_v52  ;;  %2003 = vmatpush2.bf16.msra.mxu1 %v8340_v10  ;;  %v8364_v52 = vld [vmem:[#allocation9 + $0x388] ss:$16 sps:$4 sm:$0xff]   ;;  %v8368_v10 = vld [vmem:[#allocation9 + $0x16c] ss:$16 sps:$4 sm:$0xff]  }
 0x343   :  { %1963 = vmatprep.subr.bf16.mxu0 %v8344_v7  ;;  %2004 = vmatprep.subr.bf16.mxu1 %v8346_v5  ;;  %10000 = vst [vmem:[#allocation114_spill] sm:$0xff] %v8364_v52  ;;  %10001 = vst [vmem:[#allocation115_spill] sm:$0xff] %v8368_v10  ;;  %v8370_v7 = vld [vmem:[#allocation9 + $0x36c] ss:$16 sps:$4 sm:$0xff]   ;;  %v8374_v5 = vld [vmem:[#allocation9 + $0x168] ss:$16 sps:$4 sm:$0xff]  }
 0x344   :  { %10002 = vst [vmem:[#allocation116_spill] sm:$0xff] %v8370_v7  ;;  %10003 = vst [vmem:[#allocation117_spill] sm:$0xff] %v8374_v5 }
 0x346   :  { %1964 = vmatpush2.bf16.msra.mxu0 %v8350_v61  ;;  %2005 = vmatpush2.bf16.msra.mxu1 %v8352_v50  ;;  %v8376_v61 = vld [vmem:[#allocation9 + $0x368] ss:$16 sps:$4 sm:$0xff]   ;;  %v8380_v50 = vld [vmem:[#allocation9 + $0x14c] ss:$16 sps:$4 sm:$0xff]  }
 0x347   :  { %1965 = vmatprep.subr.bf16.mxu0 %v8356_v9  ;;  %2006 = vmatprep.subr.bf16.mxu1 %v8358_v54  ;;  %10004 = vst [vmem:[#allocation118_spill] sm:$0xff] %v8376_v61  ;;  %10005 = vst [vmem:[#allocation119_spill] sm:$0xff] %v8380_v50  ;;  %v8382_v9 = vld [vmem:[#allocation9 + $0x34c] ss:$16 sps:$4 sm:$0xff]   ;;  %v8386_v54 = vld [vmem:[#allocation9 + $0x148] ss:$16 sps:$4 sm:$0xff]  }
 0x348   :  { %10006 = vst [vmem:[#allocation120_spill] sm:$0xff] %v8382_v9  ;;  %10007 = vst [vmem:[#allocation121_spill] sm:$0xff] %v8386_v54 }
 0x34a   :  { %1966 = vmatpush2.bf16.msra.mxu0 %v8362_v4  ;;  %2007 = vmatpush2.bf16.msra.mxu1 %v8364_v52  ;;  %v8388_v4 = vld [vmem:[#allocation9 + $0x348] ss:$16 sps:$4 sm:$0xff]   ;;  %v8392_v52 = vld [vmem:[#allocation9 + $0x12c] ss:$16 sps:$4 sm:$0xff]  }
 0x34b   :  { %1967 = vmatprep.subr.bf16.mxu0 %v8368_v10  ;;  %2008 = vmatprep.subr.bf16.mxu1 %v8370_v7  ;;  %10008 = vst [vmem:[#allocation122_spill] sm:$0xff] %v8388_v4  ;;  %v8394_v10 = vld [vmem:[#allocation9 + $0x32c] ss:$16 sps:$4 sm:$0xff]   ;;  %v8398_v7 = vld [vmem:[#allocation9 + $0x128] ss:$16 sps:$4 sm:$0xff]  }
 0x34c   :  { %10009 = vst [vmem:[#allocation123_spill] sm:$0xff] %v8394_v10 }
 0x34e   :  { %1968 = vmatpush2.bf16.msra.mxu0 %v8374_v5  ;;  %2009 = vmatpush2.bf16.msra.mxu1 %v8376_v61  ;;  %v8400_v5 = vld [vmem:[#allocation9 + $0x328] ss:$16 sps:$4 sm:$0xff]   ;;  %v8404_v61 = vld [vmem:[#allocation9 + $0x10c] ss:$16 sps:$4 sm:$0xff]  }
 0x34f   :  { %1969 = vmatprep.subr.bf16.mxu0 %v8380_v50  ;;  %2010 = vmatprep.subr.bf16.mxu1 %v8382_v9  ;;  %10010 = vst [vmem:[#allocation124_spill] sm:$0xff] %v8400_v5  ;;  %v8406_v50 = vld [vmem:[#allocation9 + $0x30c] ss:$16 sps:$4 sm:$0xff]   ;;  %v8410_v9 = vld [vmem:[#allocation9 + $0x108] ss:$16 sps:$4 sm:$0xff]  }
 0x350   :  { %10011 = vst [vmem:[#allocation125_spill] sm:$0xff] %v8406_v50 }
 0x352   :  { %1970 = vmatpush2.bf16.msra.mxu0 %v8386_v54  ;;  %2011 = vmatpush2.bf16.msra.mxu1 %v8388_v4  ;;  %v8412_v54 = vld [vmem:[#allocation9 + $0x308] ss:$16 sps:$4 sm:$0xff]  }
 0x353   :  { %1971 = vmatprep.subr.bf16.mxu0 %v8392_v52  ;;  %2012 = vmatprep.subr.bf16.mxu1 %v8394_v10  ;;  %10012 = vst [vmem:[#allocation126_spill] sm:$0xff] %v8412_v54 }
 0x356   :  { %1972 = vmatpush2.bf16.msra.mxu0 %v8398_v7  ;;  %2013 = vmatpush2.bf16.msra.mxu1 %v8400_v5 }
 0x357   :  { %1973 = vmatprep.subr.bf16.mxu0 %v8404_v61  ;;  %2014 = vmatprep.subr.bf16.mxu1 %v8406_v50 }
 0x35a   :  { %1974 = vmatpush2.bf16.msra.mxu0 %v8410_v9  ;;  %2015 = vmatpush2.bf16.msra.mxu1 %v8412_v54 }
 0x35b   :  { %2033 = vmatprep.subr.bf16.mxu0 %v8016_v56  ;;  %2074 = vmatprep.subr.bf16.mxu1 %v8018_v57 }
 0x35d   :  { %1976 = vmatmul.mubr.bf16.vlgmr.msra.gmra.mxu0 %v8230_v63  ;;  %2017 = vmatmul.mubr.bf16.vlgmr.msra.gmra.mxu1 %v8232_v62  ;;  %v10013_v63 = vld [vmem:[#allocation54_spill] sm:$0xff]  ;;  %v10014_v62 = vld [vmem:[#allocation55_spill] sm:$0xff] }
 0x35e   :  { %2034 = vmatpush1.bf16.msra.mxu0 %v8024_v11  ;;  %2075 = vmatpush1.bf16.msra.mxu1 %v8026_v12  ;;  %v10040_v12 = vld [vmem:[#allocation33_spill] sm:$0xff] }
 0x35f   :  { %2035 = vmatprep.subr.bf16.mxu0 %v8028_v14  ;;  %2076 = vmatprep.subr.bf16.mxu1 %v8030_v15  ;;  %v10039_v15 = vld [vmem:[#allocation80_spill] sm:$0xff] }
 0x362   :  { %2036 = vmatpush1.bf16.msra.mxu0 %v8034_v16  ;;  %2077 = vmatpush1.bf16.msra.mxu1 %v8036_v17  ;;  %v10037_v17 = vld [vmem:[#allocation78_spill] sm:$0xff] }
 0x363   :  { %2037 = vmatprep.subr.bf16.mxu0 %v8040_v18  ;;  %2078 = vmatprep.subr.bf16.mxu1 %v8042_v19  ;;  %v10035_v19 = vld [vmem:[#allocation76_spill] sm:$0xff] }
 0x366   :  { %2038 = vmatpush1.bf16.msra.mxu0 %v8046_v20  ;;  %2079 = vmatpush1.bf16.msra.mxu1 %v8048_v21  ;;  %v10033_v21 = vld [vmem:[#allocation74_spill] sm:$0xff] }
 0x367   :  { %2039 = vmatprep.subr.bf16.mxu0 %v8052_v22  ;;  %2080 = vmatprep.subr.bf16.mxu1 %v8054_v23  ;;  %v10031_v23 = vld [vmem:[#allocation72_spill] sm:$0xff] }
 0x36a   :  { %2040 = vmatpush1.bf16.msra.mxu0 %v8058_v24  ;;  %2081 = vmatpush1.bf16.msra.mxu1 %v8060_v25  ;;  %v10029_v25 = vld [vmem:[#allocation70_spill] sm:$0xff] }
 0x36b   :  { %2041 = vmatprep.subr.bf16.mxu0 %v8064_v26  ;;  %2082 = vmatprep.subr.bf16.mxu1 %v8066_v27  ;;  %v10027_v27 = vld [vmem:[#allocation68_spill] sm:$0xff] }
 0x36e   :  { %2042 = vmatpush1.bf16.msra.mxu0 %v8070_v28  ;;  %2083 = vmatpush1.bf16.msra.mxu1 %v8072_v29  ;;  %v10025_v29 = vld [vmem:[#allocation66_spill] sm:$0xff] }
 0x36f   :  { %2043 = vmatprep.subr.bf16.mxu0 %v8076_v30  ;;  %2084 = vmatprep.subr.bf16.mxu1 %v8078_v31  ;;  %v10023_v31 = vld [vmem:[#allocation64_spill] sm:$0xff] }
 0x372   :  { %2044 = vmatpush1.bf16.msra.mxu0 %v8082_v32  ;;  %2085 = vmatpush1.bf16.msra.mxu1 %v8084_v33  ;;  %v10021_v33 = vld [vmem:[#allocation62_spill] sm:$0xff] }
 0x373   :  { %2045 = vmatprep.subr.bf16.mxu0 %v8088_v34  ;;  %2086 = vmatprep.subr.bf16.mxu1 %v8090_v35  ;;  %v10019_v35 = vld [vmem:[#allocation60_spill] sm:$0xff] }
 0x376   :  { %2046 = vmatpush1.bf16.msra.mxu0 %v8094_v36  ;;  %2087 = vmatpush1.bf16.msra.mxu1 %v8096_v37  ;;  %v10017_v37 = vld [vmem:[#allocation58_spill] sm:$0xff] }
 0x377   :  { %2047 = vmatprep.subr.bf16.mxu0 %v8100_v38  ;;  %2088 = vmatprep.subr.bf16.mxu1 %v8102_v39  ;;  %v10015_v39 = vld [vmem:[#allocation56_spill] sm:$0xff] }
 0x37a   :  { %2048 = vmatpush1.bf16.msra.mxu0 %v8106_v40  ;;  %2089 = vmatpush1.bf16.msra.mxu1 %v8108_v41  ;;  %v10016_v41 = vld [vmem:[#allocation57_spill] sm:$0xff] }
 0x37b   :  { %2049 = vmatprep.subr.bf16.mxu0 %v8112_v42  ;;  %2090 = vmatprep.subr.bf16.mxu1 %v8114_v43  ;;  %v10018_v43 = vld [vmem:[#allocation59_spill] sm:$0xff] }
 0x37e   :  { %2050 = vmatpush2.bf16.msra.mxu0 %v8118_v44  ;;  %2091 = vmatpush2.bf16.msra.mxu1 %v8120_v45  ;;  %v10020_v45 = vld [vmem:[#allocation61_spill] sm:$0xff] }
 0x37f   :  { %2051 = vmatprep.subr.bf16.mxu0 %v8124_v46  ;;  %2092 = vmatprep.subr.bf16.mxu1 %v8126_v47  ;;  %v10022_v47 = vld [vmem:[#allocation63_spill] sm:$0xff] }
 0x382   :  { %2052 = vmatpush2.bf16.msra.mxu0 %v8130_v48  ;;  %2093 = vmatpush2.bf16.msra.mxu1 %v10013_v63  ;;  %v10024_v63 = vld [vmem:[#allocation65_spill] sm:$0xff] }
 0x383   :  { %2053 = vmatprep.subr.bf16.mxu0 %v10014_v62  ;;  %2094 = vmatprep.subr.bf16.mxu1 %v10015_v39  ;;  %v10026_v39 = vld [vmem:[#allocation67_spill] sm:$0xff] }
 0x386   :  { %2054 = vmatpush2.bf16.msra.mxu0 %v10016_v41  ;;  %2095 = vmatpush2.bf16.msra.mxu1 %v10017_v37  ;;  %v10028_v37 = vld [vmem:[#allocation69_spill] sm:$0xff] }
 0x387   :  { %2055 = vmatprep.subr.bf16.mxu0 %v10018_v43  ;;  %2096 = vmatprep.subr.bf16.mxu1 %v10019_v35  ;;  %v10030_v35 = vld [vmem:[#allocation71_spill] sm:$0xff] }
 0x38a   :  { %2056 = vmatpush2.bf16.msra.mxu0 %v10020_v45  ;;  %2097 = vmatpush2.bf16.msra.mxu1 %v10021_v33  ;;  %v10032_v33 = vld [vmem:[#allocation73_spill] sm:$0xff] }
 0x38b   :  { %2057 = vmatprep.subr.bf16.mxu0 %v10022_v47  ;;  %2098 = vmatprep.subr.bf16.mxu1 %v10023_v31  ;;  %v10034_v31 = vld [vmem:[#allocation75_spill] sm:$0xff] }
 0x38e   :  { %2058 = vmatpush2.bf16.msra.mxu0 %v10024_v63  ;;  %2099 = vmatpush2.bf16.msra.mxu1 %v10025_v29  ;;  %v10036_v29 = vld [vmem:[#allocation77_spill] sm:$0xff] }
 0x38f   :  { %2059 = vmatprep.subr.bf16.mxu0 %v10026_v39  ;;  %2100 = vmatprep.subr.bf16.mxu1 %v10027_v27  ;;  %v10038_v27 = vld [vmem:[#allocation79_spill] sm:$0xff] }
 0x392   :  { %2060 = vmatpush2.bf16.msra.mxu0 %v10028_v37  ;;  %2101 = vmatpush2.bf16.msra.mxu1 %v10029_v25  ;;  %v1199_v25 = vld [vmem:[#allocation10] sm:$0xf] }
 0x393   :  { %2061 = vmatprep.subr.bf16.mxu0 %v10030_v35  ;;  %2102 = vmatprep.subr.bf16.mxu1 %v10031_v23  ;;  %v8487_v57 = vrot.slane %v1199_v25, %v10040_v12  ;;  %v10041_v23 = vld [vmem:[#allocation34_spill] sm:$0xff] }
 0x394   :  { %v8490_v54 = vrot.slane %v1199_v25, %v10041_v23 }
 0x396   :  { %2062 = vmatpush2.bf16.msra.mxu0 %v10032_v33  ;;  %2103 = vmatpush2.bf16.msra.mxu1 %v10033_v21 }
 0x397   :  { %2063 = vmatprep.subr.bf16.mxu0 %v10034_v31  ;;  %2104 = vmatprep.subr.bf16.mxu1 %v10035_v19 }
 0x39a   :  { %2064 = vmatpush2.bf16.msra.mxu0 %v10036_v29  ;;  %2105 = vmatpush2.bf16.msra.mxu1 %v10037_v17 }
 0x39b   :  { %2115 = vmatprep.subr.bf16.mxu0 %v10038_v27  ;;  %2156 = vmatprep.subr.bf16.mxu1 %v10039_v15 }
 0x3dd   :  { %v1895_v21 = vpop.f32.mrf.mxu0  ;;  %v1936_v33 = vpop.f32.mrf.mxu1 }
 0x3de   :  { %v1896_v31 = vadd.f32 %v1895_v21, %v8487_v57  ;;  %v10047_v21 = vld [vmem:[#allocation107_spill] sm:$0xff] }
 0x3df   :  { %v1897_v19 = vpop.f32.mrf.mxu0  ;;  %v1938_v50 = vpop.f32.mrf.mxu1 }
 0x3e0   :  { %v1937_v29 = vadd.f32 %v1936_v33, %v1896_v31  ;;  %v1898_v17 = vadd.f32 %v1897_v19, %v8490_v54  ;;  %v10046_v19 = vld [vmem:[#allocation105_spill] sm:$0xff]  ;;  %v10051_v33 = vld [vmem:[#allocation115_spill] sm:$0xff] }
 0x3e1   :  { %v1899_v5 = vpop.f32.mrf.mxu0  ;;  %v1940_v27 = vpop.f32.mrf.mxu1  ;;  %v10050_v31 = vld [vmem:[#allocation113_spill] sm:$0xff] }
 0x3e2   :  { %v1939_v35 = vadd.f32 %v1938_v50, %v1898_v17  ;;  %v2025_v15 = vmax.f32 %v1937_v29, 0.0  ;;  %v10045_v17 = vld [vmem:[#allocation103_spill] sm:$0xff]  ;;  %v10048_v27 = vld [vmem:[#allocation109_spill] sm:$0xff]  ;;  %v10056_v5 = vld [vmem:[#allocation82_spill] sm:$0xff] }
 0x3e3   :  { %v1900_v37 = vpop.f32.mrf.mxu0  ;;  %v1941_v10 = vpop.f32.mrf.mxu1  ;;  %v10049_v29 = vld [vmem:[#allocation111_spill] sm:$0xff]  ;;  %v8524_v23 = vrot.slane %v1199_v25, %v10056_v5 }
 0x3e4   :  { %v2026_v12 = vmax.f32 %v1939_v35, 0.0  ;;  %v2029_v39 = vpack.c.bf16 %v2025_v15, %v2025_v15  ;;  %v10044_v15 = vld [vmem:[#allocation101_spill] sm:$0xff]  ;;  %v10055_v10 = vld [vmem:[#allocation119_spill] sm:$0xff] }
 0x3e5   :  { %v10052_v35 = vld [vmem:[#allocation117_spill] sm:$0xff] }
 0x3e6   :  { %v2030_v4 = vpack.c.bf16 %v2026_v12, %v2026_v12  ;;  %v10043_v12 = vld [vmem:[#allocation99_spill] sm:$0xff]  ;;  %v10053_v37 = vld [vmem:[#allocation81_spill] sm:$0xff] }
 0x3e7   :  { %v8520_v50 = vrot.slane %v1199_v25, %v10053_v37 }
 0x3e8   :  { %2065 = vmatprep.mubr.bf16.mxu0 %v2030_v4 }
 0x3e9   :  { %2066 = vmatmul.mubr.bf16.vlgmr.msra.gmra.mxu0 %v2029_v39  ;;  %10054 = vst [vmem:[#allocation55_spill] sm:$0xff] %v8520_v50 }
 0x3ea   :  { %2116 = vmatpush1.bf16.msra.mxu0 %v8226_v49  ;;  %2147 = vmatprep.mubr.bf16.mxu0 %v2030_v4  ;;  %v10042_v4 = vld [vmem:[#allocation97_spill] sm:$0xff] }
 0x3eb   :  { %2117 = vmatprep.subr.bf16.mxu0 %v8234_v60 }
 0x3ee   :  { %2118 = vmatpush1.bf16.msra.mxu0 %v8242_v0 }
 0x3ef   :  { %2119 = vmatprep.subr.bf16.mxu0 %v8246_v51 }
 0x3f2   :  { %2120 = vmatpush1.bf16.msra.mxu0 %v8254_v53 }
 0x3f3   :  { %2121 = vmatprep.subr.bf16.mxu0 %v8260_v8 }
 0x3f6   :  { %2122 = vmatpush1.bf16.msra.mxu0 %v8266_v55 }
 0x3f7   :  { %2123 = vmatprep.subr.bf16.mxu0 %v8272_v59 }
 0x3fa   :  { %2124 = vmatpush1.bf16.msra.mxu0 %v8278_v2 }
 0x3fb   :  { %2125 = vmatprep.subr.bf16.mxu0 %v8284_v6 }
 0x3fe   :  { %2126 = vmatpush1.bf16.msra.mxu0 %v8290_v13 }
 0x3ff   :  { %2127 = vmatprep.subr.bf16.mxu0 %v8296_v58 }
 0x402   :  { %2128 = vmatpush1.bf16.msra.mxu0 %v8302_v1 }
 0x403   :  { %2129 = vmatprep.subr.bf16.mxu0 %v8308_v3 }
 0x406   :  { %2130 = vmatpush1.bf16.msra.mxu0 %v10042_v4 }
 0x407   :  { %2131 = vmatprep.subr.bf16.mxu0 %v10043_v12 }
 0x40a   :  { %2132 = vmatpush2.bf16.msra.mxu0 %v10044_v15 }
 0x40b   :  { %2133 = vmatprep.subr.bf16.mxu0 %v10045_v17  ;;  %v10057_v17 = vld [vmem:[#allocation121_spill] sm:$0xff] }
 0x40e   :  { %2134 = vmatpush2.bf16.msra.mxu0 %v10046_v19 }
 0x40f   :  { %2135 = vmatprep.subr.bf16.mxu0 %v10047_v21 }
 0x412   :  { %2136 = vmatpush2.bf16.msra.mxu0 %v10048_v27 }
 0x413   :  { %2137 = vmatprep.subr.bf16.mxu0 %v10049_v29 }
 0x416   :  { %2138 = vmatpush2.bf16.msra.mxu0 %v10050_v31 }
 0x417   :  { %2139 = vmatprep.subr.bf16.mxu0 %v10051_v33 }
 0x41a   :  { %2140 = vmatpush2.bf16.msra.mxu0 %v10052_v35 }
 0x41b   :  { %2141 = vmatprep.subr.bf16.mxu0 %v10055_v10 }
 0x41d   :  { %v1977_v19 = vpop.f32.mrf.mxu0  ;;  %v2018_v21 = vpop.f32.mrf.mxu1 }
 0x41e   :  { %v1978_v27 = vadd.f32 %v1977_v19, %v8520_v50  ;;  %2142 = vmatpush2.bf16.msra.mxu0 %v10057_v17 }
 0x41f   :  { %v1979_v29 = vpop.f32.mrf.mxu0  ;;  %v2020_v31 = vpop.f32.mrf.mxu1  ;;  %2143 = vmatprep.subr.bf16.mxu0 %v8392_v52 }
 0x420   :  { %v2019_v33 = vadd.f32 %v2018_v21, %v1978_v27  ;;  %v1980_v35 = vadd.f32 %v1979_v29, %v8524_v23  ;;  %v10059_v21 = vld [vmem:[#allocation84_spill] sm:$0xff]  ;;  %v10061_v27 = vld [vmem:[#allocation86_spill] sm:$0xff]  ;;  %v10064_v29 = vld [vmem:[#allocation89_spill] sm:$0xff] }
 0x421   :  { %v1981_v37 = vpop.f32.mrf.mxu0  ;;  %v2022_v15 = vpop.f32.mrf.mxu1 }
 0x422   :  { %v2021_v12 = vadd.f32 %v2020_v31, %v1980_v35  ;;  %2144 = vmatpush2.bf16.msra.mxu0 %v8398_v7  ;;  %v2027_v25 = vmax.f32 %v2019_v33, 0.0  ;;  %v10058_v15 = vld [vmem:[#allocation83_spill] sm:$0xff]  ;;  %v10085_v31 = vld [vmem:[#allocation122_spill] sm:$0xff]  ;;  %v10089_v35 = vld [vmem:[#allocation124_spill] sm:$0xff] }
 0x423   :  { %v1982_v5 = vpop.f32.mrf.mxu0  ;;  %v2023_v10 = vpop.f32.mrf.mxu1  ;;  %2145 = vmatprep.subr.bf16.mxu0 %v8404_v61  ;;  %v10088_v33 = vld [vmem:[#allocation71_spill] sm:$0xff] }
 0x424   :  { %v2028_v19 = vmax.f32 %v2021_v12, 0.0  ;;  %v8533_v17 = vpack.c.bf16 %v2027_v25, %v2027_v25  ;;  %v10060_v12 = vld [vmem:[#allocation85_spill] sm:$0xff]  ;;  %v10092_v37 = vld [vmem:[#allocation75_spill] sm:$0xff]  ;;  %v10097_v25 = vld [vmem:[#allocation36_spill] sm:$0xff] }
 0x425   :  { %v10095_v10 = vld [vmem:[#allocation35_spill] sm:$0xff] }
 0x426   :  { %v2032_v50 = vpack.c.bf16 %v2028_v19, %v2028_v19  ;;  %2146 = vmatpush2.bf16.msra.mxu0 %v8410_v9  ;;  %v10096_v5 = vld [vmem:[#allocation79_spill] sm:$0xff]  ;;  %v10098_v19 = vld [vmem:[#allocation37_spill] sm:$0xff] }
 0x427   :  { %2205 = vmatprep.subr.bf16.mxu0 %v8016_v56  ;;  %v10062_v56 = vld [vmem:[#allocation87_spill] sm:$0xff] }
 0x428   :  { %2106 = vmatprep.mubr.bf16.mxu1 %v2032_v50 }
 0x429   :  { %2107 = vmatmul.mubr.bf16.vlgmr.msra.gmra.mxu1 %v8533_v17  ;;  %2148 = vmatmul.mubr.bf16.vlgmr.msra.gmra.mxu0 %v2029_v39  ;;  %v10063_v39 = vld [vmem:[#allocation88_spill] sm:$0xff] }
 0x42a   :  { %2157 = vmatpush1.bf16.msra.mxu1 %v10058_v15  ;;  %2188 = vmatprep.mubr.bf16.mxu1 %v2032_v50  ;;  %v10093_v50 = vld [vmem:[#allocation126_spill] sm:$0xff] }
 0x42b   :  { %2158 = vmatprep.subr.bf16.mxu1 %v10059_v21  ;;  %2206 = vmatpush1.bf16.msra.mxu0 %v8024_v11  ;;  %v10065_v11 = vld [vmem:[#allocation90_spill] sm:$0xff] }
 0x42c   :  { %2207 = vmatprep.subr.bf16.mxu0 %v8028_v14  ;;  %v10066_v14 = vld [vmem:[#allocation91_spill] sm:$0xff] }
 0x42e   :  { %2159 = vmatpush1.bf16.msra.mxu1 %v10060_v12 }
 0x42f   :  { %2160 = vmatprep.subr.bf16.mxu1 %v10061_v27  ;;  %2208 = vmatpush1.bf16.msra.mxu0 %v8034_v16  ;;  %v10067_v16 = vld [vmem:[#allocation92_spill] sm:$0xff] }
 0x430   :  { %2209 = vmatprep.subr.bf16.mxu0 %v8040_v18  ;;  %v10068_v18 = vld [vmem:[#allocation93_spill] sm:$0xff] }
 0x432   :  { %2161 = vmatpush1.bf16.msra.mxu1 %v10062_v56 }
 0x433   :  { %2162 = vmatprep.subr.bf16.mxu1 %v10063_v39  ;;  %2210 = vmatpush1.bf16.msra.mxu0 %v8046_v20  ;;  %v10069_v20 = vld [vmem:[#allocation94_spill] sm:$0xff] }
 0x434   :  { %2211 = vmatprep.subr.bf16.mxu0 %v8052_v22  ;;  %v10070_v22 = vld [vmem:[#allocation95_spill] sm:$0xff] }
 0x436   :  { %2163 = vmatpush1.bf16.msra.mxu1 %v10064_v29 }
 0x437   :  { %2164 = vmatprep.subr.bf16.mxu1 %v10065_v11  ;;  %2212 = vmatpush1.bf16.msra.mxu0 %v8058_v24  ;;  %v10071_v24 = vld [vmem:[#allocation96_spill] sm:$0xff] }
 0x438   :  { %2213 = vmatprep.subr.bf16.mxu0 %v8064_v26  ;;  %v10072_v26 = vld [vmem:[#allocation98_spill] sm:$0xff] }
 0x43a   :  { %2165 = vmatpush1.bf16.msra.mxu1 %v10066_v14 }
 0x43b   :  { %2166 = vmatprep.subr.bf16.mxu1 %v10067_v16  ;;  %2214 = vmatpush1.bf16.msra.mxu0 %v8070_v28  ;;  %v10073_v28 = vld [vmem:[#allocation100_spill] sm:$0xff] }
 0x43c   :  { %2215 = vmatprep.subr.bf16.mxu0 %v8076_v30  ;;  %v10074_v30 = vld [vmem:[#allocation102_spill] sm:$0xff] }
 0x43e   :  { %2167 = vmatpush1.bf16.msra.mxu1 %v10068_v18 }
 0x43f   :  { %2168 = vmatprep.subr.bf16.mxu1 %v10069_v20  ;;  %2216 = vmatpush1.bf16.msra.mxu0 %v8082_v32  ;;  %v10075_v32 = vld [vmem:[#allocation104_spill] sm:$0xff] }
 0x440   :  { %2217 = vmatprep.subr.bf16.mxu0 %v8088_v34  ;;  %v10076_v34 = vld [vmem:[#allocation106_spill] sm:$0xff] }
 0x442   :  { %2169 = vmatpush1.bf16.msra.mxu1 %v10070_v22 }
 0x443   :  { %2170 = vmatprep.subr.bf16.mxu1 %v10071_v24  ;;  %2218 = vmatpush1.bf16.msra.mxu0 %v8094_v36  ;;  %v10077_v36 = vld [vmem:[#allocation108_spill] sm:$0xff] }
 0x444   :  { %2219 = vmatprep.subr.bf16.mxu0 %v8100_v38  ;;  %v10078_v38 = vld [vmem:[#allocation110_spill] sm:$0xff] }
 0x446   :  { %2171 = vmatpush1.bf16.msra.mxu1 %v10072_v26 }
 0x447   :  { %2172 = vmatprep.subr.bf16.mxu1 %v10073_v28  ;;  %2220 = vmatpush1.bf16.msra.mxu0 %v8106_v40  ;;  %v10079_v40 = vld [vmem:[#allocation112_spill] sm:$0xff] }
 0x448   :  { %2221 = vmatprep.subr.bf16.mxu0 %v8112_v42  ;;  %v10080_v42 = vld [vmem:[#allocation114_spill] sm:$0xff] }
 0x44a   :  { %2173 = vmatpush2.bf16.msra.mxu1 %v10074_v30 }
 0x44b   :  { %2174 = vmatprep.subr.bf16.mxu1 %v10075_v32  ;;  %2222 = vmatpush2.bf16.msra.mxu0 %v8118_v44  ;;  %v10081_v44 = vld [vmem:[#allocation116_spill] sm:$0xff] }
 0x44c   :  { %2223 = vmatprep.subr.bf16.mxu0 %v8124_v46  ;;  %v10082_v46 = vld [vmem:[#allocation118_spill] sm:$0xff] }
 0x44e   :  { %2175 = vmatpush2.bf16.msra.mxu1 %v10076_v34 }
 0x44f   :  { %2176 = vmatprep.subr.bf16.mxu1 %v10077_v36  ;;  %2224 = vmatpush2.bf16.msra.mxu0 %v8130_v48  ;;  %v10083_v48 = vld [vmem:[#allocation120_spill] sm:$0xff] }
 0x450   :  { %2225 = vmatprep.subr.bf16.mxu0 %v10014_v62  ;;  %v10084_v62 = vld [vmem:[#allocation67_spill] sm:$0xff] }
 0x452   :  { %2177 = vmatpush2.bf16.msra.mxu1 %v10078_v38 }
 0x453   :  { %2178 = vmatprep.subr.bf16.mxu1 %v10079_v40  ;;  %2226 = vmatpush2.bf16.msra.mxu0 %v10016_v41  ;;  %v10086_v41 = vld [vmem:[#allocation123_spill] sm:$0xff] }
 0x454   :  { %2227 = vmatprep.subr.bf16.mxu0 %v10018_v43  ;;  %v10087_v43 = vld [vmem:[#allocation69_spill] sm:$0xff] }
 0x456   :  { %2179 = vmatpush2.bf16.msra.mxu1 %v10080_v42 }
 0x457   :  { %2180 = vmatprep.subr.bf16.mxu1 %v10081_v44  ;;  %2228 = vmatpush2.bf16.msra.mxu0 %v10020_v45  ;;  %v10090_v45 = vld [vmem:[#allocation125_spill] sm:$0xff] }
 0x458   :  { %2229 = vmatprep.subr.bf16.mxu0 %v10022_v47  ;;  %v10091_v47 = vld [vmem:[#allocation73_spill] sm:$0xff] }
 0x45a   :  { %2181 = vmatpush2.bf16.msra.mxu1 %v10082_v46 }
 0x45b   :  { %2182 = vmatprep.subr.bf16.mxu1 %v10083_v48  ;;  %2230 = vmatpush2.bf16.msra.mxu0 %v10024_v63  ;;  %v10094_v63 = vld [vmem:[#allocation77_spill] sm:$0xff] }
 0x45c   :  { %2231 = vmatprep.subr.bf16.mxu0 %v10084_v62  ;;  %v10099_v62 = vld [vmem:[#allocation38_spill] sm:$0xff] }
 0x45e   :  { %2183 = vmatpush2.bf16.msra.mxu1 %v10085_v31 }
 0x45f   :  { %2184 = vmatprep.subr.bf16.mxu1 %v10086_v41  ;;  %2232 = vmatpush2.bf16.msra.mxu0 %v10087_v43  ;;  %v10100_v43 = vld [vmem:[#allocation39_spill] sm:$0xff] }
 0x460   :  { %2233 = vmatprep.subr.bf16.mxu0 %v10088_v33  ;;  %v10101_v33 = vld [vmem:[#allocation40_spill] sm:$0xff] }
 0x462   :  { %2185 = vmatpush2.bf16.msra.mxu1 %v10089_v35 }
 0x463   :  { %2186 = vmatprep.subr.bf16.mxu1 %v10090_v45  ;;  %2234 = vmatpush2.bf16.msra.mxu0 %v10091_v47  ;;  %v10102_v47 = vld [vmem:[#allocation41_spill] sm:$0xff] }
 0x464   :  { %2235 = vmatprep.subr.bf16.mxu0 %v10092_v37  ;;  %v10103_v37 = vld [vmem:[#allocation42_spill] sm:$0xff] }
 0x466   :  { %2187 = vmatpush2.bf16.msra.mxu1 %v10093_v50 }
 0x467   :  { %2236 = vmatpush2.bf16.msra.mxu0 %v10094_v63  ;;  %2246 = vmatprep.subr.bf16.mxu1 %v10095_v10  ;;  %v10104_v63 = vld [vmem:[#allocation43_spill] sm:$0xff]  ;;  %v10105_v10 = vld [vmem:[#allocation44_spill] sm:$0xff] }
 0x468   :  { %2287 = vmatprep.subr.bf16.mxu0 %v10096_v5  ;;  %v10106_v5 = vld [vmem:[#allocation45_spill] sm:$0xff] }
 0x469   :  { %2189 = vmatmul.mubr.bf16.vlgmr.msra.gmra.mxu1 %v8533_v17  ;;  %v10107_v17 = vld [vmem:[#allocation46_spill] sm:$0xff] }
 0x46a   :  { %2247 = vmatpush1.bf16.msra.mxu1 %v10097_v25  ;;  %v10108_v25 = vld [vmem:[#allocation47_spill] sm:$0xff] }
 0x46b   :  { %2248 = vmatprep.subr.bf16.mxu1 %v10098_v19  ;;  %v10109_v19 = vld [vmem:[#allocation48_spill] sm:$0xff] }
 0x46e   :  { %2249 = vmatpush1.bf16.msra.mxu1 %v10099_v62  ;;  %v10110_v62 = vld [vmem:[#allocation49_spill] sm:$0xff] }
 0x46f   :  { %2250 = vmatprep.subr.bf16.mxu1 %v10100_v43  ;;  %v10111_v43 = vld [vmem:[#allocation50_spill] sm:$0xff] }
 0x472   :  { %2251 = vmatpush1.bf16.msra.mxu1 %v10101_v33  ;;  %v10112_v33 = vld [vmem:[#allocation51_spill] sm:$0xff] }
 0x473   :  { %2252 = vmatprep.subr.bf16.mxu1 %v10102_v47  ;;  %v10113_v47 = vld [vmem:[#allocation52_spill] sm:$0xff] }
 0x476   :  { %2253 = vmatpush1.bf16.msra.mxu1 %v10103_v37  ;;  %v10114_v37 = vld [vmem:[#allocation53_spill] sm:$0xff] }
 0x477   :  { %2254 = vmatprep.subr.bf16.mxu1 %v10104_v63  ;;  %v10115_v63 = vld [vmem:[#allocation54_spill] sm:$0xff] }
 0x47a   :  { %2255 = vmatpush1.bf16.msra.mxu1 %v10105_v10  ;;  %v10116_v10 = vld [vmem:[#allocation56_spill] sm:$0xff] }
 0x47b   :  { %2256 = vmatprep.subr.bf16.mxu1 %v10106_v5  ;;  %v10117_v5 = vld [vmem:[#allocation58_spill] sm:$0xff] }
 0x47e   :  { %2257 = vmatpush1.bf16.msra.mxu1 %v10107_v17  ;;  %v10118_v17 = vld [vmem:[#allocation60_spill] sm:$0xff] }
 0x47f   :  { %2258 = vmatprep.subr.bf16.mxu1 %v10108_v25  ;;  %v10119_v25 = vld [vmem:[#allocation62_spill] sm:$0xff] }
 0x482   :  { %2259 = vmatpush1.bf16.msra.mxu1 %v10109_v19  ;;  %v10120_v19 = vld [vmem:[#allocation64_spill] sm:$0xff] }
 0x483   :  { %2260 = vmatprep.subr.bf16.mxu1 %v10110_v62  ;;  %v10121_v62 = vld [vmem:[#allocation66_spill] sm:$0xff] }
 0x486   :  { %2261 = vmatpush1.bf16.msra.mxu1 %v10111_v43  ;;  %v10122_v43 = vld [vmem:[#allocation68_spill] sm:$0xff] }
 0x487   :  { %2262 = vmatprep.subr.bf16.mxu1 %v10112_v33  ;;  %v10123_v33 = vld [vmem:[#allocation70_spill] sm:$0xff] }
 0x48a   :  { %2263 = vmatpush2.bf16.msra.mxu1 %v10113_v47  ;;  %v10124_v47 = vld [vmem:[#allocation72_spill] sm:$0xff] }
 0x48b   :  { %2264 = vmatprep.subr.bf16.mxu1 %v10114_v37  ;;  %v10125_v37 = vld [vmem:[#allocation74_spill] sm:$0xff] }
 0x48e   :  { %2265 = vmatpush2.bf16.msra.mxu1 %v10115_v63  ;;  %v10126_v63 = vld [vmem:[#allocation76_spill] sm:$0xff] }
 0x48f   :  { %2266 = vmatprep.subr.bf16.mxu1 %v10116_v10  ;;  %v10127_v10 = vld [vmem:[#allocation78_spill] sm:$0xff] }
 0x492   :  { %2267 = vmatpush2.bf16.msra.mxu1 %v10117_v5  ;;  %v10128_v5 = vld [vmem:[#allocation80_spill] sm:$0xff] }
 0x493   :  { %2268 = vmatprep.subr.bf16.mxu1 %v10118_v17 }
 0x496   :  { %2269 = vmatpush2.bf16.msra.mxu1 %v10119_v25 }
 0x497   :  { %2270 = vmatprep.subr.bf16.mxu1 %v10120_v19 }
 0x49a   :  { %2271 = vmatpush2.bf16.msra.mxu1 %v10121_v62 }
 0x49b   :  { %2272 = vmatprep.subr.bf16.mxu1 %v10122_v43 }
 0x49e   :  { %2273 = vmatpush2.bf16.msra.mxu1 %v10123_v33 }
 0x49f   :  { %2274 = vmatprep.subr.bf16.mxu1 %v10124_v47 }
 0x4a2   :  { %2275 = vmatpush2.bf16.msra.mxu1 %v10125_v37 }
 0x4a3   :  { %2276 = vmatprep.subr.bf16.mxu1 %v10126_v63 }
 0x4a6   :  { %2277 = vmatpush2.bf16.msra.mxu1 %v10127_v10 }
 0x4a7   :  { %2328 = vmatprep.subr.bf16.mxu1 %v10128_v5 }
 0x4a9   :  { %v2067_v17 = vpop.f32.mrf.mxu0 }
 0x4aa   :  { %v2068_v62 = vadd.f32 %v2067_v17, %v8487_v57 }
 0x4ab   :  { %v2069_v25 = vpop.f32.mrf.mxu0 }
 0x4ac   :  { %v2070_v33 = vadd.f32 %v2069_v25, %v8490_v54 }
 0x4ad   :  { %v2071_v50 = vpop.f32.mrf.mxu0 }
 0x4af   :  { %v2072_v19 = vpop.f32.mrf.mxu0 }
 0x4e9   :  { %v2108_v45 = vpop.f32.mrf.mxu1  ;;  %v2149_v43 = vpop.f32.mrf.mxu0 }
 0x4ea   :  { %v2109_v35 = vadd.f32 %v2108_v45, %v2068_v62  ;;  %v10144_v62 = vld [vmem:[#allocation118_spill] sm:$0xff] }
 0x4eb   :  { %v2110_v47 = vpop.f32.mrf.mxu1  ;;  %v2151_v41 = vpop.f32.mrf.mxu0 }
 0x4ec   :  { %v2111_v37 = vadd.f32 %v2110_v47, %v2070_v33  ;;  %v2197_v31 = vmax.f32 %v2109_v35, 0.0  ;;  %v10146_v33 = vld [vmem:[#allocation122_spill] sm:$0xff]  ;;  %v10147_v47 = vld [vmem:[#allocation123_spill] sm:$0xff] }
 0x4ed   :  { %v2112_v63 = vpop.f32.mrf.mxu1  ;;  %v2153_v48 = vpop.f32.mrf.mxu0 }
 0x4ee   :  { %v2198_v10 = vmax.f32 %v2111_v37, 0.0  ;;  %v2201_v42 = vpack.c.bf16 %v2197_v31, %v2197_v31  ;;  %v6876_v37 = vld [vmem:[#allocation12 + $0xa4] ss:$8 sps:$4 sm:$0xff]  }
 0x4ef   :  { %v2113_v46 = vpop.f32.mrf.mxu1  ;;  %v2154_v5 = vpop.f32.mrf.mxu0  ;;  %v10148_v63 = vld [vmem:[#allocation124_spill] sm:$0xff] }
 0x4f0   :  { %v2202_v44 = vpack.c.bf16 %v2198_v10, %v2198_v10  ;;  %v6874_v10 = vld [vmem:[#allocation12 + $0xa0] ss:$8 sps:$4 sm:$0xff]   ;;  %v10149_v5 = vld [vmem:[#allocation125_spill] sm:$0xff] }
 0x4f2   :  { %2237 = vmatprep.mubr.bf16.mxu0 %v2202_v44 }
 0x4f3   :  { %2238 = vmatmul.mubr.bf16.vlgmr.msra.gmra.mxu0 %v2201_v42 }
 0x4f4   :  { %2288 = vmatpush1.bf16.msra.mxu0 %v8226_v49  ;;  %2319 = vmatprep.mubr.bf16.mxu0 %v2202_v44  ;;  %v10129_v49 = vld [vmem:[#allocation99_spill] sm:$0xff]  ;;  %v2152_v44 = vadd.f32 %v2151_v41, %v8524_v23  ;;  %v10143_v41 = vld [vmem:[#allocation116_spill] sm:$0xff] }
 0x4f5   :  { %2289 = vmatprep.subr.bf16.mxu0 %v8234_v60  ;;  %v10130_v60 = vld [vmem:[#allocation101_spill] sm:$0xff] }
 0x4f8   :  { %2290 = vmatpush1.bf16.msra.mxu0 %v8242_v0  ;;  %v10131_v0 = vld [vmem:[#allocation103_spill] sm:$0xff] }
 0x4f9   :  { %2291 = vmatprep.subr.bf16.mxu0 %v8246_v51  ;;  %v10132_v51 = vld [vmem:[#allocation105_spill] sm:$0xff] }
 0x4fc   :  { %2292 = vmatpush1.bf16.msra.mxu0 %v8254_v53  ;;  %v10133_v53 = vld [vmem:[#allocation107_spill] sm:$0xff] }
 0x4fd   :  { %2293 = vmatprep.subr.bf16.mxu0 %v8260_v8  ;;  %v10134_v8 = vld [vmem:[#allocation109_spill] sm:$0xff] }
 0x500   :  { %2294 = vmatpush1.bf16.msra.mxu0 %v8266_v55  ;;  %v10135_v55 = vld [vmem:[#allocation111_spill] sm:$0xff] }
 0x501   :  { %2295 = vmatprep.subr.bf16.mxu0 %v8272_v59  ;;  %v10137_v59 = vld [vmem:[#allocation115_spill] sm:$0xff] }
 0x504   :  { %2296 = vmatpush1.bf16.msra.mxu0 %v8278_v2  ;;  %v10139_v2 = vld [vmem:[#allocation119_spill] sm:$0xff] }
 0x505   :  { %2297 = vmatprep.subr.bf16.mxu0 %v8284_v6 }
 0x508   :  { %2298 = vmatpush1.bf16.msra.mxu0 %v8290_v13  ;;  %v10141_v13 = vld [vmem:[#allocation121_spill] sm:$0xff] }
 0x509   :  { %2299 = vmatprep.subr.bf16.mxu0 %v8296_v58  ;;  %v10136_v58 = vld [vmem:[#allocation113_spill] sm:$0xff] }
 0x50c   :  { %2300 = vmatpush1.bf16.msra.mxu0 %v8302_v1  ;;  %v10138_v1 = vld [vmem:[#allocation117_spill] sm:$0xff] }
 0x50d   :  { %2301 = vmatprep.subr.bf16.mxu0 %v8308_v3  ;;  %v10140_v3 = vld [vmem:[#allocation55_spill] sm:$0xff] }
 0x50e   :  { %v2150_v6 = vadd.f32 %v2149_v43, %v10140_v3  ;;  %v10145_v43 = vld [vmem:[#allocation120_spill] sm:$0xff] }
 0x510   :  { %2302 = vmatpush1.bf16.msra.mxu0 %v10042_v4 }
 0x511   :  { %2303 = vmatprep.subr.bf16.mxu0 %v10129_v49  ;;  %v10150_v49 = vld [vmem:[#allocation126_spill] sm:$0xff] }
 0x514   :  { %2304 = vmatpush2.bf16.msra.mxu0 %v10130_v60  ;;  %v6879_v60 = vld [vmem:[#allocation12 + $0x94] ss:$8 sps:$4 sm:$0xff]  }
 0x515   :  { %2305 = vmatprep.subr.bf16.mxu0 %v10131_v0  ;;  %v6877_v0 = vld [vmem:[#allocation12 + $0x90] ss:$8 sps:$4 sm:$0xff]  }
 0x518   :  { %2306 = vmatpush2.bf16.msra.mxu0 %v10132_v51  ;;  %v6882_v51 = vld [vmem:[#allocation12 + $0x84] ss:$8 sps:$4 sm:$0xff]  }
 0x519   :  { %2307 = vmatprep.subr.bf16.mxu0 %v10133_v53  ;;  %v6880_v53 = vld [vmem:[#allocation12 + $0x80] ss:$8 sps:$4 sm:$0xff]  }
 0x51c   :  { %2308 = vmatpush2.bf16.msra.mxu0 %v10134_v8  ;;  %v6885_v8 = vld [vmem:[#allocation12 + $0x174] ss:$8 sps:$4 sm:$0xff]  }
 0x51d   :  { %2309 = vmatprep.subr.bf16.mxu0 %v10135_v55  ;;  %v6883_v55 = vld [vmem:[#allocation12 + $0x170] ss:$8 sps:$4 sm:$0xff]  }
 0x520   :  { %2310 = vmatpush2.bf16.msra.mxu0 %v10136_v58  ;;  %v6888_v58 = vld [vmem:[%s9549_s11 + $0x4] ss:$8 sps:$4 sm:$0xff]  }
 0x521   :  { %2311 = vmatprep.subr.bf16.mxu0 %v10137_v59  ;;  %v6889_v59 = vld [vmem:[#allocation12 + $0x160] ss:$8 sps:$4 sm:$0xff]  }
 0x524   :  { %2312 = vmatpush2.bf16.msra.mxu0 %v10138_v1  ;;  %v6891_v1 = vld [vmem:[#allocation12 + $0x164] ss:$8 sps:$4 sm:$0xff]  }
 0x525   :  { %2313 = vmatprep.subr.bf16.mxu0 %v10139_v2  ;;  %v6894_v2 = vld [vmem:[#allocation12 + $0x154] ss:$8 sps:$4 sm:$0xff]  }
 0x528   :  { %2314 = vmatpush2.bf16.msra.mxu0 %v10141_v13  ;;  %v6897_v13 = vld [vmem:[#allocation12 + $0x144] ss:$8 sps:$4 sm:$0xff]  }
 0x529   :  { %v2190_v4 = vpop.f32.mrf.mxu1  ;;  %2315 = vmatprep.subr.bf16.mxu0 %v8392_v52  ;;  %v6840_v52 = vld [vmem:[#allocation12 + $0x64] ss:$8 sps:$4 sm:$0xff]  }
 0x52a   :  { %v2191_v46 = vadd.f32 %v2190_v4, %v2150_v6  ;;  %v6892_v6 = vld [vmem:[#allocation12 + $0x150] ss:$8 sps:$4 sm:$0xff]   ;;  %v6895_v4 = vld [vmem:[#allocation12 + $0x140] ss:$8 sps:$4 sm:$0xff]  }
 0x52b   :  { %v2192_v48 = vpop.f32.mrf.mxu1 }
 0x52c   :  { %v2193_v31 = vadd.f32 %v2192_v48, %v2152_v44  ;;  %2316 = vmatpush2.bf16.msra.mxu0 %v8398_v7  ;;  %v2199_v35 = vmax.f32 %v2191_v46, 0.0  ;;  %v6837_v7 = vld [vmem:[#allocation12 + $0x74] ss:$8 sps:$4 sm:$0xff]   ;;  %v6898_v46 = vld [vmem:[#allocation12 + $0x130] ss:$8 sps:$4 sm:$0xff]  }
 0x52d   :  { %v2194_v45 = vpop.f32.mrf.mxu1  ;;  %2317 = vmatprep.subr.bf16.mxu0 %v8404_v61  ;;  %v6835_v61 = vld [vmem:[#allocation12 + $0x70] ss:$8 sps:$4 sm:$0xff]   ;;  %v6900_v44 = vld [vmem:[#allocation12 + $0x134] ss:$8 sps:$4 sm:$0xff]   ;;  %v6903_v48 = vld [vmem:[#allocation12 + $0x124] ss:$8 sps:$4 sm:$0xff]  }
 0x52e   :  { %v2200_v50 = vmax.f32 %v2193_v31, 0.0  ;;  %v8669_v19 = vpack.c.bf16 %v2199_v35, %v2199_v35  ;;  %v6901_v31 = vld [vmem:[#allocation12 + $0x120] ss:$8 sps:$4 sm:$0xff]   ;;  %v6906_v35 = vld [vmem:[#allocation12 + $0x114] ss:$8 sps:$4 sm:$0xff]  }
 0x52f   :  { %v2195_v17 = vpop.f32.mrf.mxu1  ;;  %v6904_v45 = vld [vmem:[#allocation12 + $0x110] ss:$8 sps:$4 sm:$0xff]  }
 0x530   :  { %v2204_v25 = vpack.c.bf16 %v2200_v50, %v2200_v50  ;;  %2318 = vmatpush2.bf16.msra.mxu0 %v8410_v9  ;;  %v6838_v9 = vld [vmem:[#allocation12 + $0x60] ss:$8 sps:$4 sm:$0xff]   ;;  %v6909_v50 = vld [vmem:[#allocation12 + $0x104] ss:$8 sps:$4 sm:$0xff]  }
 0x531   :  { %2773 = vmatprep.subr.bf16.mxu0 %v6837_v7  ;;  %v6907_v17 = vld [vmem:[#allocation12 + $0x100] ss:$8 sps:$4 sm:$0xff]  }
 0x532   :  { %2278 = vmatprep.mubr.bf16.mxu1 %v2204_v25  ;;  %v6913_v7 = vld [vmem:[#allocation12 + $0x1e0] ss:$8 sps:$4 sm:$0xff]  }
 0x533   :  { %2279 = vmatmul.mubr.bf16.vlgmr.msra.gmra.mxu1 %v8669_v19  ;;  %2320 = vmatmul.mubr.bf16.vlgmr.msra.gmra.mxu0 %v2201_v42  ;;  %v6843_v42 = vld [vmem:[#allocation12 + $0x54] ss:$8 sps:$4 sm:$0xff]  }
 0x534   :  { %2329 = vmatpush1.bf16.msra.mxu1 %v10058_v15  ;;  %2360 = vmatprep.mubr.bf16.mxu1 %v2204_v25  ;;  %v6841_v15 = vld [vmem:[#allocation12 + $0x50] ss:$8 sps:$4 sm:$0xff]   ;;  %v6912_v25 = vld [vmem:[#allocation12 + $0x1f4] ss:$8 sps:$4 sm:$0xff]  }
 0x535   :  { %2330 = vmatprep.subr.bf16.mxu1 %v10059_v21  ;;  %2774 = vmatpush1.bf16.msra.mxu0 %v6835_v61  ;;  %v6846_v21 = vld [vmem:[#allocation12 + $0x44] ss:$8 sps:$4 sm:$0xff]  }
 0x536   :  { %2775 = vmatprep.subr.bf16.mxu0 %v6840_v52  ;;  %v6915_v61 = vld [vmem:[#allocation12 + $0x1e4] ss:$8 sps:$4 sm:$0xff]   ;;  %v6918_v52 = vld [vmem:[#allocation12 + $0x1d4] ss:$8 sps:$4 sm:$0xff]  }
 0x538   :  { %2331 = vmatpush1.bf16.msra.mxu1 %v10060_v12  ;;  %v6844_v12 = vld [vmem:[#allocation12 + $0x40] ss:$8 sps:$4 sm:$0xff]  }
 0x539   :  { %2332 = vmatprep.subr.bf16.mxu1 %v10061_v27  ;;  %2776 = vmatpush1.bf16.msra.mxu0 %v6838_v9  ;;  %v6849_v27 = vld [vmem:[#allocation12 + $0x34] ss:$8 sps:$4 sm:$0xff]   ;;  %v6916_v9 = vld [vmem:[#allocation12 + $0x1d0] ss:$8 sps:$4 sm:$0xff]  }
 0x53a   :  { %2777 = vmatprep.subr.bf16.mxu0 %v6843_v42  ;;  %v6921_v42 = vld [vmem:[#allocation12 + $0x1c4] ss:$8 sps:$4 sm:$0xff]  }
 0x53c   :  { %2333 = vmatpush1.bf16.msra.mxu1 %v10062_v56  ;;  %v6847_v56 = vld [vmem:[#allocation12 + $0x30] ss:$8 sps:$4 sm:$0xff]  }
 0x53d   :  { %2334 = vmatprep.subr.bf16.mxu1 %v10063_v39  ;;  %2778 = vmatpush1.bf16.msra.mxu0 %v6841_v15  ;;  %v6852_v39 = vld [vmem:[#allocation12 + $0x24] ss:$8 sps:$4 sm:$0xff]   ;;  %v6919_v15 = vld [vmem:[#allocation12 + $0x1c0] ss:$8 sps:$4 sm:$0xff]  }
 0x53e   :  { %2779 = vmatprep.subr.bf16.mxu0 %v6846_v21  ;;  %v6924_v21 = vld [vmem:[#allocation12 + $0x1b4] ss:$8 sps:$4 sm:$0xff]  }
 0x540   :  { %2335 = vmatpush1.bf16.msra.mxu1 %v10064_v29  ;;  %v6850_v29 = vld [vmem:[#allocation12 + $0x20] ss:$8 sps:$4 sm:$0xff]  }
 0x541   :  { %2336 = vmatprep.subr.bf16.mxu1 %v10065_v11  ;;  %2780 = vmatpush1.bf16.msra.mxu0 %v6844_v12  ;;  %v6855_v11 = vld [vmem:[#allocation12 + $0x14] ss:$8 sps:$4 sm:$0xff]   ;;  %v6922_v12 = vld [vmem:[#allocation12 + $0x1b0] ss:$8 sps:$4 sm:$0xff]  }
 0x542   :  { %2781 = vmatprep.subr.bf16.mxu0 %v6849_v27  ;;  %v6927_v27 = vld [vmem:[#allocation12 + $0x1a4] ss:$8 sps:$4 sm:$0xff]  }
 0x544   :  { %2337 = vmatpush1.bf16.msra.mxu1 %v10066_v14  ;;  %v6853_v14 = vld [vmem:[#allocation12 + $0x10] ss:$8 sps:$4 sm:$0xff]  }
 0x545   :  { %2338 = vmatprep.subr.bf16.mxu1 %v10067_v16  ;;  %2782 = vmatpush1.bf16.msra.mxu0 %v6847_v56  ;;  %v6858_v16 = vld [vmem:[#allocation12 + $0x4] ss:$8 sps:$4 sm:$0xff]   ;;  %v6925_v56 = vld [vmem:[#allocation12 + $0x1a0] ss:$8 sps:$4 sm:$0xff]  }
 0x546   :  { %2783 = vmatprep.subr.bf16.mxu0 %v6852_v39 }
 0x548   :  { %2339 = vmatpush1.bf16.msra.mxu1 %v10068_v18  ;;  %v6856_v18 = vld [vmem:[#allocation12] ss:$8 sps:$4 sm:$0xff]  }
 0x549   :  { %2340 = vmatprep.subr.bf16.mxu1 %v10069_v20  ;;  %2784 = vmatpush1.bf16.msra.mxu0 %v6850_v29  ;;  %v6861_v20 = vld [vmem:[#allocation12 + $0xf4] ss:$8 sps:$4 sm:$0xff]  }
 0x54a   :  { %2785 = vmatprep.subr.bf16.mxu0 %v6855_v11  ;;  %v6930_v29 = vld [vmem:[#allocation12 + $0x194] ss:$8 sps:$4 sm:$0xff]   ;;  %v6928_v11 = vld [vmem:[#allocation12 + $0x190] ss:$8 sps:$4 sm:$0xff]  }
 0x54c   :  { %2341 = vmatpush1.bf16.msra.mxu1 %v10070_v22  ;;  %v6859_v22 = vld [vmem:[#allocation12 + $0xf0] ss:$8 sps:$4 sm:$0xff]  }
 0x54d   :  { %2342 = vmatprep.subr.bf16.mxu1 %v10071_v24  ;;  %2786 = vmatpush1.bf16.msra.mxu0 %v6853_v14  ;;  %v6864_v24 = vld [vmem:[#allocation12 + $0xe4] ss:$8 sps:$4 sm:$0xff]  }
 0x54e   :  { %2787 = vmatprep.subr.bf16.mxu0 %v6858_v16 }
 0x550   :  { %2343 = vmatpush1.bf16.msra.mxu1 %v10072_v26  ;;  %v6862_v26 = vld [vmem:[#allocation12 + $0xe0] ss:$8 sps:$4 sm:$0xff]  }
 0x551   :  { %2344 = vmatprep.subr.bf16.mxu1 %v10073_v28  ;;  %2788 = vmatpush1.bf16.msra.mxu0 %v6856_v18  ;;  %v6867_v28 = vld [vmem:[#allocation12 + $0xd4] ss:$8 sps:$4 sm:$0xff]   ;;  %v6933_v18 = vld [vmem:[#allocation12 + $0x184] ss:$8 sps:$4 sm:$0xff]  }
 0x552   :  { %2789 = vmatprep.subr.bf16.mxu0 %v6861_v20  ;;  %v6931_v20 = vld [vmem:[#allocation12 + $0x180] ss:$8 sps:$4 sm:$0xff]  }
 0x554   :  { %2345 = vmatpush2.bf16.msra.mxu1 %v10074_v30  ;;  %v10142_v30 = vld [vmem:[#allocation114_spill] sm:$0xff] }
 0x555   :  { %2346 = vmatprep.subr.bf16.mxu1 %v10075_v32  ;;  %2790 = vmatpush2.bf16.msra.mxu0 %v6859_v22  ;;  %v6865_v32 = vld [vmem:[#allocation12 + $0xd0] ss:$8 sps:$4 sm:$0xff]  }
 0x556   :  { %2791 = vmatprep.subr.bf16.mxu0 %v6864_v24 }
 0x558   :  { %2347 = vmatpush2.bf16.msra.mxu1 %v10076_v34  ;;  %v6870_v34 = vld [vmem:[#allocation12 + $0xc4] ss:$8 sps:$4 sm:$0xff]  }
 0x559   :  { %2348 = vmatprep.subr.bf16.mxu1 %v10077_v36  ;;  %2792 = vmatpush2.bf16.msra.mxu0 %v6862_v26  ;;  %v6868_v36 = vld [vmem:[#allocation12 + $0xc0] ss:$8 sps:$4 sm:$0xff]  }
 0x55a   :  { %2793 = vmatprep.subr.bf16.mxu0 %v6867_v28 }
 0x55c   :  { %2349 = vmatpush2.bf16.msra.mxu1 %v10078_v38  ;;  %v6873_v38 = vld [vmem:[#allocation12 + $0xb4] ss:$8 sps:$4 sm:$0xff]  }
 0x55d   :  { %2350 = vmatprep.subr.bf16.mxu1 %v10079_v40  ;;  %2794 = vmatpush2.bf16.msra.mxu0 %v6865_v32  ;;  %v6871_v40 = vld [vmem:[#allocation12 + $0xb0] ss:$8 sps:$4 sm:$0xff]  }
 0x55e   :  { %2795 = vmatprep.subr.bf16.mxu0 %v6870_v34 }
 0x560   :  { %2351 = vmatpush2.bf16.msra.mxu1 %v10142_v30 }
 0x561   :  { %2352 = vmatprep.subr.bf16.mxu1 %v10143_v41  ;;  %2796 = vmatpush2.bf16.msra.mxu0 %v6868_v36 }
 0x562   :  { %2797 = vmatprep.subr.bf16.mxu0 %v6873_v38 }
 0x564   :  { %2353 = vmatpush2.bf16.msra.mxu1 %v10144_v62 }
 0x565   :  { %2354 = vmatprep.subr.bf16.mxu1 %v10145_v43  ;;  %2798 = vmatpush2.bf16.msra.mxu0 %v6871_v40 }
 0x566   :  { %2799 = vmatprep.subr.bf16.mxu0 %v6876_v37 }
 0x568   :  { %2355 = vmatpush2.bf16.msra.mxu1 %v10146_v33 }
 0x569   :  { %2356 = vmatprep.subr.bf16.mxu1 %v10147_v47  ;;  %2800 = vmatpush2.bf16.msra.mxu0 %v6874_v10  ;;  %v6936_v10 = vld [vmem:[#allocation16 + $0x74] ss:$8 sps:$4 sm:$0xff]  }
 0x56a   :  { %2801 = vmatprep.subr.bf16.mxu0 %v6879_v60  ;;  %v10152_v60 = vld [vmem:[#allocation32_spill] sm:$0xff] }
 0x56c   :  { %2357 = vmatpush2.bf16.msra.mxu1 %v10148_v63 }
 0x56d   :  { %2358 = vmatprep.subr.bf16.mxu1 %v10149_v5  ;;  %2802 = vmatpush2.bf16.msra.mxu0 %v6877_v0  ;;  %v6934_v5 = vld [vmem:[#allocation16 + $0x70] ss:$8 sps:$4 sm:$0xff]   ;;  %v6937_v0 = vld [vmem:[#allocation16 + $0x60] ss:$8 sps:$4 sm:$0xff]  }
 0x56e   :  { %2803 = vmatprep.subr.bf16.mxu0 %v6882_v51  ;;  %v6942_v51 = vld [vmem:[#allocation16 + $0x54] ss:$8 sps:$4 sm:$0xff]  }
 0x570   :  { %2359 = vmatpush2.bf16.msra.mxu1 %v10150_v49  ;;  %v6939_v49 = vld [vmem:[#allocation16 + $0x64] ss:$8 sps:$4 sm:$0xff]  }
 0x571   :  { %2804 = vmatpush2.bf16.msra.mxu0 %v6880_v53  ;;  %2814 = vmatprep.subr.bf16.mxu1 %v6885_v8  ;;  %v6940_v53 = vld [vmem:[#allocation16 + $0x50] ss:$8 sps:$4 sm:$0xff]   ;;  %v6945_v8 = vld [vmem:[#allocation16 + $0x44] ss:$8 sps:$4 sm:$0xff]  }
 0x572   :  { %2895 = vmatprep.subr.bf16.mxu0 %v6888_v58  ;;  %v6948_v58 = vld [vmem:[#allocation16 + $0x34] ss:$8 sps:$4 sm:$0xff]  }
 0x573   :  { %2361 = vmatmul.mubr.bf16.vlgmr.msra.gmra.mxu1 %v8669_v19  ;;  %v6910_v19 = vld [vmem:[#allocation12 + $0x1f0] ss:$8 sps:$4 sm:$0xff]  }
 0x574   :  { %2815 = vmatpush1.bf16.msra.mxu1 %v6883_v55  ;;  %v6943_v55 = vld [vmem:[#allocation16 + $0x40] ss:$8 sps:$4 sm:$0xff]  }
 0x575   :  { %2816 = vmatprep.subr.bf16.mxu1 %v6891_v1  ;;  %v6951_v1 = vld [vmem:[#allocation16 + $0x24] ss:$8 sps:$4 sm:$0xff]  }
 0x578   :  { %2817 = vmatpush1.bf16.msra.mxu1 %v6889_v59  ;;  %v6946_v59 = vld [vmem:[#allocation16 + $0x30] ss:$8 sps:$4 sm:$0xff]  }
 0x579   :  { %2818 = vmatprep.subr.bf16.mxu1 %v6894_v2  ;;  %v6949_v2 = vld [vmem:[#allocation16 + $0x20] ss:$8 sps:$4 sm:$0xff]  }
 0x57c   :  { %2819 = vmatpush1.bf16.msra.mxu1 %v6892_v6  ;;  %v6954_v6 = vld [vmem:[#allocation16 + $0x14] ss:$8 sps:$4 sm:$0xff]  }
 0x57d   :  { %2820 = vmatprep.subr.bf16.mxu1 %v6897_v13  ;;  %v6952_v13 = vld [vmem:[#allocation16 + $0x10] ss:$8 sps:$4 sm:$0xff]  }
 0x580   :  { %2821 = vmatpush1.bf16.msra.mxu1 %v6895_v4  ;;  %v6957_v4 = vld [vmem:[#allocation16 + $0x4] ss:$8 sps:$4 sm:$0xff]  }
 0x581   :  { %2822 = vmatprep.subr.bf16.mxu1 %v6900_v44  ;;  %v6955_v44 = vld [vmem:[#allocation16] ss:$8 sps:$4 sm:$0xff]  }
 0x584   :  { %2823 = vmatpush1.bf16.msra.mxu1 %v6898_v46  ;;  %v6960_v46 = vld [vmem:[#allocation16 + $0xf4] ss:$8 sps:$4 sm:$0xff]  }
 0x585   :  { %2824 = vmatprep.subr.bf16.mxu1 %v6903_v48  ;;  %v6958_v48 = vld [vmem:[#allocation16 + $0xf0] ss:$8 sps:$4 sm:$0xff]  }
 0x588   :  { %2825 = vmatpush1.bf16.msra.mxu1 %v6901_v31  ;;  %v6963_v31 = vld [vmem:[#allocation16 + $0xe4] ss:$8 sps:$4 sm:$0xff]  }
 0x589   :  { %2826 = vmatprep.subr.bf16.mxu1 %v6906_v35  ;;  %v6961_v35 = vld [vmem:[#allocation16 + $0xe0] ss:$8 sps:$4 sm:$0xff]  }
 0x58c   :  { %2827 = vmatpush1.bf16.msra.mxu1 %v6904_v45  ;;  %v6966_v45 = vld [vmem:[#allocation16 + $0xd4] ss:$8 sps:$4 sm:$0xff]  }
 0x58d   :  { %2828 = vmatprep.subr.bf16.mxu1 %v6909_v50  ;;  %v6964_v50 = vld [vmem:[#allocation16 + $0xd0] ss:$8 sps:$4 sm:$0xff]  }
 0x590   :  { %2829 = vmatpush1.bf16.msra.mxu1 %v6907_v17  ;;  %v6969_v17 = vld [vmem:[#allocation16 + $0xc4] ss:$8 sps:$4 sm:$0xff]  }
 0x591   :  { %2830 = vmatprep.subr.bf16.mxu1 %v6912_v25  ;;  %v6967_v25 = vld [vmem:[#allocation16 + $0xc0] ss:$8 sps:$4 sm:$0xff]  }
 0x594   :  { %2831 = vmatpush2.bf16.msra.mxu1 %v6910_v19 }
 0x595   :  { %2832 = vmatprep.subr.bf16.mxu1 %v6915_v61 }
 0x598   :  { %2833 = vmatpush2.bf16.msra.mxu1 %v6913_v7 }
 0x599   :  { %2834 = vmatprep.subr.bf16.mxu1 %v6918_v52 }
 0x59c   :  { %2835 = vmatpush2.bf16.msra.mxu1 %v6916_v9 }
 0x59d   :  { %2836 = vmatprep.subr.bf16.mxu1 %v6921_v42 }
 0x5a0   :  { %2837 = vmatpush2.bf16.msra.mxu1 %v6919_v15 }
 0x5a1   :  { %2838 = vmatprep.subr.bf16.mxu1 %v6924_v21 }
 0x5a4   :  { %2839 = vmatpush2.bf16.msra.mxu1 %v6922_v12 }
 0x5a5   :  { %2840 = vmatprep.subr.bf16.mxu1 %v6927_v27 }
 0x5a8   :  { %2841 = vmatpush2.bf16.msra.mxu1 %v6925_v56 }
 0x5a9   :  { %2842 = vmatprep.subr.bf16.mxu1 %v6930_v29  ;;  %v6972_v29 = vld [vmem:[#allocation16 + $0xb4] ss:$8 sps:$4 sm:$0xff]  }
 0x5ac   :  { %2843 = vmatpush2.bf16.msra.mxu1 %v6928_v11  ;;  %v6970_v11 = vld [vmem:[#allocation16 + $0xb0] ss:$8 sps:$4 sm:$0xff]  }
 0x5ad   :  { %2844 = vmatprep.subr.bf16.mxu1 %v6933_v18  ;;  %v6981_v18 = vld [vmem:[#allocation16 + $0x84] ss:$8 sps:$4 sm:$0xff]  }
 0x5b0   :  { %2845 = vmatpush2.bf16.msra.mxu1 %v6931_v20  ;;  %v6979_v20 = vld [vmem:[#allocation16 + $0x80] ss:$8 sps:$4 sm:$0xff]  }
 0x5b3   :  { %v2239_v39 = vpop.f32.mrf.mxu0 }
 0x5b4   :  { %v2240_v24 = vadd.f32 %v2239_v39, %v8487_v57  ;;  %v6886_v57 = vld [vmem:[%s9549_s11] ss:$8 sps:$4 sm:$0xff]  }
 0x5b5   :  { %v2241_v14 = vpop.f32.mrf.mxu0 }
 0x5b6   :  { %v2242_v30 = vadd.f32 %v2241_v14, %v8490_v54  ;;  %v10151_v54 = vmov 0   ;;  %v6973_v14 = vld [vmem:[#allocation16 + $0xa0] ss:$8 sps:$4 sm:$0xff]  }
 0x5b7   :  { %v2243_v16 = vpop.f32.mrf.mxu0 }
 0x5b8   :  { %v6976_v16 = vld [vmem:[#allocation16 + $0x90] ss:$8 sps:$4 sm:$0xff]  }
 0x5b9   :  { %v2244_v22 = vpop.f32.mrf.mxu0 }
 0x5ba   :  { %v6982_v22 = vld [vmem:[#allocation19 + $0xe0] ss:$16 sps:$4 sm:$0xff]  }
 0x5f3   :  { %v2280_v26 = vpop.f32.mrf.mxu1  ;;  %v8708_v28 = vpop.f32.mrf.mxu0 }
 0x5f4   :  { %v2281_v32 = vadd.f32 %v2280_v26, %v2240_v24  ;;  %v2322_v19 = vadd.f32 %v8708_v28, %v10140_v3  ;;  %v6975_v3 = vld [vmem:[#allocation16 + $0xa4] ss:$8 sps:$4 sm:$0xff]  }
 0x5f5   :  { %v2282_v41 = vpop.f32.mrf.mxu1  ;;  %v8711_v34 = vpop.f32.mrf.mxu0  ;;  %v6984_v24 = vld [vmem:[#allocation19 + $0xe4] ss:$16 sps:$4 sm:$0xff]   ;;  %v6987_v26 = vld [vmem:[#allocation19 + $0xec] ss:$16 sps:$4 sm:$0xff]  }
 0x5f6   :  { %v2283_v62 = vadd.f32 %v2282_v41, %v2242_v30  ;;  %v2369_v36 = vmax.f32 %v2281_v32, 0.0  ;;  %v2324_v7 = vadd.f32 %v8711_v34, %v8524_v23  ;;  %v6978_v23 = vld [vmem:[#allocation16 + $0x94] ss:$8 sps:$4 sm:$0xff]   ;;  %3581 = vmatprep.subr.bf16.mxu1 %v6984_v24 }
 0x5f7   :  { %v2284_v43 = vpop.f32.mrf.mxu1  ;;  %v2325_v38 = vpop.f32.mrf.mxu0  ;;  %v6990_v28 = vld [vmem:[#allocation19 + $0xc4] ss:$16 sps:$4 sm:$0xff]   ;;  %v6988_v30 = vld [vmem:[#allocation19 + $0xc0] ss:$16 sps:$4 sm:$0xff]   ;;  %v7041_v24 = vld [vmem:[#allocation19 + $0x1cc] ss:$16 sps:$4 sm:$0xff]  }
 0x5f8   :  { %v2370_v33 = vmax.f32 %v2283_v62, 0.0  ;;  %v2373_v63 = vpack.c.bf16 %v2369_v36, %v2369_v36  ;;  %v6996_v32 = vld [vmem:[#allocation19 + $0xa4] ss:$16 sps:$4 sm:$0xff]   ;;  %v6994_v41 = vld [vmem:[#allocation19 + $0xa0] ss:$16 sps:$4 sm:$0xff]  }
 0x5f9   :  { %v2285_v40 = vpop.f32.mrf.mxu1  ;;  %v2326_v47 = vpop.f32.mrf.mxu0  ;;  %v7002_v34 = vld [vmem:[#allocation19 + $0x84] ss:$16 sps:$4 sm:$0xff]   ;;  %v7000_v62 = vld [vmem:[#allocation19 + $0x80] ss:$16 sps:$4 sm:$0xff]  }
 0x5fa   :  { %v2374_v37 = vpack.c.bf16 %v2370_v33, %v2370_v33  ;;  %v7008_v36 = vld [vmem:[#allocation19 + $0x64] ss:$16 sps:$4 sm:$0xff]   ;;  %v7006_v43 = vld [vmem:[#allocation19 + $0x60] ss:$16 sps:$4 sm:$0xff]  }
 0x5fb   :  { %v7014_v38 = vld [vmem:[#allocation19 + $0x44] ss:$16 sps:$4 sm:$0xff]   ;;  %v7012_v33 = vld [vmem:[#allocation19 + $0x40] ss:$16 sps:$4 sm:$0xff]  }
 0x5fc   :  { %2805 = vmatprep.mubr.bf16.mxu0 %v2374_v37  ;;  %v7020_v40 = vld [vmem:[#allocation19 + $0x24] ss:$16 sps:$4 sm:$0xff]   ;;  %v7018_v47 = vld [vmem:[#allocation19 + $0x20] ss:$16 sps:$4 sm:$0xff]  }
 0x5fd   :  { %2806 = vmatmul.mubr.bf16.vlgmr.msra.gmra.mxu0 %v2373_v63  ;;  %v7026_v37 = vld [vmem:[#allocation19 + $0x4] ss:$16 sps:$4 sm:$0xff]  }
 0x5fe   :  { %2896 = vmatpush1.bf16.msra.mxu0 %v6886_v57  ;;  %2913 = vmatprep.mubr.bf16.mxu0 %v10151_v54  ;;  %v7024_v57 = vld [vmem:[#allocation19] ss:$16 sps:$4 sm:$0xff]   ;;  %v7032_v63 = vld [vmem:[#allocation19 + $0x1e4] ss:$16 sps:$4 sm:$0xff]  }
 0x5ff   :  { %3130 = vmatprep.subr.bf16.mxu0 %v6936_v10  ;;  %v7030_v10 = vld [vmem:[#allocation19 + $0x1e0] ss:$16 sps:$4 sm:$0xff]   ;;  %v7038_v54 = vld [vmem:[#allocation19 + $0x1c4] ss:$16 sps:$4 sm:$0xff]  }
 0x605   :  { %6111 = vmatmul.mubr.msk.bf16.vlgmr.msra.gmra.mxu0 %vm277_vm0, %v10152_v60  ;;  %v7042_v60 = vld [vmem:[#allocation19 + $0x1a0] ss:$16 sps:$4 sm:$0xff]  }
 0x606   :  { %3131 = vmatpush1.bf16.msra.mxu0 %v6934_v5  ;;  %v7036_v5 = vld [vmem:[#allocation19 + $0x1c0] ss:$16 sps:$4 sm:$0xff]  }
 0x607   :  { %3132 = vmatprep.subr.bf16.mxu0 %v6939_v49  ;;  %v7044_v49 = vld [vmem:[#allocation19 + $0x1a4] ss:$16 sps:$4 sm:$0xff]  }
 0x60a   :  { %3133 = vmatpush1.bf16.msra.mxu0 %v6937_v0  ;;  %v7050_v0 = vld [vmem:[#allocation19 + $0x184] ss:$16 sps:$4 sm:$0xff]  }
 0x60b   :  { %3134 = vmatprep.subr.bf16.mxu0 %v6942_v51  ;;  %v7048_v51 = vld [vmem:[#allocation19 + $0x180] ss:$16 sps:$4 sm:$0xff]  }
 0x60e   :  { %3135 = vmatpush1.bf16.msra.mxu0 %v6940_v53  ;;  %v7056_v53 = vld [vmem:[#allocation19 + $0x164] ss:$16 sps:$4 sm:$0xff]  }
 0x60f   :  { %3136 = vmatprep.subr.bf16.mxu0 %v6945_v8  ;;  %v7054_v8 = vld [vmem:[#allocation19 + $0x160] ss:$16 sps:$4 sm:$0xff]  }
 0x612   :  { %3137 = vmatpush1.bf16.msra.mxu0 %v6943_v55  ;;  %v7062_v55 = vld [vmem:[#allocation19 + $0x144] ss:$16 sps:$4 sm:$0xff]  }
 0x613   :  { %3138 = vmatprep.subr.bf16.mxu0 %v6948_v58  ;;  %v7060_v58 = vld [vmem:[#allocation19 + $0x140] ss:$16 sps:$4 sm:$0xff]  }
 0x616   :  { %3139 = vmatpush1.bf16.msra.mxu0 %v6946_v59 }
 0x617   :  { %3140 = vmatprep.subr.bf16.mxu0 %v6951_v1 }
 0x61a   :  { %3141 = vmatpush1.bf16.msra.mxu0 %v6949_v2  ;;  %v2859_v2 = vld [vmem:[#allocation15] sm:$0x3] }
 0x61b   :  { %3142 = vmatprep.subr.bf16.mxu0 %v6954_v6 }
 0x61e   :  { %3143 = vmatpush1.bf16.msra.mxu0 %v6952_v13  ;;  %v10153_v13 = vld [vmem:[#allocation33_spill] sm:$0xff] }
 0x61f   :  { %3144 = vmatprep.subr.bf16.mxu0 %v6957_v4  ;;  %v2864_v4 = vrot.slane %v2859_v2, %v10153_v13 }
 0x622   :  { %3145 = vmatpush1.bf16.msra.mxu0 %v6955_v44 }
 0x623   :  { %3146 = vmatprep.subr.bf16.mxu0 %v6960_v46  ;;  %v10154_v46 = vld [vmem:[#allocation34_spill] sm:$0xff] }
 0x626   :  { %3147 = vmatpush2.bf16.msra.mxu0 %v6958_v48  ;;  %v2868_v48 = vrot.slane %v2859_v2, %v10154_v46  ;;  %v8739_v2 = vld [vmem:[#allocation21 + $0x2e4] ss:$16 sps:$4 sm:$0xff]  }
 0x627   :  { %3148 = vmatprep.subr.bf16.mxu0 %v6963_v31  ;;  %10157 = vst [vmem:[#allocation61_spill] sm:$0xff] %v8739_v2 }
 0x62a   :  { %3149 = vmatpush2.bf16.msra.mxu0 %v6961_v35 }
 0x62b   :  { %3150 = vmatprep.subr.bf16.mxu0 %v6966_v45 }
 0x62e   :  { %3151 = vmatpush2.bf16.msra.mxu0 %v6964_v50 }
 0x62f   :  { %3152 = vmatprep.subr.bf16.mxu0 %v6969_v17 }
 0x632   :  { %3153 = vmatpush2.bf16.msra.mxu0 %v6967_v25 }
 0x633   :  { %v2362_v61 = vpop.f32.mrf.mxu1  ;;  %3154 = vmatprep.subr.bf16.mxu0 %v6972_v29  ;;  %v7009_v29 = vld [vmem:[#allocation19 + $0x68] ss:$16 sps:$4 sm:$0xff]  }
 0x634   :  { %v2363_v52 = vadd.f32 %v2362_v61, %v2322_v19 }
 0x635   :  { %v2364_v9 = vpop.f32.mrf.mxu1 }
 0x636   :  { %v2365_v42 = vadd.f32 %v2364_v9, %v2324_v7  ;;  %v2371_v15 = vmax.f32 %v2363_v52, 0.0  ;;  %3155 = vmatpush2.bf16.msra.mxu0 %v6970_v11  ;;  %v6985_v52 = vld [vmem:[#allocation19 + $0xe8] ss:$16 sps:$4 sm:$0xff]   ;;  %v7017_v11 = vld [vmem:[#allocation19 + $0x4c] ss:$16 sps:$4 sm:$0xff]  }
 0x637   :  { %v2366_v21 = vpop.f32.mrf.mxu1  ;;  %3156 = vmatprep.subr.bf16.mxu0 %v6975_v3  ;;  %v7015_v3 = vld [vmem:[#allocation19 + $0x48] ss:$16 sps:$4 sm:$0xff]  }
 0x638   :  { %v2372_v12 = vmax.f32 %v2365_v42, 0.0  ;;  %v2375_v39 = vpack.c.bf16 %v2371_v15, %v2371_v15  ;;  %v6993_v42 = vld [vmem:[#allocation19 + $0xcc] ss:$16 sps:$4 sm:$0xff]   ;;  %v6991_v15 = vld [vmem:[#allocation19 + $0xc8] ss:$16 sps:$4 sm:$0xff]  }
 0x639   :  { %v2367_v27 = vpop.f32.mrf.mxu1  ;;  %v6999_v21 = vld [vmem:[#allocation19 + $0xac] ss:$16 sps:$4 sm:$0xff]  }
 0x63a   :  { %v2376_v56 = vpack.c.bf16 %v2372_v12, %v2372_v12  ;;  %3157 = vmatpush2.bf16.msra.mxu0 %v6973_v14  ;;  %v6997_v12 = vld [vmem:[#allocation19 + $0xa8] ss:$16 sps:$4 sm:$0xff]   ;;  %v7005_v27 = vld [vmem:[#allocation19 + $0x8c] ss:$16 sps:$4 sm:$0xff]  }
 0x63b   :  { %3158 = vmatprep.subr.bf16.mxu0 %v6978_v23  ;;  %v7023_v14 = vld [vmem:[#allocation19 + $0x2c] ss:$16 sps:$4 sm:$0xff]   ;;  %v7021_v23 = vld [vmem:[#allocation19 + $0x28] ss:$16 sps:$4 sm:$0xff]  }
 0x63c   :  { %2846 = vmatprep.mubr.bf16.mxu1 %v2376_v56  ;;  %v7003_v56 = vld [vmem:[#allocation19 + $0x88] ss:$16 sps:$4 sm:$0xff]  }
 0x63d   :  { %2847 = vmatmul.mubr.bf16.vlgmr.msra.gmra.mxu1 %v2375_v39  ;;  %v7011_v39 = vld [vmem:[#allocation19 + $0x6c] ss:$16 sps:$4 sm:$0xff]  }
 0x63e   :  { %3159 = vmatpush2.bf16.msra.mxu0 %v6976_v16  ;;  %3582 = vmatpush1.bf16.msra.mxu1 %v6982_v22  ;;  %v7029_v16 = vld [vmem:[#allocation19 + $0xc] ss:$16 sps:$4 sm:$0xff]   ;;  %v7033_v22 = vld [vmem:[#allocation19 + $0x1e8] ss:$16 sps:$4 sm:$0xff]  }
 0x63f   :  { %3160 = vmatprep.subr.bf16.mxu0 %v6981_v18  ;;  %3583 = vmatprep.subr.bf16.mxu1 %v6990_v28  ;;  %v7027_v18 = vld [vmem:[#allocation19 + $0x8] ss:$16 sps:$4 sm:$0xff]   ;;  %v7047_v28 = vld [vmem:[#allocation19 + $0x1ac] ss:$16 sps:$4 sm:$0xff]  }
 0x642   :  { %3161 = vmatpush2.bf16.msra.mxu0 %v6979_v20  ;;  %3584 = vmatpush1.bf16.msra.mxu1 %v6988_v30  ;;  %v7035_v20 = vld [vmem:[#allocation19 + $0x1ec] ss:$16 sps:$4 sm:$0xff]   ;;  %v7045_v30 = vld [vmem:[#allocation19 + $0x1a8] ss:$16 sps:$4 sm:$0xff]  }
 0x643   :  { %3622 = vmatprep.subr.bf16.mxu0 %v6987_v26  ;;  %3585 = vmatprep.subr.bf16.mxu1 %v6996_v32  ;;  %v7039_v26 = vld [vmem:[#allocation19 + $0x1c8] ss:$16 sps:$4 sm:$0xff]  }
 0x644   :  { %v2441_v32 = vld [vmem:[#allocation13] sm:$0x3] }
 0x646   :  { %3586 = vmatpush1.bf16.msra.mxu1 %v6994_v41  ;;  %v7053_v41 = vld [vmem:[#allocation19 + $0x18c] ss:$16 sps:$4 sm:$0xff]  }
 0x647   :  { %3587 = vmatprep.subr.bf16.mxu1 %v7002_v34  ;;  %v2446_v34 = vrot.slane %v2441_v32, %v10153_v13 }
 0x64a   :  { %3588 = vmatpush1.bf16.msra.mxu1 %v7000_v62  ;;  %v7051_v62 = vld [vmem:[#allocation19 + $0x188] ss:$16 sps:$4 sm:$0xff]  }
 0x64b   :  { %3589 = vmatprep.subr.bf16.mxu1 %v7008_v36  ;;  %v7059_v36 = vld [vmem:[#allocation19 + $0x16c] ss:$16 sps:$4 sm:$0xff]  }
 0x64e   :  { %3590 = vmatpush1.bf16.msra.mxu1 %v7006_v43  ;;  %v2450_v43 = vrot.slane %v2441_v32, %v10154_v46  ;;  %v8809_v32 = vld [vmem:[#allocation21 + $0x24] ss:$16 sps:$4 sm:$0xff]  }
 0x64f   :  { %3591 = vmatprep.subr.bf16.mxu1 %v7014_v38 }
 0x652   :  { %3592 = vmatpush1.bf16.msra.mxu1 %v7012_v33  ;;  %v7057_v33 = vld [vmem:[#allocation19 + $0x168] ss:$16 sps:$4 sm:$0xff]  }
 0x653   :  { %3593 = vmatprep.subr.bf16.mxu1 %v7020_v40 }
 0x656   :  { %3594 = vmatpush1.bf16.msra.mxu1 %v7018_v47  ;;  %v7065_v47 = vld [vmem:[#allocation19 + $0x14c] ss:$16 sps:$4 sm:$0xff]  }
 0x657   :  { %3595 = vmatprep.subr.bf16.mxu1 %v7026_v37 }
 0x65a   :  { %3596 = vmatpush1.bf16.msra.mxu1 %v7024_v57 }
 0x65b   :  { %3597 = vmatprep.subr.bf16.mxu1 %v7032_v63 }
 0x65e   :  { %3598 = vmatpush2.bf16.msra.mxu1 %v7030_v10 }
 0x65f   :  { %3599 = vmatprep.subr.bf16.mxu1 %v7038_v54  ;;  %v7063_v54 = vld [vmem:[#allocation19 + $0x148] ss:$16 sps:$4 sm:$0xff]  }
 0x662   :  { %3600 = vmatpush2.bf16.msra.mxu1 %v7036_v5 }
 0x663   :  { %3601 = vmatprep.subr.bf16.mxu1 %v7044_v49 }
 0x666   :  { %3602 = vmatpush2.bf16.msra.mxu1 %v7042_v60  ;;  %v7068_v60 = vld [vmem:[#allocation19 + $0x124] ss:$16 sps:$4 sm:$0xff]  }
 0x667   :  { %3603 = vmatprep.subr.bf16.mxu1 %v7050_v0  ;;  %v7071_v0 = vld [vmem:[#allocation19 + $0x12c] ss:$16 sps:$4 sm:$0xff]  }
 0x66a   :  { %3604 = vmatpush2.bf16.msra.mxu1 %v7048_v51  ;;  %v7066_v51 = vld [vmem:[#allocation19 + $0x120] ss:$16 sps:$4 sm:$0xff]  }
 0x66b   :  { %3605 = vmatprep.subr.bf16.mxu1 %v7056_v53  ;;  %v7069_v53 = vld [vmem:[#allocation19 + $0x128] ss:$16 sps:$4 sm:$0xff]  }
 0x66e   :  { %3606 = vmatpush2.bf16.msra.mxu1 %v7054_v8  ;;  %v7074_v8 = vld [vmem:[#allocation19 + $0x104] ss:$16 sps:$4 sm:$0xff]  }
 0x66f   :  { %3607 = vmatprep.subr.bf16.mxu1 %v7062_v55  ;;  %v7077_v55 = vld [vmem:[#allocation19 + $0x10c] ss:$16 sps:$4 sm:$0xff]  }
 0x672   :  { %3608 = vmatpush2.bf16.msra.mxu1 %v7060_v58  ;;  %v7072_v58 = vld [vmem:[#allocation19 + $0x100] ss:$16 sps:$4 sm:$0xff]  }
 0x673   :  { %3609 = vmatprep.subr.bf16.mxu1 %v7068_v60  ;;  %v8853_v60 = vld [vmem:[#allocation21 + $0x3c0] ss:$16 sps:$4 sm:$0xff]  }
 0x674   :  { %10176 = vst [vmem:[#allocation100_spill] sm:$0xff] %v8853_v60 }
 0x676   :  { %3610 = vmatpush2.bf16.msra.mxu1 %v7066_v51  ;;  %v8859_v51 = vld [vmem:[#allocation21 + $0x3a4] ss:$16 sps:$4 sm:$0xff]  }
 0x677   :  { %3611 = vmatprep.subr.bf16.mxu1 %v7074_v8  ;;  %10178 = vst [vmem:[#allocation104_spill] sm:$0xff] %v8859_v51  ;;  %v8865_v8 = vld [vmem:[#allocation21 + $0x3a0] ss:$16 sps:$4 sm:$0xff]  }
 0x678   :  { %10180 = vst [vmem:[#allocation108_spill] sm:$0xff] %v8865_v8 }
 0x67a   :  { %3612 = vmatpush2.bf16.msra.mxu1 %v7072_v58  ;;  %v8871_v58 = vld [vmem:[#allocation21 + $0x384] ss:$16 sps:$4 sm:$0xff]  }
 0x67b   :  { %10182 = vst [vmem:[#allocation112_spill] sm:$0xff] %v8871_v58 }
 0x6bd   :  { %v8723_v59 = vpop.f32.mrf.mxu0 }
 0x6be   :  { %v2808_v38 = vadd.f32 %v8723_v59, %v2446_v34  ;;  %v7075_v59 = vld [vmem:[#allocation19 + $0x108] ss:$16 sps:$4 sm:$0xff]   ;;  %v8815_v34 = vld [vmem:[#allocation21 + $0x20] ss:$16 sps:$4 sm:$0xff]  }
 0x6bf   :  { %v8725_v1 = vpop.f32.mrf.mxu0 }
 0x6c0   :  { %v2810_v37 = vadd.f32 %v8725_v1, %v2450_v43  ;;  %v8737_v1 = vld [vmem:[#allocation21 + $0xe4] ss:$16 sps:$4 sm:$0xff]  }
 0x6c1   :  { %v2811_v6 = vpop.f32.mrf.mxu0  ;;  %4461 = vmatprep.subr.bf16.mxu1 %v8737_v1  ;;  %v8823_v43 = vld [vmem:[#allocation21 + $0x204] ss:$16 sps:$4 sm:$0xff]  }
 0x6c2   :  { %v2958_v6 = vld [vmem:[#allocation18] sm:$0x3]  ;;  %10171 = vst [vmem:[#allocation93_spill] sm:$0xff] %v8823_v43 }
 0x6c3   :  { %v2812_v44 = vpop.f32.mrf.mxu0 }
 0x6c4   :  { %v2967_v44 = vrot.slane %v2958_v6, %v10154_v46 }
 0x6c5   :  { %v2915_v31 = vpop.f32.mrf.mxu0 }
 0x6c6   :  { %v2916_v35 = vadd.f32 %v2915_v31, %v2864_v4  ;;  %v2963_v4 = vrot.slane %v2958_v6, %v10153_v13  ;;  %v8877_v6 = vld [vmem:[#allocation21 + $0x380] ss:$16 sps:$4 sm:$0xff]  }
 0x6c7   :  { %v2917_v45 = vpop.f32.mrf.mxu0  ;;  %10184 = vst [vmem:[#allocation69_spill] sm:$0xff] %v8877_v6 }
 0x6c8   :  { %v2918_v50 = vadd.f32 %v2917_v45, %v2868_v48  ;;  %v2922_v17 = vmax.f32 %v2916_v35, 0.0 }
 0x6c9   :  { %v2919_v25 = vpop.f32.mrf.mxu0 }
 0x6ca   :  { %v2923_v19 = vmax.f32 %v2918_v50, 0.0  ;;  %v2924_v9 = vpack.c.bf16 %v2922_v17, %v2922_v17 }
 0x6cb   :  { %v2920_v61 = vpop.f32.mrf.mxu0 }
 0x6cc   :  { %v2925_v7 = vpack.c.bf16 %v2923_v19, %v2923_v19 }
 0x6ce   :  { %3162 = vmatprep.mubr.bf16.mxu0 %v2925_v7  ;;  %v8745_v7 = vld [vmem:[#allocation21 + $0xe0] ss:$16 sps:$4 sm:$0xff]  }
 0x6cf   :  { %3163 = vmatmul.mubr.bf16.vlgmr.msra.gmra.mxu0 %v2924_v9 }
 0x6d0   :  { %3623 = vmatpush1.bf16.msra.mxu0 %v6985_v52  ;;  %v8747_v52 = vld [vmem:[#allocation21 + $0x2e0] ss:$16 sps:$4 sm:$0xff]  }
 0x6d1   :  { %3624 = vmatprep.subr.bf16.mxu0 %v6993_v42  ;;  %10158 = vst [vmem:[#allocation63_spill] sm:$0xff] %v8747_v52  ;;  %v8749_v42 = vld [vmem:[#allocation21 + $0xc4] ss:$16 sps:$4 sm:$0xff]  }
 0x6d4   :  { %3625 = vmatpush1.bf16.msra.mxu0 %v6991_v15  ;;  %v8751_v15 = vld [vmem:[#allocation21 + $0x2c4] ss:$16 sps:$4 sm:$0xff]  }
 0x6d5   :  { %3626 = vmatprep.subr.bf16.mxu0 %v6999_v21  ;;  %10159 = vst [vmem:[#allocation65_spill] sm:$0xff] %v8751_v15  ;;  %v8755_v21 = vld [vmem:[#allocation21 + $0xc0] ss:$16 sps:$4 sm:$0xff]  }
 0x6d8   :  { %3627 = vmatpush1.bf16.msra.mxu0 %v6997_v12  ;;  %v8757_v12 = vld [vmem:[#allocation21 + $0x2c0] ss:$16 sps:$4 sm:$0xff]  }
 0x6d9   :  { %3628 = vmatprep.subr.bf16.mxu0 %v7005_v27  ;;  %10160 = vst [vmem:[#allocation97_spill] sm:$0xff] %v8757_v12  ;;  %v8761_v27 = vld [vmem:[#allocation21 + $0xa4] ss:$16 sps:$4 sm:$0xff]  }
 0x6dc   :  { %3629 = vmatpush1.bf16.msra.mxu0 %v7003_v56  ;;  %v8763_v56 = vld [vmem:[#allocation21 + $0x2a4] ss:$16 sps:$4 sm:$0xff]  }
 0x6dd   :  { %3630 = vmatprep.subr.bf16.mxu0 %v7011_v39  ;;  %10161 = vst [vmem:[#allocation83_spill] sm:$0xff] %v8763_v56  ;;  %v8767_v39 = vld [vmem:[#allocation21 + $0xa0] ss:$16 sps:$4 sm:$0xff]  }
 0x6e0   :  { %3631 = vmatpush1.bf16.msra.mxu0 %v7009_v29  ;;  %v8769_v29 = vld [vmem:[#allocation21 + $0x2a0] ss:$16 sps:$4 sm:$0xff]  }
 0x6e1   :  { %3632 = vmatprep.subr.bf16.mxu0 %v7017_v11  ;;  %10162 = vst [vmem:[#allocation84_spill] sm:$0xff] %v8769_v29  ;;  %v8773_v11 = vld [vmem:[#allocation21 + $0x84] ss:$16 sps:$4 sm:$0xff]  }
 0x6e4   :  { %3633 = vmatpush1.bf16.msra.mxu0 %v7015_v3  ;;  %v8775_v3 = vld [vmem:[#allocation21 + $0x284] ss:$16 sps:$4 sm:$0xff]  }
 0x6e5   :  { %3634 = vmatprep.subr.bf16.mxu0 %v7023_v14  ;;  %10163 = vst [vmem:[#allocation85_spill] sm:$0xff] %v8775_v3  ;;  %v8779_v14 = vld [vmem:[#allocation21 + $0x80] ss:$16 sps:$4 sm:$0xff]  }
 0x6e8   :  { %3635 = vmatpush1.bf16.msra.mxu0 %v7021_v23  ;;  %v8781_v23 = vld [vmem:[#allocation21 + $0x280] ss:$16 sps:$4 sm:$0xff]  }
 0x6e9   :  { %3636 = vmatprep.subr.bf16.mxu0 %v7029_v16  ;;  %10164 = vst [vmem:[#allocation86_spill] sm:$0xff] %v8781_v23  ;;  %v8785_v16 = vld [vmem:[#allocation21 + $0x64] ss:$16 sps:$4 sm:$0xff]  }
 0x6ec   :  { %3637 = vmatpush1.bf16.msra.mxu0 %v7027_v18  ;;  %v8787_v18 = vld [vmem:[#allocation21 + $0x264] ss:$16 sps:$4 sm:$0xff]  }
 0x6ed   :  { %3638 = vmatprep.subr.bf16.mxu0 %v7035_v20  ;;  %10165 = vst [vmem:[#allocation87_spill] sm:$0xff] %v8787_v18  ;;  %v8791_v20 = vld [vmem:[#allocation21 + $0x60] ss:$16 sps:$4 sm:$0xff]  }
 0x6f0   :  { %3639 = vmatpush2.bf16.msra.mxu0 %v7033_v22  ;;  %v8793_v22 = vld [vmem:[#allocation21 + $0x260] ss:$16 sps:$4 sm:$0xff]  }
 0x6f1   :  { %3640 = vmatprep.subr.bf16.mxu0 %v7041_v24  ;;  %10166 = vst [vmem:[#allocation88_spill] sm:$0xff] %v8793_v22  ;;  %v8797_v24 = vld [vmem:[#allocation21 + $0x44] ss:$16 sps:$4 sm:$0xff]  }
 0x6f4   :  { %3641 = vmatpush2.bf16.msra.mxu0 %v7039_v26  ;;  %v8799_v26 = vld [vmem:[#allocation21 + $0x244] ss:$16 sps:$4 sm:$0xff]  }
 0x6f5   :  { %3642 = vmatprep.subr.bf16.mxu0 %v7047_v28  ;;  %10167 = vst [vmem:[#allocation89_spill] sm:$0xff] %v8799_v26  ;;  %v8803_v28 = vld [vmem:[#allocation21 + $0x40] ss:$16 sps:$4 sm:$0xff]  }
 0x6f8   :  { %3643 = vmatpush2.bf16.msra.mxu0 %v7045_v30  ;;  %v8805_v30 = vld [vmem:[#allocation21 + $0x240] ss:$16 sps:$4 sm:$0xff]  }
 0x6f9   :  { %3644 = vmatprep.subr.bf16.mxu0 %v7053_v41  ;;  %10168 = vst [vmem:[#allocation90_spill] sm:$0xff] %v8805_v30  ;;  %v8811_v41 = vld [vmem:[#allocation21 + $0x224] ss:$16 sps:$4 sm:$0xff]  }
 0x6fa   :  { %10169 = vst [vmem:[#allocation91_spill] sm:$0xff] %v8811_v41 }
 0x6fc   :  { %3645 = vmatpush2.bf16.msra.mxu0 %v7051_v62  ;;  %v8817_v62 = vld [vmem:[#allocation21 + $0x220] ss:$16 sps:$4 sm:$0xff]  }
 0x6fd   :  { %v2848_v40 = vpop.f32.mrf.mxu1  ;;  %3646 = vmatprep.subr.bf16.mxu0 %v7059_v36  ;;  %10170 = vst [vmem:[#allocation92_spill] sm:$0xff] %v8817_v62  ;;  %v8821_v36 = vld [vmem:[#allocation21 + $0x4] ss:$16 sps:$4 sm:$0xff]  }
 0x6fe   :  { %v8733_v57 = vadd.f32 %v2848_v40, %v2808_v38  ;;  %v8827_v38 = vld [vmem:[#allocation21] ss:$16 sps:$4 sm:$0xff]   ;;  %v8833_v40 = vld [vmem:[#allocation21 + $0x1e4] ss:$16 sps:$4 sm:$0xff]  }
 0x6ff   :  { %v2850_v63 = vpop.f32.mrf.mxu1 }
 0x700   :  { %10155 = vst [vmem:[#allocation57_spill] sm:$0xff] %v8733_v57  ;;  %v8735_v10 = vadd.f32 %v2850_v63, %v2810_v37  ;;  %3647 = vmatpush2.bf16.msra.mxu0 %v7057_v33  ;;  %v8829_v33 = vld [vmem:[#allocation21 + $0x200] ss:$16 sps:$4 sm:$0xff]   ;;  %v8919_v57 = vld [vmem:[#allocation21 + $0x104] ss:$16 sps:$4 sm:$0xff]  }
 0x701   :  { %v2852_v5 = vpop.f32.mrf.mxu1  ;;  %3648 = vmatprep.subr.bf16.mxu0 %v7065_v47  ;;  %10172 = vst [vmem:[#allocation94_spill] sm:$0xff] %v8829_v33  ;;  %v8835_v47 = vld [vmem:[#allocation21 + $0x3e4] ss:$16 sps:$4 sm:$0xff]   ;;  %v8839_v37 = vld [vmem:[#allocation21 + $0x1e0] ss:$16 sps:$4 sm:$0xff]   ;;  %10197 = vst [vmem:[#allocation42_spill] sm:$0xff] %v8919_v57 }
 0x702   :  { %10156 = vst [vmem:[#allocation59_spill] sm:$0xff] %v8735_v10  ;;  %10173 = vst [vmem:[#allocation95_spill] sm:$0xff] %v8835_v47  ;;  %v8841_v63 = vld [vmem:[#allocation21 + $0x3e0] ss:$16 sps:$4 sm:$0xff]   ;;  %v8847_v5 = vld [vmem:[#allocation21 + $0x3c4] ss:$16 sps:$4 sm:$0xff]  }
 0x703   :  { %v2853_v49 = vpop.f32.mrf.mxu1  ;;  %10174 = vst [vmem:[#allocation96_spill] sm:$0xff] %v8841_v63  ;;  %10175 = vst [vmem:[#allocation98_spill] sm:$0xff] %v8847_v5  ;;  %v8921_v10 = vld [vmem:[#allocation21 + $0x304] ss:$16 sps:$4 sm:$0xff]  }
 0x704   :  { %3649 = vmatpush2.bf16.msra.mxu0 %v7063_v54  ;;  %v8845_v54 = vld [vmem:[#allocation21 + $0x1c4] ss:$16 sps:$4 sm:$0xff]   ;;  %v8851_v49 = vld [vmem:[#allocation21 + $0x1c0] ss:$16 sps:$4 sm:$0xff]   ;;  %10198 = vst [vmem:[#allocation43_spill] sm:$0xff] %v8921_v10 }
 0x705   :  { %3650 = vmatprep.subr.bf16.mxu0 %v7071_v0  ;;  %v8857_v0 = vld [vmem:[#allocation21 + $0x1a4] ss:$16 sps:$4 sm:$0xff]  }
 0x706   :  { %10177 = vst [vmem:[#allocation102_spill] sm:$0xff] %v8857_v0 }
 0x708   :  { %3651 = vmatpush2.bf16.msra.mxu0 %v7069_v53  ;;  %v8863_v53 = vld [vmem:[#allocation21 + $0x1a0] ss:$16 sps:$4 sm:$0xff]  }
 0x709   :  { %3652 = vmatprep.subr.bf16.mxu0 %v7077_v55  ;;  %10179 = vst [vmem:[#allocation106_spill] sm:$0xff] %v8863_v53  ;;  %v8869_v55 = vld [vmem:[#allocation21 + $0x184] ss:$16 sps:$4 sm:$0xff]  }
 0x70a   :  { %10181 = vst [vmem:[#allocation110_spill] sm:$0xff] %v8869_v55 }
 0x70c   :  { %3653 = vmatpush2.bf16.msra.mxu0 %v7075_v59  ;;  %v8875_v59 = vld [vmem:[#allocation21 + $0x180] ss:$16 sps:$4 sm:$0xff]  }
 0x70d   :  { %4502 = vmatprep.subr.bf16.mxu0 %v8739_v2  ;;  %10183 = vst [vmem:[#allocation67_spill] sm:$0xff] %v8875_v59 }
 0x78f   :  { %v3164_v48 = vpop.f32.mrf.mxu0 }
 0x790   :  { %v3165_v31 = vadd.f32 %v3164_v48, %v2963_v4  ;;  %v8881_v4 = vld [vmem:[#allocation21 + $0x164] ss:$16 sps:$4 sm:$0xff]   ;;  %v8887_v48 = vld [vmem:[#allocation21 + $0x160] ss:$16 sps:$4 sm:$0xff]  }
 0x791   :  { %v3166_v35 = vpop.f32.mrf.mxu0  ;;  %10185 = vst [vmem:[#allocation71_spill] sm:$0xff] %v8881_v4  ;;  %10187 = vst [vmem:[#allocation75_spill] sm:$0xff] %v8887_v48 }
 0x792   :  { %v3167_v45 = vadd.f32 %v3166_v35, %v2967_v44  ;;  %v3171_v50 = vmax.f32 %v3165_v31, 0.0  ;;  %v8883_v44 = vld [vmem:[#allocation21 + $0x364] ss:$16 sps:$4 sm:$0xff]   ;;  %v8889_v31 = vld [vmem:[#allocation21 + $0x360] ss:$16 sps:$4 sm:$0xff]  }
 0x793   :  { %v3168_v17 = vpop.f32.mrf.mxu0  ;;  %10186 = vst [vmem:[#allocation73_spill] sm:$0xff] %v8883_v44  ;;  %10188 = vst [vmem:[#allocation77_spill] sm:$0xff] %v8889_v31  ;;  %v8893_v35 = vld [vmem:[#allocation21 + $0x144] ss:$16 sps:$4 sm:$0xff]  }
 0x794   :  { %v3172_v25 = vmax.f32 %v3167_v45, 0.0  ;;  %v3173_v9 = vpack.c.bf16 %v3171_v50, %v3171_v50  ;;  %10189 = vst [vmem:[#allocation35_spill] sm:$0xff] %v8893_v35  ;;  %v8895_v45 = vld [vmem:[#allocation21 + $0x344] ss:$16 sps:$4 sm:$0xff]   ;;  %v8899_v50 = vld [vmem:[#allocation21 + $0x140] ss:$16 sps:$4 sm:$0xff]  }
 0x795   :  { %v3169_v19 = vpop.f32.mrf.mxu0  ;;  %10190 = vst [vmem:[#allocation79_spill] sm:$0xff] %v8895_v45  ;;  %10191 = vst [vmem:[#allocation36_spill] sm:$0xff] %v8899_v50  ;;  %v8901_v17 = vld [vmem:[#allocation21 + $0x340] ss:$16 sps:$4 sm:$0xff]  }
 0x796   :  { %v3174_v61 = vpack.c.bf16 %v3172_v25, %v3172_v25  ;;  %10192 = vst [vmem:[#allocation37_spill] sm:$0xff] %v8901_v17  ;;  %v8907_v25 = vld [vmem:[#allocation21 + $0x124] ss:$16 sps:$4 sm:$0xff]  }
 0x797   :  { %10193 = vst [vmem:[#allocation38_spill] sm:$0xff] %v8907_v25  ;;  %v8909_v19 = vld [vmem:[#allocation21 + $0x324] ss:$16 sps:$4 sm:$0xff]  }
 0x798   :  { %3613 = vmatprep.mubr.bf16.mxu1 %v3174_v61  ;;  %3654 = vmatprep.mubr.bf16.mxu0 %v3174_v61  ;;  %10194 = vst [vmem:[#allocation39_spill] sm:$0xff] %v8909_v19  ;;  %v8911_v61 = vld [vmem:[#allocation21 + $0x120] ss:$16 sps:$4 sm:$0xff]  }
 0x799   :  { %3614 = vmatmul.mubr.bf16.vlgmr.msra.gmra.mxu1 %v3173_v9  ;;  %3655 = vmatmul.mubr.bf16.vlgmr.msra.gmra.mxu0 %v3173_v9  ;;  %10195 = vst [vmem:[#allocation40_spill] sm:$0xff] %v8911_v61  ;;  %v8913_v9 = vld [vmem:[#allocation21 + $0x320] ss:$16 sps:$4 sm:$0xff]  }
 0x79a   :  { %4462 = vmatpush1.bf16.msra.mxu1 %v8745_v7  ;;  %4503 = vmatpush1.bf16.msra.mxu0 %v8747_v52  ;;  %10196 = vst [vmem:[#allocation41_spill] sm:$0xff] %v8913_v9 }
 0x79b   :  { %4463 = vmatprep.subr.bf16.mxu1 %v8749_v42  ;;  %4504 = vmatprep.subr.bf16.mxu0 %v8751_v15 }
 0x79e   :  { %4464 = vmatpush1.bf16.msra.mxu1 %v8755_v21  ;;  %4505 = vmatpush1.bf16.msra.mxu0 %v8757_v12 }
 0x79f   :  { %4465 = vmatprep.subr.bf16.mxu1 %v8761_v27  ;;  %4506 = vmatprep.subr.bf16.mxu0 %v8763_v56 }
 0x7a2   :  { %4466 = vmatpush1.bf16.msra.mxu1 %v8767_v39  ;;  %4507 = vmatpush1.bf16.msra.mxu0 %v8769_v29 }
 0x7a3   :  { %4467 = vmatprep.subr.bf16.mxu1 %v8773_v11  ;;  %4508 = vmatprep.subr.bf16.mxu0 %v8775_v3 }
 0x7a6   :  { %4468 = vmatpush1.bf16.msra.mxu1 %v8779_v14  ;;  %4509 = vmatpush1.bf16.msra.mxu0 %v8781_v23 }
 0x7a7   :  { %4469 = vmatprep.subr.bf16.mxu1 %v8785_v16  ;;  %4510 = vmatprep.subr.bf16.mxu0 %v8787_v18 }
 0x7aa   :  { %4470 = vmatpush1.bf16.msra.mxu1 %v8791_v20  ;;  %4511 = vmatpush1.bf16.msra.mxu0 %v8793_v22 }
 0x7ab   :  { %4471 = vmatprep.subr.bf16.mxu1 %v8797_v24  ;;  %4512 = vmatprep.subr.bf16.mxu0 %v8799_v26 }
 0x7ae   :  { %4472 = vmatpush1.bf16.msra.mxu1 %v8803_v28  ;;  %4513 = vmatpush1.bf16.msra.mxu0 %v8805_v30 }
 0x7af   :  { %4473 = vmatprep.subr.bf16.mxu1 %v8809_v32  ;;  %4514 = vmatprep.subr.bf16.mxu0 %v8811_v41 }
 0x7b2   :  { %4474 = vmatpush1.bf16.msra.mxu1 %v8815_v34  ;;  %4515 = vmatpush1.bf16.msra.mxu0 %v8817_v62 }
 0x7b3   :  { %4475 = vmatprep.subr.bf16.mxu1 %v8821_v36  ;;  %4516 = vmatprep.subr.bf16.mxu0 %v8823_v43 }
 0x7b6   :  { %4476 = vmatpush1.bf16.msra.mxu1 %v8827_v38  ;;  %4517 = vmatpush1.bf16.msra.mxu0 %v8829_v33 }
 0x7b7   :  { %4477 = vmatprep.subr.bf16.mxu1 %v8833_v40  ;;  %4518 = vmatprep.subr.bf16.mxu0 %v8835_v47 }
 0x7ba   :  { %4478 = vmatpush2.bf16.msra.mxu1 %v8839_v37  ;;  %4519 = vmatpush2.bf16.msra.mxu0 %v8841_v63 }
 0x7bb   :  { %4479 = vmatprep.subr.bf16.mxu1 %v8845_v54  ;;  %4520 = vmatprep.subr.bf16.mxu0 %v8847_v5 }
 0x7be   :  { %4480 = vmatpush2.bf16.msra.mxu1 %v8851_v49  ;;  %4521 = vmatpush2.bf16.msra.mxu0 %v8853_v60  ;;  %v8944_v60 = vld [vmem:[#allocation21 + $0xe8] ss:$16 sps:$4 sm:$0xff]  }
 0x7bf   :  { %4481 = vmatprep.subr.bf16.mxu1 %v8857_v0  ;;  %4522 = vmatprep.subr.bf16.mxu0 %v8859_v51 }
 0x7c2   :  { %4482 = vmatpush2.bf16.msra.mxu1 %v8863_v53  ;;  %4523 = vmatpush2.bf16.msra.mxu0 %v8865_v8 }
 0x7c3   :  { %4483 = vmatprep.subr.bf16.mxu1 %v8869_v55  ;;  %4524 = vmatprep.subr.bf16.mxu0 %v8871_v58 }
 0x7c6   :  { %4484 = vmatpush2.bf16.msra.mxu1 %v8875_v59  ;;  %4525 = vmatpush2.bf16.msra.mxu0 %v8877_v6 }
 0x7c7   :  { %4485 = vmatprep.subr.bf16.mxu1 %v8881_v4  ;;  %4526 = vmatprep.subr.bf16.mxu0 %v8883_v44 }
 0x7ca   :  { %4486 = vmatpush2.bf16.msra.mxu1 %v8887_v48  ;;  %4527 = vmatpush2.bf16.msra.mxu0 %v8889_v31 }
 0x7cb   :  { %4487 = vmatprep.subr.bf16.mxu1 %v8893_v35  ;;  %4528 = vmatprep.subr.bf16.mxu0 %v8895_v45  ;;  %v10204_v45 = vld [vmem:[#allocation82_spill] sm:$0xff] }
 0x7ce   :  { %4488 = vmatpush2.bf16.msra.mxu1 %v8899_v50  ;;  %4529 = vmatpush2.bf16.msra.mxu0 %v8901_v17  ;;  %v8923_v17 = vld [vmem:[#allocation21 + $0x100] ss:$16 sps:$4 sm:$0xff]  }
 0x7cf   :  { %4489 = vmatprep.subr.bf16.mxu1 %v8907_v25  ;;  %4530 = vmatprep.subr.bf16.mxu0 %v8909_v19  ;;  %10199 = vst [vmem:[#allocation44_spill] sm:$0xff] %v8923_v17  ;;  %v8925_v50 = vld [vmem:[#allocation21 + $0x300] ss:$16 sps:$4 sm:$0xff]   ;;  %v8931_v19 = vld [vmem:[#allocation21 + $0xec] ss:$16 sps:$4 sm:$0xff]  }
 0x7d0   :  { %10200 = vst [vmem:[#allocation45_spill] sm:$0xff] %v8925_v50  ;;  %10201 = vst [vmem:[#allocation46_spill] sm:$0xff] %v8931_v19  ;;  %v10203_v25 = vld [vmem:[#allocation81_spill] sm:$0xff] }
 0x7d2   :  { %4490 = vmatpush2.bf16.msra.mxu1 %v8911_v61  ;;  %4531 = vmatpush2.bf16.msra.mxu0 %v8913_v9  ;;  %v8933_v61 = vld [vmem:[#allocation21 + $0x2ec] ss:$16 sps:$4 sm:$0xff]  }
 0x7d3   :  { %4491 = vmatprep.subr.bf16.mxu1 %v8919_v57  ;;  %4532 = vmatprep.subr.bf16.mxu0 %v8921_v10  ;;  %10202 = vst [vmem:[#allocation47_spill] sm:$0xff] %v8933_v61  ;;  %v3239_v9 = vld [vmem:[%s9554_s16] sm:$0xf] }
 0x7d4   :  { %v3244_v57 = vrot.slane %v3239_v9, %v10153_v13  ;;  %v3252_v10 = vrot.slane %v3239_v9, %v10203_v25 }
 0x7d6   :  { %4492 = vmatpush2.bf16.msra.mxu1 %v8923_v17  ;;  %4533 = vmatpush2.bf16.msra.mxu0 %v8925_v50  ;;  %v3248_v17 = vrot.slane %v3239_v9, %v10154_v46  ;;  %v3256_v50 = vrot.slane %v3239_v9, %v10204_v45  ;;  %v8946_v9 = vld [vmem:[#allocation21 + $0x2e8] ss:$16 sps:$4 sm:$0xff]   ;;  %v9052_v45 = vld [vmem:[#allocation21 + $0x3cc] ss:$16 sps:$4 sm:$0xff]  }
 0x7d7   :  { %4543 = vmatprep.subr.bf16.mxu1 %v8931_v19  ;;  %4584 = vmatprep.subr.bf16.mxu0 %v8933_v61  ;;  %10205 = vst [vmem:[#allocation48_spill] sm:$0xff] %v8946_v9  ;;  %10226 = vst [vmem:[#allocation101_spill] sm:$0xff] %v9052_v45 }
 0x859   :  { %v3615_v35 = vpop.f32.mrf.mxu1  ;;  %v3656_v31 = vpop.f32.mrf.mxu0 }
 0x85a   :  { %v3616_v48 = vadd.f32 %v3615_v35, %v3244_v57  ;;  %v3657_v44 = vadd.f32 %v3656_v31, %v3252_v10  ;;  %v8992_v31 = vld [vmem:[#allocation21 + $0x26c] ss:$16 sps:$4 sm:$0xff]   ;;  %v8996_v35 = vld [vmem:[#allocation21 + $0x68] ss:$16 sps:$4 sm:$0xff]  }
 0x85b   :  { %v3617_v4 = vpop.f32.mrf.mxu1  ;;  %v3658_v19 = vpop.f32.mrf.mxu0  ;;  %10212 = vst [vmem:[#allocation56_spill] sm:$0xff] %v8992_v31 }
 0x85c   :  { %v3618_v6 = vadd.f32 %v3617_v4, %v3248_v17  ;;  %v3659_v61 = vadd.f32 %v3658_v19, %v3256_v50  ;;  %v3663_v59 = vmax.f32 %v3616_v48, 0.0  ;;  %v3665_v58 = vmax.f32 %v3657_v44, 0.0  ;;  %v8952_v4 = vld [vmem:[#allocation21 + $0xcc] ss:$16 sps:$4 sm:$0xff]   ;;  %v8986_v44 = vld [vmem:[#allocation21 + $0x288] ss:$16 sps:$4 sm:$0xff]  }
 0x85d   :  { %v3619_v55 = vpop.f32.mrf.mxu1  ;;  %v3660_v8 = vpop.f32.mrf.mxu0  ;;  %10211 = vst [vmem:[#allocation54_spill] sm:$0xff] %v8986_v44  ;;  %v8990_v48 = vld [vmem:[#allocation21 + $0x6c] ss:$16 sps:$4 sm:$0xff]   ;;  %v8998_v50 = vld [vmem:[#allocation21 + $0x268] ss:$16 sps:$4 sm:$0xff]  }
 0x85e   :  { %v3664_v53 = vmax.f32 %v3618_v6, 0.0  ;;  %v3666_v13 = vmax.f32 %v3659_v61, 0.0  ;;  %v8948_v57 = vpack.c.bf16 %v3663_v59, %v3663_v59  ;;  %v8950_v10 = vpack.c.bf16 %v3665_v58, %v3665_v58  ;;  %v8954_v55 = vld [vmem:[#allocation21 + $0x2cc] ss:$16 sps:$4 sm:$0xff]   ;;  %v8972_v58 = vld [vmem:[#allocation21 + $0xa8] ss:$16 sps:$4 sm:$0xff]  }
 0x85f   :  { %v3620_v51 = vpop.f32.mrf.mxu1  ;;  %v3661_v25 = vpop.f32.mrf.mxu0  ;;  %10206 = vst [vmem:[#allocation49_spill] sm:$0xff] %v8954_v55  ;;  %v8966_v8 = vld [vmem:[#allocation21 + $0x2ac] ss:$16 sps:$4 sm:$0xff]   ;;  %v8974_v59 = vld [vmem:[#allocation21 + $0x2a8] ss:$16 sps:$4 sm:$0xff]   ;;  %10213 = vst [vmem:[#allocation58_spill] sm:$0xff] %v8998_v50 }
 0x860   :  { %v3668_v0 = vpack.c.bf16 %v3664_v53, %v3664_v53  ;;  %v3670_v46 = vpack.c.bf16 %v3666_v13, %v3666_v13  ;;  %v8960_v13 = vld [vmem:[#allocation21 + $0xc8] ss:$16 sps:$4 sm:$0xff]   ;;  %v8964_v53 = vld [vmem:[#allocation21 + $0xac] ss:$16 sps:$4 sm:$0xff]   ;;  %10208 = vst [vmem:[#allocation51_spill] sm:$0xff] %v8966_v8  ;;  %10209 = vst [vmem:[#allocation52_spill] sm:$0xff] %v8974_v59 }
 0x861   :  { %v8962_v51 = vld [vmem:[#allocation21 + $0x2c8] ss:$16 sps:$4 sm:$0xff]   ;;  %v9002_v17 = vld [vmem:[#allocation21 + $0x4c] ss:$16 sps:$4 sm:$0xff]  }
 0x862   :  { %4493 = vmatprep.mubr.bf16.mxu1 %v3668_v0  ;;  %4534 = vmatprep.mubr.bf16.mxu0 %v3670_v46  ;;  %10207 = vst [vmem:[#allocation50_spill] sm:$0xff] %v8962_v51  ;;  %v8984_v6 = vld [vmem:[#allocation21 + $0x88] ss:$16 sps:$4 sm:$0xff]   ;;  %v9004_v25 = vld [vmem:[#allocation21 + $0x24c] ss:$16 sps:$4 sm:$0xff]  }
 0x863   :  { %4494 = vmatmul.mubr.bf16.vlgmr.msra.gmra.mxu1 %v8948_v57  ;;  %4535 = vmatmul.mubr.bf16.vlgmr.msra.gmra.mxu0 %v8950_v10  ;;  %10214 = vst [vmem:[#allocation60_spill] sm:$0xff] %v9004_v25  ;;  %v9008_v19 = vld [vmem:[#allocation21 + $0x48] ss:$16 sps:$4 sm:$0xff]  }
 0x864   :  { %4544 = vmatpush1.bf16.msra.mxu1 %v8944_v60  ;;  %4585 = vmatpush1.bf16.msra.mxu0 %v8946_v9  ;;  %v9010_v61 = vld [vmem:[#allocation21 + $0x248] ss:$16 sps:$4 sm:$0xff]  }
 0x865   :  { %4575 = vmatprep.mubr.bf16.mxu1 %v3668_v0  ;;  %4616 = vmatprep.mubr.bf16.mxu0 %v3670_v46  ;;  %v8978_v46 = vld [vmem:[#allocation21 + $0x8c] ss:$16 sps:$4 sm:$0xff]   ;;  %10215 = vst [vmem:[#allocation62_spill] sm:$0xff] %v9010_v61  ;;  %v9046_v9 = vld [vmem:[#allocation21 + $0x3e8] ss:$16 sps:$4 sm:$0xff]  }
 0x866   :  { %4545 = vmatprep.subr.bf16.mxu1 %v8952_v4  ;;  %4586 = vmatprep.subr.bf16.mxu0 %v8954_v55  ;;  %v8980_v0 = vld [vmem:[#allocation21 + $0x28c] ss:$16 sps:$4 sm:$0xff]   ;;  %10224 = vst [vmem:[#allocation80_spill] sm:$0xff] %v9046_v9 }
 0x867   :  { %10210 = vst [vmem:[#allocation53_spill] sm:$0xff] %v8980_v0  ;;  %v9040_v55 = vld [vmem:[#allocation21 + $0x3ec] ss:$16 sps:$4 sm:$0xff]  }
 0x868   :  { %4546 = vmatpush1.bf16.msra.mxu1 %v8960_v13  ;;  %4587 = vmatpush1.bf16.msra.mxu0 %v8962_v51  ;;  %v9034_v51 = vld [vmem:[#allocation21 + $0x208] ss:$16 sps:$4 sm:$0xff]   ;;  %10222 = vst [vmem:[#allocation76_spill] sm:$0xff] %v9040_v55 }
 0x869   :  { %4547 = vmatprep.subr.bf16.mxu1 %v8964_v53  ;;  %4588 = vmatprep.subr.bf16.mxu0 %v8966_v8  ;;  %v9028_v8 = vld [vmem:[#allocation21 + $0x20c] ss:$16 sps:$4 sm:$0xff]   ;;  %10220 = vst [vmem:[#allocation72_spill] sm:$0xff] %v9034_v51 }
 0x86a   :  { %10218 = vst [vmem:[#allocation68_spill] sm:$0xff] %v9028_v8 }
 0x86c   :  { %4548 = vmatpush1.bf16.msra.mxu1 %v8972_v58  ;;  %4589 = vmatpush1.bf16.msra.mxu0 %v8974_v59  ;;  %v9022_v59 = vld [vmem:[#allocation21 + $0x228] ss:$16 sps:$4 sm:$0xff]  }
 0x86d   :  { %4549 = vmatprep.subr.bf16.mxu1 %v8978_v46  ;;  %4590 = vmatprep.subr.bf16.mxu0 %v8980_v0  ;;  %v9016_v0 = vld [vmem:[#allocation21 + $0x22c] ss:$16 sps:$4 sm:$0xff]   ;;  %10217 = vst [vmem:[#allocation66_spill] sm:$0xff] %v9022_v59 }
 0x86e   :  { %10216 = vst [vmem:[#allocation64_spill] sm:$0xff] %v9016_v0 }
 0x870   :  { %4550 = vmatpush1.bf16.msra.mxu1 %v8984_v6  ;;  %4591 = vmatpush1.bf16.msra.mxu0 %v8986_v44  ;;  %v9014_v44 = vld [vmem:[#allocation21 + $0x2c] ss:$16 sps:$4 sm:$0xff]  }
 0x871   :  { %4551 = vmatprep.subr.bf16.mxu1 %v8990_v48  ;;  %4592 = vmatprep.subr.bf16.mxu0 %v8992_v31  ;;  %v9020_v31 = vld [vmem:[#allocation21 + $0x28] ss:$16 sps:$4 sm:$0xff]  }
 0x874   :  { %4552 = vmatpush1.bf16.msra.mxu1 %v8996_v35  ;;  %4593 = vmatpush1.bf16.msra.mxu0 %v8998_v50  ;;  %v9026_v50 = vld [vmem:[#allocation21 + $0xc] ss:$16 sps:$4 sm:$0xff]  }
 0x875   :  { %4553 = vmatprep.subr.bf16.mxu1 %v9002_v17  ;;  %4594 = vmatprep.subr.bf16.mxu0 %v9004_v25  ;;  %v9032_v25 = vld [vmem:[#allocation21 + $0x8] ss:$16 sps:$4 sm:$0xff]  }
 0x876   :  { %10219 = vst [vmem:[#allocation70_spill] sm:$0xff] %v9032_v25 }
 0x878   :  { %4554 = vmatpush1.bf16.msra.mxu1 %v9008_v19  ;;  %4595 = vmatpush1.bf16.msra.mxu0 %v9010_v61  ;;  %v9038_v61 = vld [vmem:[#allocation21 + $0x1ec] ss:$16 sps:$4 sm:$0xff]  }
 0x879   :  { %4555 = vmatprep.subr.bf16.mxu1 %v9014_v44  ;;  %4596 = vmatprep.subr.bf16.mxu0 %v9016_v0  ;;  %10221 = vst [vmem:[#allocation74_spill] sm:$0xff] %v9038_v61  ;;  %v9044_v0 = vld [vmem:[#allocation21 + $0x1e8] ss:$16 sps:$4 sm:$0xff]  }
 0x87a   :  { %10223 = vst [vmem:[#allocation78_spill] sm:$0xff] %v9044_v0 }
 0x87c   :  { %4556 = vmatpush1.bf16.msra.mxu1 %v9020_v31  ;;  %4597 = vmatpush1.bf16.msra.mxu0 %v9022_v59  ;;  %v9050_v59 = vld [vmem:[#allocation21 + $0x1cc] ss:$16 sps:$4 sm:$0xff]  }
 0x87d   :  { %4557 = vmatprep.subr.bf16.mxu1 %v9026_v50  ;;  %4598 = vmatprep.subr.bf16.mxu0 %v9028_v8  ;;  %10225 = vst [vmem:[#allocation99_spill] sm:$0xff] %v9050_v59  ;;  %v9056_v8 = vld [vmem:[#allocation21 + $0x1c8] ss:$16 sps:$4 sm:$0xff]  }
 0x87e   :  { %10227 = vst [vmem:[#allocation103_spill] sm:$0xff] %v9056_v8 }
 0x880   :  { %4558 = vmatpush1.bf16.msra.mxu1 %v9032_v25  ;;  %4599 = vmatpush1.bf16.msra.mxu0 %v9034_v51  ;;  %v9058_v25 = vld [vmem:[#allocation21 + $0x3c8] ss:$16 sps:$4 sm:$0xff]   ;;  %v9062_v51 = vld [vmem:[#allocation21 + $0x1ac] ss:$16 sps:$4 sm:$0xff]  }
 0x881   :  { %4559 = vmatprep.subr.bf16.mxu1 %v9038_v61  ;;  %4600 = vmatprep.subr.bf16.mxu0 %v9040_v55  ;;  %10228 = vst [vmem:[#allocation105_spill] sm:$0xff] %v9058_v25  ;;  %10229 = vst [vmem:[#allocation107_spill] sm:$0xff] %v9062_v51  ;;  %v9064_v61 = vld [vmem:[#allocation21 + $0x3ac] ss:$16 sps:$4 sm:$0xff]   ;;  %v9068_v55 = vld [vmem:[#allocation21 + $0x1a8] ss:$16 sps:$4 sm:$0xff]  }
 0x882   :  { %10230 = vst [vmem:[#allocation109_spill] sm:$0xff] %v9064_v61  ;;  %10231 = vst [vmem:[#allocation111_spill] sm:$0xff] %v9068_v55 }
 0x884   :  { %4560 = vmatpush2.bf16.msra.mxu1 %v9044_v0  ;;  %4601 = vmatpush2.bf16.msra.mxu0 %v9046_v9  ;;  %v9070_v0 = vld [vmem:[#allocation21 + $0x3a8] ss:$16 sps:$4 sm:$0xff]   ;;  %v9074_v9 = vld [vmem:[#allocation21 + $0x18c] ss:$16 sps:$4 sm:$0xff]  }
 0x885   :  { %4561 = vmatprep.subr.bf16.mxu1 %v9050_v59  ;;  %4602 = vmatprep.subr.bf16.mxu0 %v9052_v45  ;;  %10232 = vst [vmem:[#allocation113_spill] sm:$0xff] %v9070_v0  ;;  %10233 = vst [vmem:[#allocation115_spill] sm:$0xff] %v9074_v9  ;;  %v9076_v59 = vld [vmem:[#allocation21 + $0x38c] ss:$16 sps:$4 sm:$0xff]   ;;  %v9080_v45 = vld [vmem:[#allocation21 + $0x188] ss:$16 sps:$4 sm:$0xff]  }
 0x886   :  { %10234 = vst [vmem:[#allocation117_spill] sm:$0xff] %v9076_v59  ;;  %10235 = vst [vmem:[#allocation119_spill] sm:$0xff] %v9080_v45 }
 0x888   :  { %4562 = vmatpush2.bf16.msra.mxu1 %v9056_v8  ;;  %4603 = vmatpush2.bf16.msra.mxu0 %v9058_v25  ;;  %v9082_v8 = vld [vmem:[#allocation21 + $0x388] ss:$16 sps:$4 sm:$0xff]   ;;  %v9086_v25 = vld [vmem:[#allocation21 + $0x16c] ss:$16 sps:$4 sm:$0xff]  }
 0x889   :  { %4563 = vmatprep.subr.bf16.mxu1 %v9062_v51  ;;  %4604 = vmatprep.subr.bf16.mxu0 %v9064_v61  ;;  %10236 = vst [vmem:[#allocation55_spill] sm:$0xff] %v9082_v8  ;;  %10237 = vst [vmem:[#allocation121_spill] sm:$0xff] %v9086_v25  ;;  %v9088_v51 = vld [vmem:[#allocation21 + $0x36c] ss:$16 sps:$4 sm:$0xff]   ;;  %v9092_v61 = vld [vmem:[#allocation21 + $0x168] ss:$16 sps:$4 sm:$0xff]  }
 0x88a   :  { %10238 = vst [vmem:[#allocation114_spill] sm:$0xff] %v9088_v51  ;;  %10239 = vst [vmem:[#allocation116_spill] sm:$0xff] %v9092_v61 }
 0x88c   :  { %4564 = vmatpush2.bf16.msra.mxu1 %v9068_v55  ;;  %4605 = vmatpush2.bf16.msra.mxu0 %v9070_v0  ;;  %v9094_v55 = vld [vmem:[#allocation21 + $0x368] ss:$16 sps:$4 sm:$0xff]   ;;  %v9098_v0 = vld [vmem:[#allocation21 + $0x14c] ss:$16 sps:$4 sm:$0xff]  }
 0x88d   :  { %4565 = vmatprep.subr.bf16.mxu1 %v9074_v9  ;;  %4606 = vmatprep.subr.bf16.mxu0 %v9076_v59  ;;  %10240 = vst [vmem:[#allocation118_spill] sm:$0xff] %v9094_v55  ;;  %10241 = vst [vmem:[#allocation120_spill] sm:$0xff] %v9098_v0  ;;  %v9100_v9 = vld [vmem:[#allocation21 + $0x34c] ss:$16 sps:$4 sm:$0xff]   ;;  %v9104_v59 = vld [vmem:[#allocation21 + $0x148] ss:$16 sps:$4 sm:$0xff]  }
 0x88e   :  { %10242 = vst [vmem:[#allocation122_spill] sm:$0xff] %v9100_v9  ;;  %10243 = vst [vmem:[#allocation123_spill] sm:$0xff] %v9104_v59 }
 0x890   :  { %4566 = vmatpush2.bf16.msra.mxu1 %v9080_v45  ;;  %4607 = vmatpush2.bf16.msra.mxu0 %v9082_v8  ;;  %v9106_v45 = vld [vmem:[#allocation21 + $0x348] ss:$16 sps:$4 sm:$0xff]   ;;  %v9110_v8 = vld [vmem:[#allocation21 + $0x12c] ss:$16 sps:$4 sm:$0xff]  }
 0x891   :  { %4567 = vmatprep.subr.bf16.mxu1 %v9086_v25  ;;  %4608 = vmatprep.subr.bf16.mxu0 %v9088_v51  ;;  %10244 = vst [vmem:[#allocation124_spill] sm:$0xff] %v9106_v45  ;;  %v9112_v25 = vld [vmem:[#allocation21 + $0x32c] ss:$16 sps:$4 sm:$0xff]   ;;  %v9116_v51 = vld [vmem:[#allocation21 + $0x128] ss:$16 sps:$4 sm:$0xff]  }
 0x892   :  { %10245 = vst [vmem:[#allocation125_spill] sm:$0xff] %v9112_v25 }
 0x894   :  { %4568 = vmatpush2.bf16.msra.mxu1 %v9092_v61  ;;  %4609 = vmatpush2.bf16.msra.mxu0 %v9094_v55  ;;  %v9118_v61 = vld [vmem:[#allocation21 + $0x328] ss:$16 sps:$4 sm:$0xff]   ;;  %v9122_v55 = vld [vmem:[#allocation21 + $0x10c] ss:$16 sps:$4 sm:$0xff]  }
 0x895   :  { %4569 = vmatprep.subr.bf16.mxu1 %v9098_v0  ;;  %4610 = vmatprep.subr.bf16.mxu0 %v9100_v9  ;;  %10246 = vst [vmem:[#allocation126_spill] sm:$0xff] %v9118_v61  ;;  %v9124_v0 = vld [vmem:[#allocation21 + $0x30c] ss:$16 sps:$4 sm:$0xff]   ;;  %v9128_v9 = vld [vmem:[#allocation21 + $0x108] ss:$16 sps:$4 sm:$0xff]  }
 0x896   :  { %10247 = vst [vmem:[#allocation32_spill] sm:$0xff] %v9124_v0 }
 0x898   :  { %4570 = vmatpush2.bf16.msra.mxu1 %v9104_v59  ;;  %4611 = vmatpush2.bf16.msra.mxu0 %v9106_v45  ;;  %v9130_v59 = vld [vmem:[#allocation21 + $0x308] ss:$16 sps:$4 sm:$0xff]  }
 0x899   :  { %4571 = vmatprep.subr.bf16.mxu1 %v9110_v8  ;;  %4612 = vmatprep.subr.bf16.mxu0 %v9112_v25  ;;  %10248 = vst [vmem:[#allocation127_spill] sm:$0xff] %v9130_v59 }
 0x89c   :  { %4572 = vmatpush2.bf16.msra.mxu1 %v9116_v51  ;;  %4613 = vmatpush2.bf16.msra.mxu0 %v9118_v61 }
 0x89d   :  { %4573 = vmatprep.subr.bf16.mxu1 %v9122_v55  ;;  %4614 = vmatprep.subr.bf16.mxu0 %v9124_v0 }
 0x8a0   :  { %4574 = vmatpush2.bf16.msra.mxu1 %v9128_v9  ;;  %4615 = vmatpush2.bf16.msra.mxu0 %v9130_v59 }
 0x8a1   :  { %4633 = vmatprep.subr.bf16.mxu1 %v8737_v1  ;;  %4674 = vmatprep.subr.bf16.mxu0 %v8739_v2 }
 0x8a3   :  { %4576 = vmatmul.mubr.bf16.vlgmr.msra.gmra.mxu1 %v8948_v57  ;;  %4617 = vmatmul.mubr.bf16.vlgmr.msra.gmra.mxu0 %v8950_v10  ;;  %v10249_v57 = vld [vmem:[#allocation100_spill] sm:$0xff]  ;;  %v10250_v10 = vld [vmem:[#allocation102_spill] sm:$0xff] }
 0x8a4   :  { %4634 = vmatpush1.bf16.msra.mxu1 %v8745_v7  ;;  %4675 = vmatpush1.bf16.msra.mxu0 %v8747_v52 }
 0x8a5   :  { %4635 = vmatprep.subr.bf16.mxu1 %v8749_v42  ;;  %4676 = vmatprep.subr.bf16.mxu0 %v8751_v15  ;;  %v10275_v15 = vld [vmem:[#allocation47_spill] sm:$0xff] }
 0x8a8   :  { %4636 = vmatpush1.bf16.msra.mxu1 %v8755_v21  ;;  %4677 = vmatpush1.bf16.msra.mxu0 %v8757_v12  ;;  %v10273_v12 = vld [vmem:[#allocation45_spill] sm:$0xff] }
 0x8a9   :  { %4637 = vmatprep.subr.bf16.mxu1 %v8761_v27  ;;  %4678 = vmatprep.subr.bf16.mxu0 %v8763_v56  ;;  %v10271_v56 = vld [vmem:[#allocation43_spill] sm:$0xff] }
 0x8ac   :  { %4638 = vmatpush1.bf16.msra.mxu1 %v8767_v39  ;;  %4679 = vmatpush1.bf16.msra.mxu0 %v8769_v29  ;;  %v10269_v29 = vld [vmem:[#allocation41_spill] sm:$0xff] }
 0x8ad   :  { %4639 = vmatprep.subr.bf16.mxu1 %v8773_v11  ;;  %4680 = vmatprep.subr.bf16.mxu0 %v8775_v3  ;;  %v10267_v3 = vld [vmem:[#allocation39_spill] sm:$0xff] }
 0x8b0   :  { %4640 = vmatpush1.bf16.msra.mxu1 %v8779_v14  ;;  %4681 = vmatpush1.bf16.msra.mxu0 %v8781_v23  ;;  %v10265_v23 = vld [vmem:[#allocation37_spill] sm:$0xff] }
 0x8b1   :  { %4641 = vmatprep.subr.bf16.mxu1 %v8785_v16  ;;  %4682 = vmatprep.subr.bf16.mxu0 %v8787_v18  ;;  %v10263_v18 = vld [vmem:[#allocation79_spill] sm:$0xff] }
 0x8b4   :  { %4642 = vmatpush1.bf16.msra.mxu1 %v8791_v20  ;;  %4683 = vmatpush1.bf16.msra.mxu0 %v8793_v22  ;;  %v10261_v22 = vld [vmem:[#allocation77_spill] sm:$0xff] }
 0x8b5   :  { %4643 = vmatprep.subr.bf16.mxu1 %v8797_v24  ;;  %4684 = vmatprep.subr.bf16.mxu0 %v8799_v26  ;;  %v10259_v26 = vld [vmem:[#allocation73_spill] sm:$0xff] }
 0x8b8   :  { %4644 = vmatpush1.bf16.msra.mxu1 %v8803_v28  ;;  %4685 = vmatpush1.bf16.msra.mxu0 %v8805_v30  ;;  %v10257_v30 = vld [vmem:[#allocation69_spill] sm:$0xff] }
 0x8b9   :  { %4645 = vmatprep.subr.bf16.mxu1 %v8809_v32  ;;  %4686 = vmatprep.subr.bf16.mxu0 %v8811_v41  ;;  %v10255_v41 = vld [vmem:[#allocation112_spill] sm:$0xff] }
 0x8bc   :  { %4646 = vmatpush1.bf16.msra.mxu1 %v8815_v34  ;;  %4687 = vmatpush1.bf16.msra.mxu0 %v8817_v62  ;;  %v10253_v62 = vld [vmem:[#allocation108_spill] sm:$0xff] }
 0x8bd   :  { %4647 = vmatprep.subr.bf16.mxu1 %v8821_v36  ;;  %4688 = vmatprep.subr.bf16.mxu0 %v8823_v43  ;;  %v10251_v43 = vld [vmem:[#allocation104_spill] sm:$0xff] }
 0x8c0   :  { %4648 = vmatpush1.bf16.msra.mxu1 %v8827_v38  ;;  %4689 = vmatpush1.bf16.msra.mxu0 %v8829_v33  ;;  %v10252_v33 = vld [vmem:[#allocation106_spill] sm:$0xff] }
 0x8c1   :  { %4649 = vmatprep.subr.bf16.mxu1 %v8833_v40  ;;  %4690 = vmatprep.subr.bf16.mxu0 %v8835_v47  ;;  %v10254_v47 = vld [vmem:[#allocation110_spill] sm:$0xff] }
 0x8c4   :  { %4650 = vmatpush2.bf16.msra.mxu1 %v8839_v37  ;;  %4691 = vmatpush2.bf16.msra.mxu0 %v8841_v63  ;;  %v10256_v63 = vld [vmem:[#allocation67_spill] sm:$0xff] }
 0x8c5   :  { %4651 = vmatprep.subr.bf16.mxu1 %v8845_v54  ;;  %4692 = vmatprep.subr.bf16.mxu0 %v8847_v5  ;;  %v10258_v5 = vld [vmem:[#allocation71_spill] sm:$0xff] }
 0x8c8   :  { %4652 = vmatpush2.bf16.msra.mxu1 %v8851_v49  ;;  %4693 = vmatpush2.bf16.msra.mxu0 %v10249_v57  ;;  %v10260_v57 = vld [vmem:[#allocation75_spill] sm:$0xff] }
 0x8c9   :  { %4653 = vmatprep.subr.bf16.mxu1 %v10250_v10  ;;  %4694 = vmatprep.subr.bf16.mxu0 %v10251_v43  ;;  %v10262_v43 = vld [vmem:[#allocation35_spill] sm:$0xff] }
 0x8cc   :  { %4654 = vmatpush2.bf16.msra.mxu1 %v10252_v33  ;;  %4695 = vmatpush2.bf16.msra.mxu0 %v10253_v62  ;;  %v10264_v62 = vld [vmem:[#allocation36_spill] sm:$0xff] }
 0x8cd   :  { %4655 = vmatprep.subr.bf16.mxu1 %v10254_v47  ;;  %4696 = vmatprep.subr.bf16.mxu0 %v10255_v41  ;;  %v10266_v41 = vld [vmem:[#allocation38_spill] sm:$0xff] }
 0x8d0   :  { %4656 = vmatpush2.bf16.msra.mxu1 %v10256_v63  ;;  %4697 = vmatpush2.bf16.msra.mxu0 %v10257_v30  ;;  %v10268_v30 = vld [vmem:[#allocation40_spill] sm:$0xff] }
 0x8d1   :  { %4657 = vmatprep.subr.bf16.mxu1 %v10258_v5  ;;  %4698 = vmatprep.subr.bf16.mxu0 %v10259_v26  ;;  %v10270_v26 = vld [vmem:[#allocation42_spill] sm:$0xff] }
 0x8d4   :  { %4658 = vmatpush2.bf16.msra.mxu1 %v10260_v57  ;;  %4699 = vmatpush2.bf16.msra.mxu0 %v10261_v22  ;;  %v10272_v22 = vld [vmem:[#allocation44_spill] sm:$0xff] }
 0x8d5   :  { %4659 = vmatprep.subr.bf16.mxu1 %v10262_v43  ;;  %4700 = vmatprep.subr.bf16.mxu0 %v10263_v18  ;;  %v10274_v18 = vld [vmem:[#allocation46_spill] sm:$0xff] }
 0x8d8   :  { %4660 = vmatpush2.bf16.msra.mxu1 %v10264_v62  ;;  %4701 = vmatpush2.bf16.msra.mxu0 %v10265_v23  ;;  %v10276_v23 = vld [vmem:[#allocation33_spill] sm:$0xff] }
 0x8d9   :  { %4661 = vmatprep.subr.bf16.mxu1 %v10266_v41  ;;  %4702 = vmatprep.subr.bf16.mxu0 %v10267_v3  ;;  %v3799_v3 = vld [vmem:[%s9556_s18] sm:$0xf] }
 0x8da   :  { %v9208_v52 = vrot.slane %v3799_v3, %v10276_v23 }
 0x8dc   :  { %4662 = vmatpush2.bf16.msra.mxu1 %v10268_v30  ;;  %4703 = vmatpush2.bf16.msra.mxu0 %v10269_v29  ;;  %v10277_v29 = vld [vmem:[#allocation34_spill] sm:$0xff] }
 0x8dd   :  { %4663 = vmatprep.subr.bf16.mxu1 %v10270_v26  ;;  %4704 = vmatprep.subr.bf16.mxu0 %v10271_v56  ;;  %v9211_v2 = vrot.slane %v3799_v3, %v10277_v29 }
 0x8e0   :  { %4664 = vmatpush2.bf16.msra.mxu1 %v10272_v22  ;;  %4705 = vmatpush2.bf16.msra.mxu0 %v10273_v12 }
 0x8e1   :  { %4715 = vmatprep.subr.bf16.mxu1 %v10274_v18  ;;  %4756 = vmatprep.subr.bf16.mxu0 %v10275_v15 }
 0x923   :  { %v4495_v59 = vpop.f32.mrf.mxu1  ;;  %v4536_v56 = vpop.f32.mrf.mxu0 }
 0x924   :  { %v4496_v22 = vadd.f32 %v4495_v59, %v9208_v52  ;;  %v10289_v59 = vld [vmem:[#allocation81_spill] sm:$0xff] }
 0x925   :  { %v4497_v26 = vpop.f32.mrf.mxu1  ;;  %v4538_v12 = vpop.f32.mrf.mxu0 }
 0x926   :  { %v4537_v30 = vadd.f32 %v4536_v56, %v4496_v22  ;;  %v4498_v18 = vadd.f32 %v4497_v26, %v9211_v2  ;;  %v10280_v56 = vld [vmem:[#allocation78_spill] sm:$0xff]  ;;  %v10283_v22 = vld [vmem:[#allocation107_spill] sm:$0xff] }
 0x927   :  { %v4499_v15 = vpop.f32.mrf.mxu1  ;;  %v4540_v0 = vpop.f32.mrf.mxu0  ;;  %v10284_v26 = vld [vmem:[#allocation111_spill] sm:$0xff] }
 0x928   :  { %v4539_v61 = vadd.f32 %v4538_v12, %v4498_v18  ;;  %v4625_v41 = vmax.f32 %v4537_v30, 0.0  ;;  %v10278_v15 = vld [vmem:[#allocation70_spill] sm:$0xff]  ;;  %v10282_v18 = vld [vmem:[#allocation103_spill] sm:$0xff]  ;;  %v9241_v0 = vrot.slane %v3799_v3, %v10289_v59 }
 0x929   :  { %v4500_v62 = vpop.f32.mrf.mxu1  ;;  %v4541_v25 = vpop.f32.mrf.mxu0  ;;  %v10279_v12 = vld [vmem:[#allocation74_spill] sm:$0xff]  ;;  %v10285_v30 = vld [vmem:[#allocation115_spill] sm:$0xff] }
 0x92a   :  { %v4626_v23 = vmax.f32 %v4539_v61, 0.0  ;;  %v4629_v43 = vpack.c.bf16 %v4625_v41, %v4625_v41  ;;  %v10286_v41 = vld [vmem:[#allocation119_spill] sm:$0xff]  ;;  %v10287_v62 = vld [vmem:[#allocation121_spill] sm:$0xff]  ;;  %10290 = vst [vmem:[#allocation102_spill] sm:$0xff] %v9241_v0  ;;  %v10291_v25 = vld [vmem:[#allocation120_spill] sm:$0xff] }
 0x92b   :  { %v10292_v61 = vld [vmem:[#allocation82_spill] sm:$0xff] }
 0x92c   :  { %v4630_v45 = vpack.c.bf16 %v4626_v23, %v4626_v23  ;;  %v10281_v23 = vld [vmem:[#allocation99_spill] sm:$0xff]  ;;  %v9245_v29 = vrot.slane %v3799_v3, %v10292_v61 }
 0x92e   :  { %4665 = vmatprep.mubr.bf16.mxu1 %v4630_v45 }
 0x92f   :  { %4666 = vmatmul.mubr.bf16.vlgmr.msra.gmra.mxu1 %v4629_v43 }
 0x930   :  { %4716 = vmatpush1.bf16.msra.mxu1 %v8944_v60  ;;  %4747 = vmatprep.mubr.bf16.mxu1 %v4630_v45  ;;  %v10288_v45 = vld [vmem:[#allocation116_spill] sm:$0xff] }
 0x931   :  { %4717 = vmatprep.subr.bf16.mxu1 %v8952_v4 }
 0x934   :  { %4718 = vmatpush1.bf16.msra.mxu1 %v8960_v13 }
 0x935   :  { %4719 = vmatprep.subr.bf16.mxu1 %v8964_v53 }
 0x938   :  { %4720 = vmatpush1.bf16.msra.mxu1 %v8972_v58 }
 0x939   :  { %4721 = vmatprep.subr.bf16.mxu1 %v8978_v46 }
 0x93c   :  { %4722 = vmatpush1.bf16.msra.mxu1 %v8984_v6 }
 0x93d   :  { %4723 = vmatprep.subr.bf16.mxu1 %v8990_v48 }
 0x940   :  { %4724 = vmatpush1.bf16.msra.mxu1 %v8996_v35 }
 0x941   :  { %4725 = vmatprep.subr.bf16.mxu1 %v9002_v17 }
 0x944   :  { %4726 = vmatpush1.bf16.msra.mxu1 %v9008_v19 }
 0x945   :  { %4727 = vmatprep.subr.bf16.mxu1 %v9014_v44 }
 0x948   :  { %4728 = vmatpush1.bf16.msra.mxu1 %v9020_v31 }
 0x949   :  { %4729 = vmatprep.subr.bf16.mxu1 %v9026_v50 }
 0x94c   :  { %4730 = vmatpush1.bf16.msra.mxu1 %v10278_v15 }
 0x94d   :  { %4731 = vmatprep.subr.bf16.mxu1 %v10279_v12 }
 0x950   :  { %4732 = vmatpush2.bf16.msra.mxu1 %v10280_v56 }
 0x951   :  { %4733 = vmatprep.subr.bf16.mxu1 %v10281_v23  ;;  %v10293_v23 = vld [vmem:[#allocation123_spill] sm:$0xff] }
 0x954   :  { %4734 = vmatpush2.bf16.msra.mxu1 %v10282_v18 }
 0x955   :  { %4735 = vmatprep.subr.bf16.mxu1 %v10283_v22 }
 0x958   :  { %4736 = vmatpush2.bf16.msra.mxu1 %v10284_v26 }
 0x959   :  { %4737 = vmatprep.subr.bf16.mxu1 %v10285_v30 }
 0x95c   :  { %4738 = vmatpush2.bf16.msra.mxu1 %v10286_v41 }
 0x95d   :  { %4739 = vmatprep.subr.bf16.mxu1 %v10287_v62 }
 0x960   :  { %4740 = vmatpush2.bf16.msra.mxu1 %v10288_v45 }
 0x961   :  { %4741 = vmatprep.subr.bf16.mxu1 %v10291_v25 }
 0x963   :  { %v4577_v18 = vpop.f32.mrf.mxu1  ;;  %v4618_v22 = vpop.f32.mrf.mxu0 }
 0x964   :  { %v4578_v26 = vadd.f32 %v4577_v18, %v9241_v0  ;;  %4742 = vmatpush2.bf16.msra.mxu1 %v10293_v23 }
 0x965   :  { %v4579_v30 = vpop.f32.mrf.mxu1  ;;  %v4620_v41 = vpop.f32.mrf.mxu0  ;;  %4743 = vmatprep.subr.bf16.mxu1 %v9110_v8 }
 0x966   :  { %v4619_v62 = vadd.f32 %v4618_v22, %v4578_v26  ;;  %v4580_v45 = vadd.f32 %v4579_v30, %v9245_v29  ;;  %v10295_v22 = vld [vmem:[#allocation49_spill] sm:$0xff]  ;;  %v10297_v26 = vld [vmem:[#allocation51_spill] sm:$0xff]  ;;  %v10300_v30 = vld [vmem:[#allocation54_spill] sm:$0xff] }
 0x967   :  { %v4581_v59 = vpop.f32.mrf.mxu1  ;;  %v4622_v56 = vpop.f32.mrf.mxu0 }
 0x968   :  { %v4621_v12 = vadd.f32 %v4620_v41, %v4580_v45  ;;  %4744 = vmatpush2.bf16.msra.mxu1 %v9116_v51  ;;  %v4627_v3 = vmax.f32 %v4619_v62, 0.0  ;;  %v10294_v56 = vld [vmem:[#allocation48_spill] sm:$0xff]  ;;  %v10324_v62 = vld [vmem:[#allocation38_spill] sm:$0xff]  ;;  %v10331_v59 = vld [vmem:[#allocation61_spill] sm:$0xff] }
 0x969   :  { %v4582_v61 = vpop.f32.mrf.mxu1  ;;  %v4623_v25 = vpop.f32.mrf.mxu0  ;;  %4745 = vmatprep.subr.bf16.mxu1 %v9122_v55  ;;  %v10321_v41 = vld [vmem:[#allocation124_spill] sm:$0xff]  ;;  %v10325_v45 = vld [vmem:[#allocation126_spill] sm:$0xff] }
 0x96a   :  { %v4628_v18 = vmax.f32 %v4621_v12, 0.0  ;;  %v9254_v23 = vpack.c.bf16 %v4627_v3, %v4627_v3  ;;  %v10296_v12 = vld [vmem:[#allocation50_spill] sm:$0xff]  ;;  %v10329_v25 = vld [vmem:[#allocation127_spill] sm:$0xff] }
 0x96b   :  { %v10332_v3 = vld [vmem:[#allocation46_spill] sm:$0xff]  ;;  %v10333_v61 = vld [vmem:[#allocation63_spill] sm:$0xff] }
 0x96c   :  { %v4632_v0 = vpack.c.bf16 %v4628_v18, %v4628_v18  ;;  %4746 = vmatpush2.bf16.msra.mxu1 %v9128_v9  ;;  %v10334_v18 = vld [vmem:[#allocation65_spill] sm:$0xff] }
 0x96d   :  { %4805 = vmatprep.subr.bf16.mxu1 %v8737_v1  ;;  %v10298_v1 = vld [vmem:[#allocation52_spill] sm:$0xff] }
 0x96e   :  { %4706 = vmatprep.mubr.bf16.mxu0 %v4632_v0 }
 0x96f   :  { %4707 = vmatmul.mubr.bf16.vlgmr.msra.gmra.mxu0 %v9254_v23  ;;  %4748 = vmatmul.mubr.bf16.vlgmr.msra.gmra.mxu1 %v4629_v43  ;;  %v10299_v43 = vld [vmem:[#allocation53_spill] sm:$0xff] }
 0x970   :  { %4757 = vmatpush1.bf16.msra.mxu0 %v10294_v56  ;;  %4788 = vmatprep.mubr.bf16.mxu0 %v4632_v0  ;;  %v10328_v0 = vld [vmem:[#allocation42_spill] sm:$0xff] }
 0x971   :  { %4758 = vmatprep.subr.bf16.mxu0 %v10295_v22  ;;  %4806 = vmatpush1.bf16.msra.mxu1 %v8745_v7  ;;  %v10301_v7 = vld [vmem:[#allocation56_spill] sm:$0xff] }
 0x972   :  { %4807 = vmatprep.subr.bf16.mxu1 %v8749_v42  ;;  %v10302_v42 = vld [vmem:[#allocation58_spill] sm:$0xff] }
 0x974   :  { %4759 = vmatpush1.bf16.msra.mxu0 %v10296_v12 }
 0x975   :  { %4760 = vmatprep.subr.bf16.mxu0 %v10297_v26  ;;  %4808 = vmatpush1.bf16.msra.mxu1 %v8755_v21  ;;  %v10303_v21 = vld [vmem:[#allocation60_spill] sm:$0xff] }
 0x976   :  { %4809 = vmatprep.subr.bf16.mxu1 %v8761_v27  ;;  %v10304_v27 = vld [vmem:[#allocation62_spill] sm:$0xff] }
 0x978   :  { %4761 = vmatpush1.bf16.msra.mxu0 %v10298_v1 }
 0x979   :  { %4762 = vmatprep.subr.bf16.mxu0 %v10299_v43  ;;  %4810 = vmatpush1.bf16.msra.mxu1 %v8767_v39  ;;  %v10305_v39 = vld [vmem:[#allocation64_spill] sm:$0xff] }
 0x97a   :  { %4811 = vmatprep.subr.bf16.mxu1 %v8773_v11  ;;  %v10306_v11 = vld [vmem:[#allocation66_spill] sm:$0xff] }
 0x97c   :  { %4763 = vmatpush1.bf16.msra.mxu0 %v10300_v30 }
 0x97d   :  { %4764 = vmatprep.subr.bf16.mxu0 %v10301_v7  ;;  %4812 = vmatpush1.bf16.msra.mxu1 %v8779_v14  ;;  %v10307_v14 = vld [vmem:[#allocation68_spill] sm:$0xff] }
 0x97e   :  { %4813 = vmatprep.subr.bf16.mxu1 %v8785_v16  ;;  %v10308_v16 = vld [vmem:[#allocation72_spill] sm:$0xff] }
 0x980   :  { %4765 = vmatpush1.bf16.msra.mxu0 %v10302_v42 }
 0x981   :  { %4766 = vmatprep.subr.bf16.mxu0 %v10303_v21  ;;  %4814 = vmatpush1.bf16.msra.mxu1 %v8791_v20  ;;  %v10309_v20 = vld [vmem:[#allocation76_spill] sm:$0xff] }
 0x982   :  { %4815 = vmatprep.subr.bf16.mxu1 %v8797_v24  ;;  %v10310_v24 = vld [vmem:[#allocation80_spill] sm:$0xff] }
 0x984   :  { %4767 = vmatpush1.bf16.msra.mxu0 %v10304_v27 }
 0x985   :  { %4768 = vmatprep.subr.bf16.mxu0 %v10305_v39  ;;  %4816 = vmatpush1.bf16.msra.mxu1 %v8803_v28  ;;  %v10311_v28 = vld [vmem:[#allocation101_spill] sm:$0xff] }
 0x986   :  { %4817 = vmatprep.subr.bf16.mxu1 %v8809_v32  ;;  %v10312_v32 = vld [vmem:[#allocation105_spill] sm:$0xff] }
 0x988   :  { %4769 = vmatpush1.bf16.msra.mxu0 %v10306_v11 }
 0x989   :  { %4770 = vmatprep.subr.bf16.mxu0 %v10307_v14  ;;  %4818 = vmatpush1.bf16.msra.mxu1 %v8815_v34  ;;  %v10313_v34 = vld [vmem:[#allocation109_spill] sm:$0xff] }
 0x98a   :  { %4819 = vmatprep.subr.bf16.mxu1 %v8821_v36  ;;  %v10314_v36 = vld [vmem:[#allocation113_spill] sm:$0xff] }
 0x98c   :  { %4771 = vmatpush1.bf16.msra.mxu0 %v10308_v16 }
 0x98d   :  { %4772 = vmatprep.subr.bf16.mxu0 %v10309_v20  ;;  %4820 = vmatpush1.bf16.msra.mxu1 %v8827_v38  ;;  %v10315_v38 = vld [vmem:[#allocation117_spill] sm:$0xff] }
 0x98e   :  { %4821 = vmatprep.subr.bf16.mxu1 %v8833_v40  ;;  %v10316_v40 = vld [vmem:[#allocation55_spill] sm:$0xff] }
 0x990   :  { %4773 = vmatpush2.bf16.msra.mxu0 %v10310_v24 }
 0x991   :  { %4774 = vmatprep.subr.bf16.mxu0 %v10311_v28  ;;  %4822 = vmatpush2.bf16.msra.mxu1 %v8839_v37  ;;  %v10317_v37 = vld [vmem:[#allocation114_spill] sm:$0xff] }
 0x992   :  { %4823 = vmatprep.subr.bf16.mxu1 %v8845_v54  ;;  %v10318_v54 = vld [vmem:[#allocation118_spill] sm:$0xff] }
 0x994   :  { %4775 = vmatpush2.bf16.msra.mxu0 %v10312_v32 }
 0x995   :  { %4776 = vmatprep.subr.bf16.mxu0 %v10313_v34  ;;  %4824 = vmatpush2.bf16.msra.mxu1 %v8851_v49  ;;  %v10319_v49 = vld [vmem:[#allocation122_spill] sm:$0xff] }
 0x996   :  { %4825 = vmatprep.subr.bf16.mxu1 %v10250_v10  ;;  %v10320_v10 = vld [vmem:[#allocation35_spill] sm:$0xff] }
 0x998   :  { %4777 = vmatpush2.bf16.msra.mxu0 %v10314_v36 }
 0x999   :  { %4778 = vmatprep.subr.bf16.mxu0 %v10315_v38  ;;  %4826 = vmatpush2.bf16.msra.mxu1 %v10252_v33  ;;  %v10322_v33 = vld [vmem:[#allocation125_spill] sm:$0xff] }
 0x99a   :  { %4827 = vmatprep.subr.bf16.mxu1 %v10254_v47  ;;  %v10323_v47 = vld [vmem:[#allocation36_spill] sm:$0xff] }
 0x99c   :  { %4779 = vmatpush2.bf16.msra.mxu0 %v10316_v40 }
 0x99d   :  { %4780 = vmatprep.subr.bf16.mxu0 %v10317_v37  ;;  %4828 = vmatpush2.bf16.msra.mxu1 %v10256_v63  ;;  %v10326_v63 = vld [vmem:[#allocation32_spill] sm:$0xff] }
 0x99e   :  { %4829 = vmatprep.subr.bf16.mxu1 %v10258_v5  ;;  %v10327_v5 = vld [vmem:[#allocation40_spill] sm:$0xff] }
 0x9a0   :  { %4781 = vmatpush2.bf16.msra.mxu0 %v10318_v54 }
 0x9a1   :  { %4782 = vmatprep.subr.bf16.mxu0 %v10319_v49  ;;  %4830 = vmatpush2.bf16.msra.mxu1 %v10260_v57  ;;  %v10330_v57 = vld [vmem:[#allocation44_spill] sm:$0xff] }
 0x9a2   :  { %4831 = vmatprep.subr.bf16.mxu1 %v10320_v10  ;;  %v10335_v10 = vld [vmem:[#allocation97_spill] sm:$0xff] }
 0x9a4   :  { %4783 = vmatpush2.bf16.msra.mxu0 %v10321_v41 }
 0x9a5   :  { %4784 = vmatprep.subr.bf16.mxu0 %v10322_v33  ;;  %4832 = vmatpush2.bf16.msra.mxu1 %v10323_v47  ;;  %v10336_v47 = vld [vmem:[#allocation83_spill] sm:$0xff] }
 0x9a6   :  { %4833 = vmatprep.subr.bf16.mxu1 %v10324_v62  ;;  %v10337_v62 = vld [vmem:[#allocation84_spill] sm:$0xff] }
 0x9a8   :  { %4785 = vmatpush2.bf16.msra.mxu0 %v10325_v45 }
 0x9a9   :  { %4786 = vmatprep.subr.bf16.mxu0 %v10326_v63  ;;  %4834 = vmatpush2.bf16.msra.mxu1 %v10327_v5  ;;  %v10338_v5 = vld [vmem:[#allocation85_spill] sm:$0xff] }
 0x9aa   :  { %4835 = vmatprep.subr.bf16.mxu1 %v10328_v0  ;;  %v10339_v0 = vld [vmem:[#allocation86_spill] sm:$0xff] }
 0x9ac   :  { %4787 = vmatpush2.bf16.msra.mxu0 %v10329_v25 }
 0x9ad   :  { %4836 = vmatpush2.bf16.msra.mxu1 %v10330_v57  ;;  %4846 = vmatprep.subr.bf16.mxu0 %v10331_v59  ;;  %v10340_v57 = vld [vmem:[#allocation87_spill] sm:$0xff]  ;;  %v10341_v59 = vld [vmem:[#allocation88_spill] sm:$0xff] }
 0x9ae   :  { %4887 = vmatprep.subr.bf16.mxu1 %v10332_v3  ;;  %v10342_v3 = vld [vmem:[#allocation89_spill] sm:$0xff] }
 0x9af   :  { %4789 = vmatmul.mubr.bf16.vlgmr.msra.gmra.mxu0 %v9254_v23  ;;  %v10343_v23 = vld [vmem:[#allocation90_spill] sm:$0xff] }
 0x9b0   :  { %4847 = vmatpush1.bf16.msra.mxu0 %v10333_v61  ;;  %v10344_v61 = vld [vmem:[#allocation91_spill] sm:$0xff] }
 0x9b1   :  { %4848 = vmatprep.subr.bf16.mxu0 %v10334_v18  ;;  %v10345_v18 = vld [vmem:[#allocation92_spill] sm:$0xff] }
 0x9b4   :  { %4849 = vmatpush1.bf16.msra.mxu0 %v10335_v10  ;;  %v10346_v10 = vld [vmem:[#allocation93_spill] sm:$0xff] }
 0x9b5   :  { %4850 = vmatprep.subr.bf16.mxu0 %v10336_v47  ;;  %v10347_v47 = vld [vmem:[#allocation94_spill] sm:$0xff] }
 0x9b8   :  { %4851 = vmatpush1.bf16.msra.mxu0 %v10337_v62  ;;  %v10348_v62 = vld [vmem:[#allocation95_spill] sm:$0xff] }
 0x9b9   :  { %4852 = vmatprep.subr.bf16.mxu0 %v10338_v5  ;;  %v10349_v5 = vld [vmem:[#allocation96_spill] sm:$0xff] }
 0x9bc   :  { %4853 = vmatpush1.bf16.msra.mxu0 %v10339_v0  ;;  %v10350_v0 = vld [vmem:[#allocation98_spill] sm:$0xff] }
 0x9bd   :  { %4854 = vmatprep.subr.bf16.mxu0 %v10340_v57  ;;  %v10351_v57 = vld [vmem:[#allocation100_spill] sm:$0xff] }
 0x9c0   :  { %4855 = vmatpush1.bf16.msra.mxu0 %v10341_v59  ;;  %v10352_v59 = vld [vmem:[#allocation104_spill] sm:$0xff] }
 0x9c1   :  { %4856 = vmatprep.subr.bf16.mxu0 %v10342_v3  ;;  %v10353_v3 = vld [vmem:[#allocation108_spill] sm:$0xff] }
 0x9c4   :  { %4857 = vmatpush1.bf16.msra.mxu0 %v10343_v23  ;;  %v10354_v23 = vld [vmem:[#allocation112_spill] sm:$0xff] }
 0x9c5   :  { %4858 = vmatprep.subr.bf16.mxu0 %v10344_v61  ;;  %v10355_v61 = vld [vmem:[#allocation69_spill] sm:$0xff] }
 0x9c8   :  { %4859 = vmatpush1.bf16.msra.mxu0 %v10345_v18  ;;  %v10356_v18 = vld [vmem:[#allocation73_spill] sm:$0xff] }
 0x9c9   :  { %4860 = vmatprep.subr.bf16.mxu0 %v10346_v10  ;;  %v10357_v10 = vld [vmem:[#allocation77_spill] sm:$0xff] }
 0x9cc   :  { %4861 = vmatpush1.bf16.msra.mxu0 %v10347_v47  ;;  %v10358_v47 = vld [vmem:[#allocation79_spill] sm:$0xff] }
 0x9cd   :  { %4862 = vmatprep.subr.bf16.mxu0 %v10348_v62  ;;  %v10359_v62 = vld [vmem:[#allocation37_spill] sm:$0xff] }
 0x9d0   :  { %4863 = vmatpush2.bf16.msra.mxu0 %v10349_v5  ;;  %v10360_v5 = vld [vmem:[#allocation39_spill] sm:$0xff] }
 0x9d1   :  { %4864 = vmatprep.subr.bf16.mxu0 %v10350_v0  ;;  %v10361_v0 = vld [vmem:[#allocation41_spill] sm:$0xff] }
 0x9d4   :  { %4865 = vmatpush2.bf16.msra.mxu0 %v10351_v57  ;;  %v10362_v57 = vld [vmem:[#allocation43_spill] sm:$0xff] }
 0x9d5   :  { %4866 = vmatprep.subr.bf16.mxu0 %v10352_v59  ;;  %v10363_v59 = vld [vmem:[#allocation45_spill] sm:$0xff] }
 0x9d8   :  { %4867 = vmatpush2.bf16.msra.mxu0 %v10353_v3  ;;  %v10364_v3 = vld [vmem:[#allocation47_spill] sm:$0xff] }
 0x9d9   :  { %4868 = vmatprep.subr.bf16.mxu0 %v10354_v23 }
 0x9dc   :  { %4869 = vmatpush2.bf16.msra.mxu0 %v10355_v61 }
 0x9dd   :  { %4870 = vmatprep.subr.bf16.mxu0 %v10356_v18 }
 0x9e0   :  { %4871 = vmatpush2.bf16.msra.mxu0 %v10357_v10 }
 0x9e1   :  { %4872 = vmatprep.subr.bf16.mxu0 %v10358_v47 }
 0x9e4   :  { %4873 = vmatpush2.bf16.msra.mxu0 %v10359_v62 }
 0x9e5   :  { %4874 = vmatprep.subr.bf16.mxu0 %v10360_v5 }
 0x9e8   :  { %4875 = vmatpush2.bf16.msra.mxu0 %v10361_v0 }
 0x9e9   :  { %4876 = vmatprep.subr.bf16.mxu0 %v10362_v57 }
 0x9ec   :  { %4877 = vmatpush2.bf16.msra.mxu0 %v10363_v59 }
 0x9ed   :  { %4928 = vmatprep.subr.bf16.mxu0 %v10364_v3 }
 0x9ef   :  { %v4667_v23 = vpop.f32.mrf.mxu1 }
 0x9f0   :  { %v4668_v10 = vadd.f32 %v4667_v23, %v9208_v52 }
 0x9f1   :  { %v4669_v61 = vpop.f32.mrf.mxu1 }
 0x9f2   :  { %v4670_v62 = vadd.f32 %v4669_v61, %v9211_v2 }
 0x9f3   :  { %v4671_v25 = vpop.f32.mrf.mxu1 }
 0x9f5   :  { %v4672_v18 = vpop.f32.mrf.mxu1 }
 0xa2f   :  { %v4708_v63 = vpop.f32.mrf.mxu0  ;;  %v4749_v47 = vpop.f32.mrf.mxu1 }
 0xa30   :  { %v4709_v45 = vadd.f32 %v4708_v63, %v4668_v10  ;;  %v10380_v10 = vld [vmem:[#allocation118_spill] sm:$0xff] }
 0xa31   :  { %v4710_v5 = vpop.f32.mrf.mxu0  ;;  %v4751_v33 = vpop.f32.mrf.mxu1 }
 0xa32   :  { %v4711_v0 = vadd.f32 %v4710_v5, %v4670_v62  ;;  %v4797_v41 = vmax.f32 %v4709_v45, 0.0  ;;  %v10382_v62 = vld [vmem:[#allocation124_spill] sm:$0xff]  ;;  %v10383_v5 = vld [vmem:[#allocation125_spill] sm:$0xff] }
 0xa33   :  { %v4712_v57 = vpop.f32.mrf.mxu0  ;;  %v4753_v49 = vpop.f32.mrf.mxu1 }
 0xa34   :  { %v4798_v59 = vmax.f32 %v4711_v0, 0.0  ;;  %v4801_v40 = vpack.c.bf16 %v4797_v41, %v4797_v41  ;;  %v7311_v0 = vld [vmem:[#allocation22 + $0xa4] ss:$8 sps:$4 sm:$0xff]   ;;  %v10384_v57 = vld [vmem:[#allocation126_spill] sm:$0xff] }
 0xa35   :  { %v4713_v54 = vpop.f32.mrf.mxu0  ;;  %v4754_v3 = vpop.f32.mrf.mxu1 }
 0xa36   :  { %v4802_v37 = vpack.c.bf16 %v4798_v59, %v4798_v59  ;;  %v7309_v59 = vld [vmem:[#allocation22 + $0xa0] ss:$8 sps:$4 sm:$0xff]  }
 0xa37   :  { %v10385_v3 = vld [vmem:[#allocation32_spill] sm:$0xff] }
 0xa38   :  { %4837 = vmatprep.mubr.bf16.mxu1 %v4802_v37 }
 0xa39   :  { %4838 = vmatmul.mubr.bf16.vlgmr.msra.gmra.mxu1 %v4801_v40 }
 0xa3a   :  { %4888 = vmatpush1.bf16.msra.mxu1 %v8944_v60  ;;  %4919 = vmatprep.mubr.bf16.mxu1 %v4802_v37  ;;  %v10365_v60 = vld [vmem:[#allocation74_spill] sm:$0xff]  ;;  %v4752_v37 = vadd.f32 %v4751_v33, %v9245_v29 }
 0xa3b   :  { %4889 = vmatprep.subr.bf16.mxu1 %v8952_v4  ;;  %v10366_v4 = vld [vmem:[#allocation78_spill] sm:$0xff] }
 0xa3c   :  { %v10379_v33 = vld [vmem:[#allocation114_spill] sm:$0xff] }
 0xa3e   :  { %4890 = vmatpush1.bf16.msra.mxu1 %v8960_v13  ;;  %v10367_v13 = vld [vmem:[#allocation99_spill] sm:$0xff] }
 0xa3f   :  { %4891 = vmatprep.subr.bf16.mxu1 %v8964_v53  ;;  %v10368_v53 = vld [vmem:[#allocation103_spill] sm:$0xff] }
 0xa42   :  { %4892 = vmatpush1.bf16.msra.mxu1 %v8972_v58  ;;  %v10369_v58 = vld [vmem:[#allocation107_spill] sm:$0xff] }
 0xa43   :  { %4893 = vmatprep.subr.bf16.mxu1 %v8978_v46  ;;  %v10370_v46 = vld [vmem:[#allocation111_spill] sm:$0xff] }
 0xa46   :  { %4894 = vmatpush1.bf16.msra.mxu1 %v8984_v6  ;;  %v10371_v6 = vld [vmem:[#allocation115_spill] sm:$0xff] }
 0xa47   :  { %4895 = vmatprep.subr.bf16.mxu1 %v8990_v48  ;;  %v10373_v48 = vld [vmem:[#allocation121_spill] sm:$0xff] }
 0xa4a   :  { %4896 = vmatpush1.bf16.msra.mxu1 %v8996_v35  ;;  %v10375_v35 = vld [vmem:[#allocation120_spill] sm:$0xff] }
 0xa4b   :  { %4897 = vmatprep.subr.bf16.mxu1 %v9002_v17 }
 0xa4e   :  { %4898 = vmatpush1.bf16.msra.mxu1 %v9008_v19  ;;  %v10377_v19 = vld [vmem:[#allocation123_spill] sm:$0xff] }
 0xa4f   :  { %4899 = vmatprep.subr.bf16.mxu1 %v9014_v44  ;;  %v10372_v44 = vld [vmem:[#allocation119_spill] sm:$0xff] }
 0xa52   :  { %4900 = vmatpush1.bf16.msra.mxu1 %v9020_v31  ;;  %v10374_v31 = vld [vmem:[#allocation116_spill] sm:$0xff] }
 0xa53   :  { %4901 = vmatprep.subr.bf16.mxu1 %v9026_v50  ;;  %v10376_v50 = vld [vmem:[#allocation102_spill] sm:$0xff] }
 0xa54   :  { %v4750_v17 = vadd.f32 %v4749_v47, %v10376_v50  ;;  %v10381_v47 = vld [vmem:[#allocation122_spill] sm:$0xff] }
 0xa56   :  { %4902 = vmatpush1.bf16.msra.mxu1 %v10278_v15 }
 0xa57   :  { %4903 = vmatprep.subr.bf16.mxu1 %v10365_v60  ;;  %v10386_v60 = vld [vmem:[#allocation127_spill] sm:$0xff] }
 0xa5a   :  { %4904 = vmatpush2.bf16.msra.mxu1 %v10366_v4  ;;  %v7314_v4 = vld [vmem:[#allocation22 + $0x94] ss:$8 sps:$4 sm:$0xff]  }
 0xa5b   :  { %4905 = vmatprep.subr.bf16.mxu1 %v10367_v13  ;;  %v7312_v13 = vld [vmem:[#allocation22 + $0x90] ss:$8 sps:$4 sm:$0xff]  }
 0xa5e   :  { %4906 = vmatpush2.bf16.msra.mxu1 %v10368_v53  ;;  %v7317_v53 = vld [vmem:[#allocation22 + $0x84] ss:$8 sps:$4 sm:$0xff]  }
 0xa5f   :  { %4907 = vmatprep.subr.bf16.mxu1 %v10369_v58  ;;  %v7315_v58 = vld [vmem:[#allocation22 + $0x80] ss:$8 sps:$4 sm:$0xff]  }
 0xa62   :  { %4908 = vmatpush2.bf16.msra.mxu1 %v10370_v46  ;;  %v7320_v46 = vld [vmem:[#allocation22 + $0x174] ss:$8 sps:$4 sm:$0xff]  }
 0xa63   :  { %4909 = vmatprep.subr.bf16.mxu1 %v10371_v6  ;;  %v7321_v6 = vld [vmem:[%s9559_s21 + $0x78] sm:$0xff]  }
 0xa66   :  { %4910 = vmatpush2.bf16.msra.mxu1 %v10372_v44  ;;  %v7318_v44 = vld [vmem:[#allocation22 + $0x170] ss:$8 sps:$4 sm:$0xff]  }
 0xa67   :  { %4911 = vmatprep.subr.bf16.mxu1 %v10373_v48  ;;  %v7323_v48 = vld [vmem:[#allocation22 + $0x160] ss:$8 sps:$4 sm:$0xff]  }
 0xa6a   :  { %4912 = vmatpush2.bf16.msra.mxu1 %v10374_v31  ;;  %v7325_v31 = vld [vmem:[#allocation22 + $0x164] ss:$8 sps:$4 sm:$0xff]  }
 0xa6b   :  { %4913 = vmatprep.subr.bf16.mxu1 %v10375_v35  ;;  %v7328_v35 = vld [vmem:[#allocation22 + $0x150] ss:$8 sps:$4 sm:$0xff]  }
 0xa6e   :  { %4914 = vmatpush2.bf16.msra.mxu1 %v10377_v19  ;;  %v7333_v19 = vld [vmem:[#allocation22 + $0x140] ss:$8 sps:$4 sm:$0xff]  }
 0xa6f   :  { %v4790_v15 = vpop.f32.mrf.mxu0  ;;  %4915 = vmatprep.subr.bf16.mxu1 %v9110_v8  ;;  %v7275_v8 = vld [vmem:[#allocation22 + $0x64] ss:$8 sps:$4 sm:$0xff]  }
 0xa70   :  { %v4791_v54 = vadd.f32 %v4790_v15, %v4750_v17  ;;  %v7330_v17 = vld [vmem:[#allocation22 + $0x154] ss:$8 sps:$4 sm:$0xff]   ;;  %v7335_v15 = vld [vmem:[#allocation22 + $0x144] ss:$8 sps:$4 sm:$0xff]  }
 0xa71   :  { %v4792_v49 = vpop.f32.mrf.mxu0 }
 0xa72   :  { %v4793_v41 = vadd.f32 %v4792_v49, %v4752_v37  ;;  %4916 = vmatpush2.bf16.msra.mxu1 %v9116_v51  ;;  %v4799_v45 = vmax.f32 %v4791_v54, 0.0  ;;  %v7272_v51 = vld [vmem:[#allocation22 + $0x74] ss:$8 sps:$4 sm:$0xff]   ;;  %v7338_v37 = vld [vmem:[#allocation22 + $0x130] ss:$8 sps:$4 sm:$0xff]  }
 0xa73   :  { %v4794_v63 = vpop.f32.mrf.mxu0  ;;  %4917 = vmatprep.subr.bf16.mxu1 %v9122_v55  ;;  %v7270_v55 = vld [vmem:[#allocation22 + $0x70] ss:$8 sps:$4 sm:$0xff]   ;;  %v7340_v54 = vld [vmem:[#allocation22 + $0x134] ss:$8 sps:$4 sm:$0xff]   ;;  %v7343_v49 = vld [vmem:[#allocation22 + $0x120] ss:$8 sps:$4 sm:$0xff]  }
 0xa74   :  { %v4800_v25 = vmax.f32 %v4793_v41, 0.0  ;;  %v9390_v18 = vpack.c.bf16 %v4799_v45, %v4799_v45  ;;  %v7345_v41 = vld [vmem:[#allocation22 + $0x124] ss:$8 sps:$4 sm:$0xff]   ;;  %v7348_v45 = vld [vmem:[#allocation22 + $0x110] ss:$8 sps:$4 sm:$0xff]  }
 0xa75   :  { %v4795_v23 = vpop.f32.mrf.mxu0  ;;  %v7350_v63 = vld [vmem:[#allocation22 + $0x114] ss:$8 sps:$4 sm:$0xff]  }
 0xa76   :  { %v4804_v61 = vpack.c.bf16 %v4800_v25, %v4800_v25  ;;  %4918 = vmatpush2.bf16.msra.mxu1 %v9128_v9  ;;  %v7273_v9 = vld [vmem:[#allocation22 + $0x60] ss:$8 sps:$4 sm:$0xff]   ;;  %v7355_v23 = vld [vmem:[#allocation22 + $0x104] ss:$8 sps:$4 sm:$0xff]  }
 0xa77   :  { %5373 = vmatprep.subr.bf16.mxu1 %v7272_v51  ;;  %v7353_v25 = vld [vmem:[#allocation22 + $0x100] ss:$8 sps:$4 sm:$0xff]  }
 0xa78   :  { %4878 = vmatprep.mubr.bf16.mxu0 %v4804_v61  ;;  %v7361_v51 = vld [vmem:[#allocation22 + $0x1e0] ss:$8 sps:$4 sm:$0xff]  }
 0xa79   :  { %4879 = vmatmul.mubr.bf16.vlgmr.msra.gmra.mxu0 %v9390_v18  ;;  %4920 = vmatmul.mubr.bf16.vlgmr.msra.gmra.mxu1 %v4801_v40  ;;  %v7278_v40 = vld [vmem:[#allocation22 + $0x54] ss:$8 sps:$4 sm:$0xff]  }
 0xa7a   :  { %4929 = vmatpush1.bf16.msra.mxu0 %v10294_v56  ;;  %4960 = vmatprep.mubr.bf16.mxu0 %v4804_v61  ;;  %v7276_v56 = vld [vmem:[#allocation22 + $0x50] ss:$8 sps:$4 sm:$0xff]  }
 0xa7b   :  { %4930 = vmatprep.subr.bf16.mxu0 %v10295_v22  ;;  %5374 = vmatpush1.bf16.msra.mxu1 %v7270_v55  ;;  %v7281_v22 = vld [vmem:[#allocation22 + $0x44] ss:$8 sps:$4 sm:$0xff]   ;;  %v7358_v61 = vld [vmem:[#allocation22 + $0x1f0] ss:$8 sps:$4 sm:$0xff]  }
 0xa7c   :  { %5375 = vmatprep.subr.bf16.mxu1 %v7275_v8  ;;  %v7363_v55 = vld [vmem:[#allocation22 + $0x1e4] ss:$8 sps:$4 sm:$0xff]   ;;  %v7366_v8 = vld [vmem:[#allocation22 + $0x1d4] ss:$8 sps:$4 sm:$0xff]  }
 0xa7e   :  { %4931 = vmatpush1.bf16.msra.mxu0 %v10296_v12  ;;  %v7279_v12 = vld [vmem:[#allocation22 + $0x40] ss:$8 sps:$4 sm:$0xff]  }
 0xa7f   :  { %4932 = vmatprep.subr.bf16.mxu0 %v10297_v26  ;;  %5376 = vmatpush1.bf16.msra.mxu1 %v7273_v9  ;;  %v7284_v26 = vld [vmem:[#allocation22 + $0x34] ss:$8 sps:$4 sm:$0xff]   ;;  %v7364_v9 = vld [vmem:[#allocation22 + $0x1d0] ss:$8 sps:$4 sm:$0xff]  }
 0xa80   :  { %5377 = vmatprep.subr.bf16.mxu1 %v7278_v40  ;;  %v7369_v40 = vld [vmem:[#allocation22 + $0x1c4] ss:$8 sps:$4 sm:$0xff]  }
 0xa82   :  { %4933 = vmatpush1.bf16.msra.mxu0 %v10298_v1  ;;  %v7282_v1 = vld [vmem:[#allocation22 + $0x30] ss:$8 sps:$4 sm:$0xff]  }
 0xa83   :  { %4934 = vmatprep.subr.bf16.mxu0 %v10299_v43  ;;  %5378 = vmatpush1.bf16.msra.mxu1 %v7276_v56  ;;  %v7287_v43 = vld [vmem:[#allocation22 + $0x24] ss:$8 sps:$4 sm:$0xff]   ;;  %v7367_v56 = vld [vmem:[#allocation22 + $0x1c0] ss:$8 sps:$4 sm:$0xff]  }
 0xa84   :  { %5379 = vmatprep.subr.bf16.mxu1 %v7281_v22  ;;  %v7372_v22 = vld [vmem:[#allocation22 + $0x1b4] ss:$8 sps:$4 sm:$0xff]  }
 0xa86   :  { %4935 = vmatpush1.bf16.msra.mxu0 %v10300_v30  ;;  %v7285_v30 = vld [vmem:[#allocation22 + $0x20] ss:$8 sps:$4 sm:$0xff]  }
 0xa87   :  { %4936 = vmatprep.subr.bf16.mxu0 %v10301_v7  ;;  %5380 = vmatpush1.bf16.msra.mxu1 %v7279_v12  ;;  %v7290_v7 = vld [vmem:[#allocation22 + $0x14] ss:$8 sps:$4 sm:$0xff]   ;;  %v7370_v12 = vld [vmem:[#allocation22 + $0x1b0] ss:$8 sps:$4 sm:$0xff]  }
 0xa88   :  { %5381 = vmatprep.subr.bf16.mxu1 %v7284_v26  ;;  %v7375_v26 = vld [vmem:[#allocation22 + $0x1a4] ss:$8 sps:$4 sm:$0xff]  }
 0xa8a   :  { %4937 = vmatpush1.bf16.msra.mxu0 %v10302_v42  ;;  %v7288_v42 = vld [vmem:[#allocation22 + $0x10] ss:$8 sps:$4 sm:$0xff]  }
 0xa8b   :  { %4938 = vmatprep.subr.bf16.mxu0 %v10303_v21  ;;  %5382 = vmatpush1.bf16.msra.mxu1 %v7282_v1  ;;  %v7293_v21 = vld [vmem:[#allocation22 + $0x4] ss:$8 sps:$4 sm:$0xff]   ;;  %v7373_v1 = vld [vmem:[#allocation22 + $0x1a0] ss:$8 sps:$4 sm:$0xff]  }
 0xa8c   :  { %5383 = vmatprep.subr.bf16.mxu1 %v7287_v43 }
 0xa8e   :  { %4939 = vmatpush1.bf16.msra.mxu0 %v10304_v27  ;;  %v7291_v27 = vld [vmem:[#allocation22] ss:$8 sps:$4 sm:$0xff]  }
 0xa8f   :  { %4940 = vmatprep.subr.bf16.mxu0 %v10305_v39  ;;  %5384 = vmatpush1.bf16.msra.mxu1 %v7285_v30  ;;  %v7296_v39 = vld [vmem:[#allocation22 + $0xf4] ss:$8 sps:$4 sm:$0xff]  }
 0xa90   :  { %5385 = vmatprep.subr.bf16.mxu1 %v7290_v7  ;;  %v7378_v30 = vld [vmem:[#allocation22 + $0x194] ss:$8 sps:$4 sm:$0xff]   ;;  %v7376_v7 = vld [vmem:[#allocation22 + $0x190] ss:$8 sps:$4 sm:$0xff]  }
 0xa92   :  { %4941 = vmatpush1.bf16.msra.mxu0 %v10306_v11  ;;  %v7294_v11 = vld [vmem:[#allocation22 + $0xf0] ss:$8 sps:$4 sm:$0xff]  }
 0xa93   :  { %4942 = vmatprep.subr.bf16.mxu0 %v10307_v14  ;;  %5386 = vmatpush1.bf16.msra.mxu1 %v7288_v42  ;;  %v7299_v14 = vld [vmem:[#allocation22 + $0xe4] ss:$8 sps:$4 sm:$0xff]  }
 0xa94   :  { %5387 = vmatprep.subr.bf16.mxu1 %v7293_v21 }
 0xa96   :  { %4943 = vmatpush1.bf16.msra.mxu0 %v10308_v16  ;;  %v7297_v16 = vld [vmem:[#allocation22 + $0xe0] ss:$8 sps:$4 sm:$0xff]  }
 0xa97   :  { %4944 = vmatprep.subr.bf16.mxu0 %v10309_v20  ;;  %5388 = vmatpush1.bf16.msra.mxu1 %v7291_v27  ;;  %v7302_v20 = vld [vmem:[#allocation22 + $0xd4] ss:$8 sps:$4 sm:$0xff]   ;;  %v7381_v27 = vld [vmem:[#allocation22 + $0x184] ss:$8 sps:$4 sm:$0xff]  }
 0xa98   :  { %5389 = vmatprep.subr.bf16.mxu1 %v7296_v39  ;;  %v7379_v39 = vld [vmem:[#allocation22 + $0x180] ss:$8 sps:$4 sm:$0xff]  }
 0xa9a   :  { %4945 = vmatpush2.bf16.msra.mxu0 %v10310_v24  ;;  %v10378_v24 = vld [vmem:[#allocation55_spill] sm:$0xff] }
 0xa9b   :  { %4946 = vmatprep.subr.bf16.mxu0 %v10311_v28  ;;  %5390 = vmatpush2.bf16.msra.mxu1 %v7294_v11  ;;  %v7300_v28 = vld [vmem:[#allocation22 + $0xd0] ss:$8 sps:$4 sm:$0xff]  }
 0xa9c   :  { %5391 = vmatprep.subr.bf16.mxu1 %v7299_v14 }
 0xa9e   :  { %4947 = vmatpush2.bf16.msra.mxu0 %v10312_v32  ;;  %v7305_v32 = vld [vmem:[#allocation22 + $0xc4] ss:$8 sps:$4 sm:$0xff]  }
 0xa9f   :  { %4948 = vmatprep.subr.bf16.mxu0 %v10313_v34  ;;  %5392 = vmatpush2.bf16.msra.mxu1 %v7297_v16  ;;  %v7303_v34 = vld [vmem:[#allocation22 + $0xc0] ss:$8 sps:$4 sm:$0xff]  }
 0xaa0   :  { %5393 = vmatprep.subr.bf16.mxu1 %v7302_v20 }
 0xaa2   :  { %4949 = vmatpush2.bf16.msra.mxu0 %v10314_v36  ;;  %v7308_v36 = vld [vmem:[#allocation22 + $0xb4] ss:$8 sps:$4 sm:$0xff]  }
 0xaa3   :  { %4950 = vmatprep.subr.bf16.mxu0 %v10315_v38  ;;  %5394 = vmatpush2.bf16.msra.mxu1 %v7300_v28  ;;  %v7306_v38 = vld [vmem:[#allocation22 + $0xb0] ss:$8 sps:$4 sm:$0xff]  }
 0xaa4   :  { %5395 = vmatprep.subr.bf16.mxu1 %v7305_v32 }
 0xaa6   :  { %4951 = vmatpush2.bf16.msra.mxu0 %v10378_v24 }
 0xaa7   :  { %4952 = vmatprep.subr.bf16.mxu0 %v10379_v33  ;;  %5396 = vmatpush2.bf16.msra.mxu1 %v7303_v34 }
 0xaa8   :  { %5397 = vmatprep.subr.bf16.mxu1 %v7308_v36 }
 0xaaa   :  { %4953 = vmatpush2.bf16.msra.mxu0 %v10380_v10 }
 0xaab   :  { %4954 = vmatprep.subr.bf16.mxu0 %v10381_v47  ;;  %5398 = vmatpush2.bf16.msra.mxu1 %v7306_v38 }
 0xaac   :  { %5399 = vmatprep.subr.bf16.mxu1 %v7311_v0 }
 0xaae   :  { %4955 = vmatpush2.bf16.msra.mxu0 %v10382_v62  ;;  %v10387_v62 = vld [vmem:[#allocation59_spill] sm:$0xff] }
 0xaaf   :  { %4956 = vmatprep.subr.bf16.mxu0 %v10383_v5  ;;  %5400 = vmatpush2.bf16.msra.mxu1 %v7309_v59  ;;  %v2856_v38 = vmax.f32 %v10387_v62, 0.0  ;;  %v10389_v62 = vld [vmem:[#allocation33_spill] sm:$0xff] }
 0xab0   :  { %5401 = vmatprep.subr.bf16.mxu1 %v7314_v4  ;;  %v7327_v4 = vld [vmem:[%s9559_s21 + $0x30] sm:$0xff]  }
 0xab2   :  { %4957 = vmatpush2.bf16.msra.mxu0 %v10384_v57 }
 0xab3   :  { %4958 = vmatprep.subr.bf16.mxu0 %v10385_v3  ;;  %5402 = vmatpush2.bf16.msra.mxu1 %v7312_v13  ;;  %v7331_v13 = vld [vmem:[%s9559_s21 + $0x68] sm:$0xff]  }
 0xab4   :  { %5403 = vmatprep.subr.bf16.mxu1 %v7317_v53  ;;  %v7332_v53 = vld [vmem:[%s9559_s21 + $0x28] sm:$0xff]  }
 0xab6   :  { %4959 = vmatpush2.bf16.msra.mxu0 %v10386_v60  ;;  %v5458_v60 = vpack.c.bf16 %v2856_v38, %v2856_v38 }
 0xab7   :  { %5404 = vmatpush2.bf16.msra.mxu1 %v7315_v58  ;;  %5414 = vmatprep.subr.bf16.mxu0 %v7320_v46  ;;  %v7336_v58 = vld [vmem:[%s9559_s21 + $0x60] sm:$0xff]  }
 0xab8   :  { %6433 = vmatprep.subr.bf16.mxu1 %v7321_v6  ;;  %v7337_v46 = vld [vmem:[%s9559_s21 + $0x20] sm:$0xff]   ;;  %v7341_v6 = vld [vmem:[%s9559_s21 + $0x58] sm:$0xff]  }
 0xab9   :  { %4961 = vmatmul.mubr.bf16.vlgmr.msra.gmra.mxu0 %v9390_v18  ;;  %v7360_v18 = vld [vmem:[#allocation22 + $0x1f4] ss:$8 sps:$4 sm:$0xff]  }
 0xaba   :  { %5415 = vmatpush1.bf16.msra.mxu0 %v7318_v44  ;;  %v7342_v44 = vld [vmem:[%s9559_s21 + $0x18] sm:$0xff]  }
 0xabb   :  { %5416 = vmatprep.subr.bf16.mxu0 %v7325_v31  ;;  %v7347_v31 = vld [vmem:[%s9559_s21 + $0x10] sm:$0xff]  }
 0xabe   :  { %5417 = vmatpush1.bf16.msra.mxu0 %v7323_v48  ;;  %v7346_v48 = vld [vmem:[%s9559_s21 + $0x50] sm:$0xff]  }
 0xabf   :  { %5418 = vmatprep.subr.bf16.mxu0 %v7330_v17  ;;  %v7352_v17 = vld [vmem:[%s9559_s21 + $0x8] sm:$0xff]  }
 0xac2   :  { %5419 = vmatpush1.bf16.msra.mxu0 %v7328_v35  ;;  %v7351_v35 = vld [vmem:[%s9559_s21 + $0x48] sm:$0xff]  }
 0xac3   :  { %5420 = vmatprep.subr.bf16.mxu0 %v7335_v15  ;;  %v7357_v15 = vld [vmem:[%s9559_s21] sm:$0xff]  }
 0xac6   :  { %5421 = vmatpush1.bf16.msra.mxu0 %v7333_v19  ;;  %v7356_v19 = vld [vmem:[%s9559_s21 + $0x40] sm:$0xff]  }
 0xac7   :  { %5422 = vmatprep.subr.bf16.mxu0 %v7340_v54 }
 0xaca   :  { %5423 = vmatpush1.bf16.msra.mxu0 %v7338_v37  ;;  %v10388_v37 = vld [vmem:[#allocation57_spill] sm:$0xff] }
 0xacb   :  { %5424 = vmatprep.subr.bf16.mxu0 %v7345_v41  ;;  %v2855_v54 = vmax.f32 %v10388_v37, 0.0 }
 0xace   :  { %5425 = vmatpush1.bf16.msra.mxu0 %v7343_v49  ;;  %v5457_v49 = vpack.c.bf16 %v2855_v54, %v2855_v54 }
 0xacf   :  { %5426 = vmatprep.subr.bf16.mxu0 %v7350_v63 }
 0xad2   :  { %5427 = vmatpush1.bf16.msra.mxu0 %v7348_v45 }
 0xad3   :  { %5428 = vmatprep.subr.bf16.mxu0 %v7355_v23 }
 0xad6   :  { %5429 = vmatpush1.bf16.msra.mxu0 %v7353_v25 }
 0xad7   :  { %5430 = vmatprep.subr.bf16.mxu0 %v7360_v18 }
 0xada   :  { %5431 = vmatpush2.bf16.msra.mxu0 %v7358_v61 }
 0xadb   :  { %5432 = vmatprep.subr.bf16.mxu0 %v7363_v55 }
 0xade   :  { %5433 = vmatpush2.bf16.msra.mxu0 %v7361_v51 }
 0xadf   :  { %5434 = vmatprep.subr.bf16.mxu0 %v7366_v8 }
 0xae2   :  { %5435 = vmatpush2.bf16.msra.mxu0 %v7364_v9 }
 0xae3   :  { %5436 = vmatprep.subr.bf16.mxu0 %v7369_v40 }
 0xae6   :  { %5437 = vmatpush2.bf16.msra.mxu0 %v7367_v56  ;;  %v7382_v56 = vld [vmem:[%s9559_s21 + $0xf8] sm:$0xff]  }
 0xae7   :  { %5438 = vmatprep.subr.bf16.mxu0 %v7372_v22  ;;  %v7385_v22 = vld [vmem:[%s9559_s21 + $0xb0] sm:$0xff]  }
 0xaea   :  { %5439 = vmatpush2.bf16.msra.mxu0 %v7370_v12  ;;  %v7386_v12 = vld [vmem:[%s9559_s21 + $0xe8] sm:$0xff]  }
 0xaeb   :  { %5440 = vmatprep.subr.bf16.mxu0 %v7375_v26  ;;  %v7387_v26 = vld [vmem:[%s9559_s21 + $0xa8] sm:$0xff]  }
 0xaee   :  { %5441 = vmatpush2.bf16.msra.mxu0 %v7373_v1  ;;  %v7388_v1 = vld [vmem:[%s9559_s21 + $0xe0] sm:$0xff]  }
 0xaef   :  { %5442 = vmatprep.subr.bf16.mxu0 %v7378_v30  ;;  %v7390_v30 = vld [vmem:[%s9559_s21 + $0xd8] sm:$0xff]  }
 0xaf2   :  { %5443 = vmatpush2.bf16.msra.mxu0 %v7376_v7  ;;  %v7391_v7 = vld [vmem:[%s9559_s21 + $0x98] sm:$0xff]  }
 0xaf3   :  { %5444 = vmatprep.subr.bf16.mxu0 %v7381_v27  ;;  %v7394_v27 = vld [vmem:[%s9559_s21 + $0xc8] sm:$0xff]  }
 0xaf6   :  { %5445 = vmatpush2.bf16.msra.mxu0 %v7379_v39  ;;  %v7395_v39 = vld [vmem:[%s9559_s21 + $0x88] sm:$0xff]  }
 0xaf7   :  { %6455 = vmatprep.subr.bf16.mxu0 %v7382_v56 }
 0xaf9   :  { %v4839_v43 = vpop.f32.mrf.mxu1 }
 0xafa   :  { %v4840_v14 = vadd.f32 %v4839_v43, %v9208_v52  ;;  %v7322_v52 = vld [vmem:[%s9559_s21 + $0x38] sm:$0xff]   ;;  %v7389_v43 = vld [vmem:[%s9559_s21 + $0xa0] sm:$0xff]  }
 0xafb   :  { %v4841_v42 = vpop.f32.mrf.mxu1 }
 0xafc   :  { %v4842_v24 = vadd.f32 %v4841_v42, %v9211_v2  ;;  %v7326_v2 = vld [vmem:[%s9559_s21 + $0x70] sm:$0xff]  }
 0xafd   :  { %v4843_v21 = vpop.f32.mrf.mxu1  ;;  %v7392_v42 = vld [vmem:[%s9559_s21 + $0xd0] sm:$0xff]  }
 0xafe   :  { %v7393_v21 = vld [vmem:[%s9559_s21 + $0x90] sm:$0xff]  }
 0xaff   :  { %v4844_v11 = vpop.f32.mrf.mxu1 }
 0xb00   :  { %v7396_v11 = vld [vmem:[%s9559_s21 + $0xc0] sm:$0xff]  }
 0xb39   :  { %v4880_v16 = vpop.f32.mrf.mxu0  ;;  %v4921_v20 = vpop.f32.mrf.mxu1 }
 0xb3a   :  { %v4881_v28 = vadd.f32 %v4880_v16, %v4840_v14  ;;  %v4922_v41 = vadd.f32 %v4921_v20, %v10376_v50  ;;  %v7383_v50 = vld [vmem:[%s9559_s21 + $0xb8] sm:$0xff]   ;;  %v7397_v14 = vld [vmem:[%s9559_s21 + $0x80] sm:$0xff]  }
 0xb3b   :  { %v4882_v33 = vpop.f32.mrf.mxu0  ;;  %v4923_v32 = vpop.f32.mrf.mxu1 }
 0xb3c   :  { %v4883_v10 = vadd.f32 %v4882_v33, %v4842_v24  ;;  %v4969_v34 = vmax.f32 %v4881_v28, 0.0  ;;  %v4924_v63 = vadd.f32 %v4923_v32, %v9245_v29  ;;  %v7384_v29 = vld [vmem:[%s9559_s21 + $0xf0] sm:$0xff]  }
 0xb3d   :  { %v4884_v47 = vpop.f32.mrf.mxu0  ;;  %v4925_v36 = vpop.f32.mrf.mxu1 }
 0xb3e   :  { %v4970_v5 = vmax.f32 %v4883_v10, 0.0  ;;  %v4973_v3 = vpack.c.bf16 %v4969_v34, %v4969_v34  ;;  %v5041_v36 = vld [vmem:[%s9558_s20] sm:$0x3] }
 0xb3f   :  { %v4885_v0 = vpop.f32.mrf.mxu0  ;;  %v4926_v57 = vpop.f32.mrf.mxu1  ;;  %v5046_v38 = vrot.slane %v5041_v36, %v10389_v62 }
 0xb40   :  { %v4974_v59 = vpack.c.bf16 %v4970_v5, %v4970_v5  ;;  %v10390_v5 = vld [vmem:[#allocation34_spill] sm:$0xff] }
 0xb41   :  { %v5050_v0 = vrot.slane %v5041_v36, %v10390_v5 }
 0xb42   :  { %5405 = vmatprep.mubr.bf16.mxu1 %v4974_v59 }
 0xb43   :  { %5406 = vmatmul.mubr.bf16.vlgmr.msra.gmra.mxu1 %v4973_v3 }
 0xb44   :  { %6434 = vmatpush3.bf16.msra.mxu1 %v7322_v52  ;;  %5756 = vmatprep.mubr.bf16.mxu1 %v5458_v60 }
 0xb45   :  { %6435 = vmatprep.subr.bf16.mxu1 %v7326_v2 }
 0xb48   :  { %6436 = vmatpush3.bf16.msra.mxu1 %v7327_v4 }
 0xb49   :  { %6437 = vmatprep.subr.bf16.mxu1 %v7331_v13 }
 0xb4c   :  { %6438 = vmatpush3.bf16.msra.mxu1 %v7332_v53 }
 0xb4d   :  { %6439 = vmatprep.subr.bf16.mxu1 %v7336_v58 }
 0xb50   :  { %6440 = vmatpush3.bf16.msra.mxu1 %v7337_v46 }
 0xb51   :  { %6441 = vmatprep.subr.bf16.mxu1 %v7341_v6 }
 0xb54   :  { %6442 = vmatpush3.bf16.msra.mxu1 %v7342_v44  ;;  %v6400_v44 = vld [vmem:[%s9560_s22] ss:$0 sm:$0xff] }
 0xb55   :  { %6443 = vmatprep.subr.bf16.mxu1 %v7346_v48 }
 0xb58   :  { %6444 = vmatpush3.bf16.msra.mxu1 %v7347_v31 }
 0xb59   :  { %6445 = vmatprep.subr.bf16.mxu1 %v7351_v35 }
 0xb5c   :  { %6446 = vmatpush3.bf16.msra.mxu1 %v7352_v17 }
 0xb5d   :  { %6447 = vmatprep.subr.bf16.mxu1 %v7356_v19 }
 0xb60   :  { %6448 = vmatpush3.bf16.msra.mxu1 %v7357_v15 }
 0xb63   :  { %5757 = vmatmul.mubr.bf16.vlgmr.msra.gmra.mxu1 %v5457_v49 }
 0xb79   :  { %v4962_v45 = vpop.f32.mrf.mxu0 }
 0xb7a   :  { %v4963_v25 = vadd.f32 %v4962_v45, %v4922_v41 }
 0xb7b   :  { %v4964_v23 = vpop.f32.mrf.mxu0 }
 0xb7c   :  { %v4965_v61 = vadd.f32 %v4964_v23, %v4924_v63  ;;  %v4971_v18 = vmax.f32 %v4963_v25, 0.0 }
 0xb7d   :  { %v4966_v55 = vpop.f32.mrf.mxu0 }
 0xb7e   :  { %v4972_v51 = vmax.f32 %v4965_v61, 0.0  ;;  %v4975_v40 = vpack.c.bf16 %v4971_v18, %v4971_v18 }
 0xb7f   :  { %v4967_v8 = vpop.f32.mrf.mxu0 }
 0xb80   :  { %v4976_v9 = vpack.c.bf16 %v4972_v51, %v4972_v51 }
 0xb82   :  { %5446 = vmatprep.mubr.bf16.mxu0 %v4976_v9 }
 0xb83   :  { %5447 = vmatmul.mubr.bf16.vlgmr.msra.gmra.mxu0 %v4975_v40 }
 0xb84   :  { %6456 = vmatpush3.bf16.msra.mxu0 %v7383_v50 }
 0xb85   :  { %6457 = vmatprep.subr.bf16.mxu0 %v7384_v29 }
 0xb88   :  { %6458 = vmatpush3.bf16.msra.mxu0 %v7385_v22 }
 0xb89   :  { %6459 = vmatprep.subr.bf16.mxu0 %v7386_v12 }
 0xb8c   :  { %6460 = vmatpush3.bf16.msra.mxu0 %v7387_v26 }
 0xb8d   :  { %6461 = vmatprep.subr.bf16.mxu0 %v7388_v1 }
 0xb90   :  { %6462 = vmatpush3.bf16.msra.mxu0 %v7389_v43 }
 0xb91   :  { %6463 = vmatprep.subr.bf16.mxu0 %v7390_v30 }
 0xb94   :  { %6464 = vmatpush3.bf16.msra.mxu0 %v7391_v7 }
 0xb95   :  { %6465 = vmatprep.subr.bf16.mxu0 %v7392_v42 }
 0xb98   :  { %6466 = vmatpush3.bf16.msra.mxu0 %v7393_v21 }
 0xb99   :  { %6467 = vmatprep.subr.bf16.mxu0 %v7394_v27 }
 0xb9c   :  { %6468 = vmatpush3.bf16.msra.mxu0 %v7395_v39 }
 0xb9d   :  { %6469 = vmatprep.subr.bf16.mxu0 %v7396_v11 }
 0xba0   :  { %6470 = vmatpush3.bf16.msra.mxu0 %v7397_v14 }
 0xc03   :  { %v5407_v16 = vpop.f32.mrf.mxu1 }
 0xc04   :  { %v5408_v57 = vadd.f32 %v5407_v16, %v5046_v38 }
 0xc05   :  { %v5409_v20 = vpop.f32.mrf.mxu1 }
 0xc06   :  { %v5410_v52 = vadd.f32 %v5409_v20, %v5050_v0 }
 0xc07   :  { %v5411_v24 = vpop.f32.mrf.mxu1 }
 0xc09   :  { %v5412_v28 = vpop.f32.mrf.mxu1 }
 0xc23   :  { %v6449_v33 = vpop.f32.mrf.mxu1 }
 0xc25   :  { %v6450_v32 = vpop.f32.mrf.mxu1 }
 0xc26   :  { %v6451_v10 = vadd.f32 %v6450_v32, %v6449_v33 }
 0xc27   :  { %v6452_v34 = vpop.f32.mrf.mxu1 }
 0xc28   :  { %v5759_v35 = vadd.f32 %v6451_v10, %v6400_v44 }
 0xc29   :  { %v6453_v47 = vpop.f32.mrf.mxu1 }
 0xc43   :  { %v5448_v59 = vpop.f32.mrf.mxu0 }
 0xc44   :  { %v5449_v3 = vadd.f32 %v5448_v59, %v5408_v57 }
 0xc45   :  { %v5450_v2 = vpop.f32.mrf.mxu0 }
 0xc46   :  { %v5451_v60 = vadd.f32 %v5450_v2, %v5410_v52  ;;  %v5455_v4 = vmax.f32 %v5449_v3, 0.0 }
 0xc47   :  { %v5452_v13 = vpop.f32.mrf.mxu0 }
 0xc48   :  { %v5456_v53 = vmax.f32 %v5451_v60, 0.0  ;;  %v5459_v6 = vpack.c.bf16 %v5455_v4, %v5455_v4 }
 0xc49   :  { %v5453_v58 = vpop.f32.mrf.mxu0 }
 0xc4a   :  { %v5460_v46 = vpack.c.bf16 %v5456_v53, %v5456_v53 }
 0xc4c   :  { %5796 = vmatprep.mubr.bf16.mxu0 %v5460_v46 }
 0xc4d   :  { %5797 = vmatmul.mubr.bf16.vlgmr.msra.gmra.mxu0 %v5459_v6 }
 0xd0d   :  { %v6471_v48 = vpop.f32.mrf.mxu0 }
 0xd0f   :  { %v6472_v31 = vpop.f32.mrf.mxu0 }
 0xd10   :  { %v6473_v17 = vadd.f32 %v6472_v31, %v6471_v48 }
 0xd11   :  { %v6474_v19 = vpop.f32.mrf.mxu0 }
 0xd12   :  { %v5799_v15 = vadd.f32 %v6473_v17, %v5759_v35 }
 0xd13   :  { %v6475_v37 = vpop.f32.mrf.mxu0 }
 0xd14   :  { %5805 = vst.msk [vmem:[%s9561_s23] sm:$0xff] %vm5804_vm1, %v5799_v15 }
 0xd15   :  { %5810 = vsyncpa [#allocation3], 1 }
 0xd16   :  { %5811 = vsyncpa [#allocation5], 1 }
 0xd17   :  { %5812 = vsyncpa [#allocation8], 1 }
 0xd18   :  { %5813 = vsyncpa [#allocation11], 1 }
 0xd19   :  { %5814 = vsyncpa [#allocation14], 1 }
 0xd1a   :  { %5815 = vsyncpa [#allocation17], 1 }
 0xd1b   :  { %5816 = vsyncpa [#allocation20], 1 }
 0xd1c   :  { %5817 = vsyncpa [#allocation23], 1 }

</bundles_post_ra>
